<compile_context>
chip_gen: v5e
topology: v5e:2x2
jax: 0.10.0
libtpu: 0.0.40
codegen_flags: <defaults>
</compile_context>

<pallas_src>
import functools
import math

import jax
import jax.numpy as jnp
from jax import lax
from jax.experimental import pallas as pl
from jax.experimental.pallas import tpu as pltpu


def _round_up(x, m):
    return (x + m - 1) // m * m


def _vmem_budget_bytes():
    """Per-generation VMEM budget: ~3/4 of physical capacity, capped at 100 MiB."""
    try:
        cap = int(getattr(pltpu.get_tpu_info(), "vmem_capacity_bytes", 0))
        if cap > 0:
            return min((cap * 3) // 4, 100 * 1024 * 1024)
    except Exception:
        pass
    return 48 * 1024 * 1024   # conservative fallback (fits v7x's 64 MiB physical VMEM)


def _divisors_desc(n):
    return sorted({d for d in range(1, n + 1) if n % d == 0}, reverse=True)


def _conv_tile_bytes(th, H, W, Cin, Cout_p):
    """Rough (layout-padded) per-step VMEM estimate for kernel 1."""
    bf16 = 2
    xp = 2 * (H + 2) * _round_up(W + 2, 16) * _round_up(Cin, 128) * bf16    # resident image, 2 bufs
    wmat = 2 * _round_up(9 * Cin, 16) * Cout_p * bf16                        # weight slab, 2 bufs
    ybuf = 2 * _round_up(th * W, 16) * Cout_p * bf16                         # y tile, 2 bufs
    patch = th * _round_up(W, 16) * _round_up(9 * Cin, 128) * bf16           # im2col scratch
    acc = _round_up(th * W, 16) * Cout_p * 4                                 # live f32 matmul result
    return xp + wmat + ybuf + patch + acc + (256 << 10)                      # + stats/bias/slack


def _pick_conv_row_tile(H, W, Cin, Cout_p, budget):
    """Largest row tile TH (divisor of H, sublane-aligned y tile) fitting the VMEM budget."""
    for th in _divisors_desc(H):
        if th != H and (th * W) % 8 != 0:
            continue  # (8,128) constraint on the (TH*W, Cout_p) output block
        if _conv_tile_bytes(th, H, W, Cin, Cout_p) <= int(budget * 0.8):
            return th
    # TODO(synk): halo-blocked input DMA (memory_space=pl.ANY + make_async_copy of TH+2 rows)
    # so very large images fit v7x's 64 MiB VMEM; not needed at these shapes.
    raise ValueError("Conv2dBlock Pallas kernel: padded image does not fit the VMEM budget.")


def _pick_bn_row_tile(rows, Cout_p, budget):
    """Largest lane-dense row block for the streaming BN+ReLU kernel."""
    for tr in _divisors_desc(rows):
        if tr != rows and tr % 8 != 0:
            continue
        if tr * Cout_p * 12 <= int(budget * 0.8):   # bf16 in + f32 out, double-buffered
            return tr
    return rows


def _conv_stats_kernel(xp_ref, w_ref, b_ref, y_ref, stats_ref, patch_ref, *, TH, W, Cin):
    """3x3 conv on one (image, row-tile): VMEM im2col gather -> single K=9*Cin MXU matmul.

    xp_ref:    (1, H+2, W+2, Cin)  bf16  whole padded image (VMEM-resident across row tiles)
    w_ref:     (9*Cin, Cout_p)     bf16  im2col-packed weights
    b_ref:     (1, Cout_p)         f32   conv bias
    y_ref:     (1, TH*W, Cout_p)   bf16  conv output tile (lane-dense)
    stats_ref: (1, 2, Cout_p)      f32   per-tile [sum, sum_sq] (from the f32 accumulator)
    patch_ref: (TH, W, 9*Cin)      bf16  persistent im2col scratch
    """
    h0 = pl.multiple_of(pl.program_id(1) * TH, TH)
    for kh in range(3):
        rows = xp_ref[0, pl.ds(h0 + kh, TH), :, :]                 # (TH, W+2, Cin)
        for kw in range(3):
            tap = kh * 3 + kw
            patch_ref[:, :, tap * Cin:(tap + 1) * Cin] = rows[:, kw:kw + W, :]
    patch = patch_ref[...].reshape(TH * W, 9 * Cin)
    acc = jnp.dot(patch, w_ref[...], preferred_element_type=jnp.float32) + b_ref[...]
    y_ref[0] = acc.astype(y_ref.dtype)
    # Partial BN batch stats from the f32 accumulator (before the bf16 downcast).
    # NOTE: var = E[y^2] - E[y]^2 is fine here (post-conv activations are near zero-mean);
    # switch to shifted/compensated sums if tolerances ever tighten.
    stats_ref[0, 0:1, :] = jnp.sum(acc, axis=0, keepdims=True)
    stats_ref[0, 1:2, :] = jnp.sum(acc * acc, axis=0, keepdims=True)


def _bn_relu_kernel(y_ref, scale_ref, shift_ref, o_ref):
    # y_ref: (TR, Cout_p) bf16;  scale/shift: (1, Cout_p) f32;  o_ref: (TR, Cout_p) f32
    o_ref[...] = jnp.maximum(
        y_ref[...].astype(jnp.float32) * scale_ref[...] + shift_ref[...], 0.0)


def conv2d_block_forward(x_nchw, w_oihw, b, gamma, beta, eps=1e-5):
    """Conv2d(3x3, s=1, p=1) -> BatchNorm2d (training-mode batch stats, biased var) -> ReLU."""
    # TODO(synk): the BatchNorm running_mean/running_var (momentum=0.05) update is a
    # training-only buffer side effect that does not change this forward output; not implemented.
    N, Cin, H, W = x_nchw.shape
    Cout = w_oihw.shape[0]
    Cout_p = _round_up(Cout, 128)                 # lane-dense output-channel dim
    budget = _vmem_budget_bytes()
    TH = _pick_conv_row_tile(H, W, Cin, Cout_p, budget)
    T = H // TH
    HW = H * W

    # --- glue (one fused XLA pass): NCHW -> spatially padded NHWC, bf16 MXU operands ---
    xp = jnp.pad(jnp.transpose(x_nchw, (0, 2, 3, 1)),
                 ((0, 0), (1, 1), (1, 1), (0, 0))).astype(jnp.bfloat16)
    # weights (Cout, Cin, 3, 3) -> im2col-packed (9*Cin, Cout_p): row = (kh*3 + kw)*Cin + c
    w_mat = jnp.transpose(w_oihw, (2, 3, 1, 0)).reshape(9 * Cin, Cout)
    w_mat = jnp.pad(w_mat, ((0, 0), (0, Cout_p - Cout))).astype(jnp.bfloat16)
    b_p = jnp.pad(b.astype(jnp.float32), (0, Cout_p - Cout)).reshape(1, Cout_p)

    # --- kernel 1: 3x3 gather -> one wide-K MXU matmul per row tile, fused partial BN stats ---
    kernel1 = functools.partial(_conv_stats_kernel, TH=TH, W=W, Cin=Cin)
    y, stats = pl.pallas_call(
        kernel1,
        out_shape=(jax.ShapeDtypeStruct((N, HW, Cout_p), jnp.bfloat16),
                   jax.ShapeDtypeStruct((N * T, 2, Cout_p), jnp.float32)),
        grid_spec=pltpu.PrefetchScalarGridSpec(
            num_scalar_prefetch=0,
            grid=(N, T),
            in_specs=[
                pl.BlockSpec((1, H + 2, W + 2, Cin), lambda n, t: (n, 0, 0, 0)),
                pl.BlockSpec((9 * Cin, Cout_p), lambda n, t: (0, 0)),
                pl.BlockSpec((1, Cout_p), lambda n, t: (0, 0)),
            ],
            out_specs=[
                pl.BlockSpec((1, TH * W, Cout_p), lambda n, t: (n, t, 0)),
                pl.BlockSpec((1, 2, Cout_p), lambda n, t: (n * T + t, 0, 0)),
            ],
            scratch_shapes=[pltpu.VMEM((TH, W, 9 * Cin), jnp.bfloat16)],
        ),
        compiler_params=pltpu.CompilerParams(
            # Batch axis "parallel", row-tile axis "arbitrary": v7x's two TensorCores split
            # across images, so the resident padded-image DMA is never duplicated per core.
            dimension_semantics=("parallel", "arbitrary"),
            vmem_limit_bytes=budget,
        ),
    )(xp, w_mat, b_p)

    # --- tiny BN batch-stat reduction (biased variance, PyTorch training-mode normalization) ---
    count = float(N * HW)
    mean = jnp.sum(stats[:, 0, :], axis=0) / count
    var = jnp.maximum(jnp.sum(stats[:, 1, :], axis=0) / count - mean * mean, 0.0)
    gamma_p = jnp.pad(gamma.astype(jnp.float32), (0, Cout_p - Cout))
    beta_p = jnp.pad(beta.astype(jnp.float32), (0, Cout_p - Cout))
    inv = lax.rsqrt(var + eps)
    scale = (gamma_p * inv).reshape(1, Cout_p)
    shift = (beta_p - mean * gamma_p * inv).reshape(1, Cout_p)

    # --- kernel 2: streaming scale/shift + ReLU over y flattened to (N*HW, Cout_p) ---
    rows = N * HW
    TR = _pick_bn_row_tile(rows, Cout_p, budget)
    out = pl.pallas_call(
        _bn_relu_kernel,
        out_shape=jax.ShapeDtypeStruct((rows, Cout_p), jnp.float32),
        grid_spec=pltpu.PrefetchScalarGridSpec(
            num_scalar_prefetch=0,
            grid=(rows // TR,),
            in_specs=[
                pl.BlockSpec((TR, Cout_p), lambda r: (r, 0)),
                pl.BlockSpec((1, Cout_p), lambda r: (0, 0)),
                pl.BlockSpec((1, Cout_p), lambda r: (0, 0)),
            ],
            out_specs=pl.BlockSpec((TR, Cout_p), lambda r: (r, 0)),
        ),
        compiler_params=pltpu.CompilerParams(
            dimension_semantics=("parallel",),
            vmem_limit_bytes=budget,
        ),
    )(y.reshape(rows, Cout_p), scale, shift)

    # --- glue (one fused XLA pass): drop channel padding, NHWC -> NCHW ---
    return jnp.transpose(out.reshape(N, H, W, Cout_p)[..., :Cout], (0, 3, 1, 2))


def reference_forward(x_nchw, w_oihw, b, gamma, beta, eps=1e-5):
    """Pure-JAX reference mirroring the kernel's numerics: bf16 conv operands (f32 accumulation),
    BN batch stats from the f32 conv output, and a bf16 round-trip on the conv output (the kernel
    stores its intermediate in bf16) before the fused scale/shift + ReLU."""
    xb = x_nchw.astype(jnp.bfloat16).astype(jnp.float32)
    wb = w_oihw.astype(jnp.bfloat16).astype(jnp.float32)
    y = lax.conv_general_dilated(
        xb, wb, window_strides=(1, 1), padding=((1, 1), (1, 1)),
        dimension_numbers=("NCHW", "OIHW", "NCHW"),
    ) + b.reshape(1, -1, 1, 1)
    mean = jnp.mean(y, axis=(0, 2, 3), keepdims=True)
    var = jnp.var(y, axis=(0, 2, 3), keepdims=True)
    y16 = y.astype(jnp.bfloat16).astype(jnp.float32)
    yn = (y16 - mean) * lax.rsqrt(var + eps) * gamma.reshape(1, -1, 1, 1) \
        + beta.reshape(1, -1, 1, 1)
    return jnp.maximum(yn, 0.0)


if __name__ == "__main__":
    N, Cin, Cout, H, W = 2, 4, 8, 16, 16

    key = jax.random.PRNGKey(0)
    kx, kw_, kb, kg, kbe = jax.random.split(key, 5)

    # Deterministic init (shapes of nn.Conv2d(in_c, out_c, (3,3)) / nn.BatchNorm2d(out_c))
    fan_in = Cin * 3 * 3
    bound = 1.0 / math.sqrt(fan_in)
    w = jax.random.uniform(kw_, (Cout, Cin, 3, 3), jnp.float32, -bound, bound)
    b = jax.random.uniform(kb, (Cout,), jnp.float32, -bound, bound)
    gamma = jax.random.uniform(kg, (Cout,), jnp.float32, 0.5, 1.5)
    beta = 0.1 * jax.random.normal(kbe, (Cout,), jnp.float32)
    x = jax.random.normal(kx, (N, Cin, H, W), jnp.float32)

    fwd = jax.jit(conv2d_block_forward)
    out = jax.block_until_ready(fwd(x, w, b, gamma, beta))
    assert out.shape == (N, Cout, H, W)

    ref = jax.block_until_ready(reference_forward(x, w, b, gamma, beta))
    max_err = float(jnp.max(jnp.abs(out - ref)))
    # bf16-intermediate pipeline vs a reference that mirrors the same bf16 round-trip.
    assert jnp.allclose(out, ref, atol=2e-2, rtol=2e-2), max_err

    print("KERNEL_OK")
</pallas_src>

<mosaic_0001>
module attributes {stable_mosaic.version = 11 : i64} {
  func.func @_bn_relu_kernel(%arg0: i32, %arg1: memref<512x128xbf16, #tpu.memory_space<vmem>>, %arg2: memref<1x128xf32, #tpu.memory_space<vmem>>, %arg3: memref<1x128xf32, #tpu.memory_space<vmem>>, %arg4: memref<512x128xf32, #tpu.memory_space<vmem>>) attributes {dimension_semantics = [#tpu.dimension_semantics<parallel>], iteration_bounds = array<i64: 1>, scalar_prefetch = 0 : i64, scratch_operands = 0 : i64, tpu.core_type = #tpu.core_type<tc>, window_params = [{transform_indices = @transform_0, window_bounds = array<i64: 512, 128>}, {pipeline_mode = #tpu.pipeline_mode<synchronous>, transform_indices = @transform_1, window_bounds = array<i64: 1, 128>}, {pipeline_mode = #tpu.pipeline_mode<synchronous>, transform_indices = @transform_2, window_bounds = array<i64: 1, 128>}, {transform_indices = @transform_3, window_bounds = array<i64: 512, 128>}]} {
    %c0 = arith.constant 0 : index
    %c0_0 = arith.constant 0 : index
    %0 = vector.load %arg1[%c0, %c0_0] : memref<512x128xbf16, #tpu.memory_space<vmem>>, vector<512x128xbf16>
    %1 = arith.extf %0 : vector<512x128xbf16> to vector<512x128xf32>
    %c0_1 = arith.constant 0 : index
    %c0_2 = arith.constant 0 : index
    %2 = vector.load %arg2[%c0_1, %c0_2] : memref<1x128xf32, #tpu.memory_space<vmem>>, vector<1x128xf32>
    %3 = vector.broadcast %2 : vector<1x128xf32> to vector<512x128xf32>
    %4 = arith.mulf %1, %3 : vector<512x128xf32>
    %c0_3 = arith.constant 0 : index
    %c0_4 = arith.constant 0 : index
    %5 = vector.load %arg3[%c0_3, %c0_4] : memref<1x128xf32, #tpu.memory_space<vmem>>, vector<1x128xf32>
    %6 = vector.broadcast %5 : vector<1x128xf32> to vector<512x128xf32>
    %7 = arith.addf %4, %6 : vector<512x128xf32>
    %cst = arith.constant 0.000000e+00 : f32
    %8 = vector.broadcast %cst : f32 to vector<512x128xf32>
    %9 = arith.maximumf %7, %8 : vector<512x128xf32>
    %c0_5 = arith.constant 0 : index
    %c0_6 = arith.constant 0 : index
    %10 = vector.load %arg4[%c0_5, %c0_6] : memref<512x128xf32, #tpu.memory_space<vmem>>, vector<512x128xf32>
    tpu.vector_store %arg4[%c0_5, %c0_6], %9 {strides = array<i32>} : memref<512x128xf32, #tpu.memory_space<vmem>>, vector<512x128xf32>,
    return
  }
  func.func @transform_0(%arg0: i32) -> (i32, i32) {
    %c0_i32 = arith.constant 0 : i32
    %c0_i32_0 = arith.constant 0 : i32
    return %arg0, %c0_i32 : i32, i32
  }
  func.func @transform_1(%arg0: i32) -> (i32, i32) {
    %c0_i32 = arith.constant 0 : i32
    %c0_i32_0 = arith.constant 0 : i32
    %c0_i32_1 = arith.constant 0 : i32
    return %c0_i32, %c0_i32_0 : i32, i32
  }
  func.func @transform_2(%arg0: i32) -> (i32, i32) {
    %c0_i32 = arith.constant 0 : i32
    %c0_i32_0 = arith.constant 0 : i32
    %c0_i32_1 = arith.constant 0 : i32
    return %c0_i32, %c0_i32_0 : i32, i32
  }
  func.func @transform_3(%arg0: i32) -> (i32, i32) {
    %c0_i32 = arith.constant 0 : i32
    %c0_i32_0 = arith.constant 0 : i32
    return %arg0, %c0_i32 : i32, i32
  }
}

module attributes {stable_mosaic.version = 11 : i64} {
  func.func @_conv_stats_kernel(%arg0: i32, %arg1: i32, %arg2: memref<1x18x18x4xbf16, #tpu.memory_space<vmem>>, %arg3: memref<36x128xbf16, #tpu.memory_space<vmem>>, %arg4: memref<1x128xf32, #tpu.memory_space<vmem>>, %arg5: memref<1x256x128xbf16, #tpu.memory_space<vmem>>, %arg6: memref<1x2x128xf32, #tpu.memory_space<vmem>>, %arg7: memref<16x16x36xbf16, #tpu.memory_space<vmem>>) attributes {dimension_semantics = [#tpu.dimension_semantics<parallel>, #tpu.dimension_semantics<arbitrary>], iteration_bounds = array<i64: 2, 1>, scalar_prefetch = 0 : i64, scratch_operands = 1 : i64, tpu.core_type = #tpu.core_type<tc>, window_params = [{transform_indices = @transform_0, window_bounds = array<i64: 1, 18, 18, 4>}, {pipeline_mode = #tpu.pipeline_mode<synchronous>, transform_indices = @transform_1, window_bounds = array<i64: 36, 128>}, {pipeline_mode = #tpu.pipeline_mode<synchronous>, transform_indices = @transform_2, window_bounds = array<i64: 1, 128>}, {transform_indices = @transform_3, window_bounds = array<i64: 1, 256, 128>}, {transform_indices = @transform_4, window_bounds = array<i64: 1, 2, 128>}]} {
    %c16_i32 = arith.constant 16 : i32
    %0 = arith.muli %arg1, %c16_i32 : i32
    %1 = tpu.assume_multiple %0, 16 : i32
    %c0_i32 = arith.constant 0 : i32
    %2 = arith.addi %1, %c0_i32 : i32
    %c0 = arith.constant 0 : index
    %3 = arith.index_cast %2 : i32 to index
    %c0_0 = arith.constant 0 : index
    %c0_1 = arith.constant 0 : index
    %4 = vector.load %arg2[%c0, %3, %c0_0, %c0_1] : memref<1x18x18x4xbf16, #tpu.memory_space<vmem>>, vector<1x16x18x4xbf16>
    %5 = vector.shape_cast %4 : vector<1x16x18x4xbf16> to vector<16x18x4xbf16>
    %6 = vector.extract_strided_slice %5 {offsets = [0, 0, 0], sizes = [16, 16, 4], strides = [1, 1, 1]} : vector<16x18x4xbf16> to vector<16x16x4xbf16>
    %c0_2 = arith.constant 0 : index
    %c0_3 = arith.constant 0 : index
    %c0_4 = arith.constant 0 : index
    %7 = vector.load %arg7[%c0_2, %c0_3, %c0_4] : memref<16x16x36xbf16, #tpu.memory_space<vmem>>, vector<16x16x4xbf16>
    tpu.vector_store %arg7[%c0_2, %c0_3, %c0_4], %6 {strides = array<i32>} : memref<16x16x36xbf16, #tpu.memory_space<vmem>>, vector<16x16x4xbf16>,
    %8 = vector.extract_strided_slice %5 {offsets = [0, 1, 0], sizes = [16, 16, 4], strides = [1, 1, 1]} : vector<16x18x4xbf16> to vector<16x16x4xbf16>
    %c0_5 = arith.constant 0 : index
    %c0_6 = arith.constant 0 : index
    %c4 = arith.constant 4 : index
    %9 = vector.load %arg7[%c0_5, %c0_6, %c4] : memref<16x16x36xbf16, #tpu.memory_space<vmem>>, vector<16x16x4xbf16>
    tpu.vector_store %arg7[%c0_5, %c0_6, %c4], %8 {strides = array<i32>} : memref<16x16x36xbf16, #tpu.memory_space<vmem>>, vector<16x16x4xbf16>,
    %10 = vector.extract_strided_slice %5 {offsets = [0, 2, 0], sizes = [16, 16, 4], strides = [1, 1, 1]} : vector<16x18x4xbf16> to vector<16x16x4xbf16>
    %c0_7 = arith.constant 0 : index
    %c0_8 = arith.constant 0 : index
    %c8 = arith.constant 8 : index
    %11 = vector.load %arg7[%c0_7, %c0_8, %c8] : memref<16x16x36xbf16, #tpu.memory_space<vmem>>, vector<16x16x4xbf16>
    tpu.vector_store %arg7[%c0_7, %c0_8, %c8], %10 {strides = array<i32>} : memref<16x16x36xbf16, #tpu.memory_space<vmem>>, vector<16x16x4xbf16>,
    %c1_i32 = arith.constant 1 : i32
    %12 = arith.addi %1, %c1_i32 : i32
    %c0_9 = arith.constant 0 : index
    %13 = arith.index_cast %12 : i32 to index
    %c0_10 = arith.constant 0 : index
    %c0_11 = arith.constant 0 : index
    %14 = vector.load %arg2[%c0_9, %13, %c0_10, %c0_11] : memref<1x18x18x4xbf16, #tpu.memory_space<vmem>>, vector<1x16x18x4xbf16>
    %15 = vector.shape_cast %14 : vector<1x16x18x4xbf16> to vector<16x18x4xbf16>
    %16 = vector.extract_strided_slice %15 {offsets = [0, 0, 0], sizes = [16, 16, 4], strides = [1, 1, 1]} : vector<16x18x4xbf16> to vector<16x16x4xbf16>
    %c0_12 = arith.constant 0 : index
    %c0_13 = arith.constant 0 : index
    %c12 = arith.constant 12 : index
    %17 = vector.load %arg7[%c0_12, %c0_13, %c12] : memref<16x16x36xbf16, #tpu.memory_space<vmem>>, vector<16x16x4xbf16>
    tpu.vector_store %arg7[%c0_12, %c0_13, %c12], %16 {strides = array<i32>} : memref<16x16x36xbf16, #tpu.memory_space<vmem>>, vector<16x16x4xbf16>,
    %18 = vector.extract_strided_slice %15 {offsets = [0, 1, 0], sizes = [16, 16, 4], strides = [1, 1, 1]} : vector<16x18x4xbf16> to vector<16x16x4xbf16>
    %c0_14 = arith.constant 0 : index
    %c0_15 = arith.constant 0 : index
    %c16 = arith.constant 16 : index
    %19 = vector.load %arg7[%c0_14, %c0_15, %c16] : memref<16x16x36xbf16, #tpu.memory_space<vmem>>, vector<16x16x4xbf16>
    tpu.vector_store %arg7[%c0_14, %c0_15, %c16], %18 {strides = array<i32>} : memref<16x16x36xbf16, #tpu.memory_space<vmem>>, vector<16x16x4xbf16>,
    %20 = vector.extract_strided_slice %15 {offsets = [0, 2, 0], sizes = [16, 16, 4], strides = [1, 1, 1]} : vector<16x18x4xbf16> to vector<16x16x4xbf16>
    %c0_16 = arith.constant 0 : index
    %c0_17 = arith.constant 0 : index
    %c20 = arith.constant 20 : index
    %21 = vector.load %arg7[%c0_16, %c0_17, %c20] : memref<16x16x36xbf16, #tpu.memory_space<vmem>>, vector<16x16x4xbf16>
    tpu.vector_store %arg7[%c0_16, %c0_17, %c20], %20 {strides = array<i32>} : memref<16x16x36xbf16, #tpu.memory_space<vmem>>, vector<16x16x4xbf16>,
    %c2_i32 = arith.constant 2 : i32
    %22 = arith.addi %1, %c2_i32 : i32
    %c0_18 = arith.constant 0 : index
    %23 = arith.index_cast %22 : i32 to index
    %c0_19 = arith.constant 0 : index
    %c0_20 = arith.constant 0 : index
    %24 = vector.load %arg2[%c0_18, %23, %c0_19, %c0_20] : memref<1x18x18x4xbf16, #tpu.memory_space<vmem>>, vector<1x16x18x4xbf16>
    %25 = vector.shape_cast %24 : vector<1x16x18x4xbf16> to vector<16x18x4xbf16>
    %26 = vector.extract_strided_slice %25 {offsets = [0, 0, 0], sizes = [16, 16, 4], strides = [1, 1, 1]} : vector<16x18x4xbf16> to vector<16x16x4xbf16>
    %c0_21 = arith.constant 0 : index
    %c0_22 = arith.constant 0 : index
    %c24 = arith.constant 24 : index
    %27 = vector.load %arg7[%c0_21, %c0_22, %c24] : memref<16x16x36xbf16, #tpu.memory_space<vmem>>, vector<16x16x4xbf16>
    tpu.vector_store %arg7[%c0_21, %c0_22, %c24], %26 {strides = array<i32>} : memref<16x16x36xbf16, #tpu.memory_space<vmem>>, vector<16x16x4xbf16>,
    %28 = vector.extract_strided_slice %25 {offsets = [0, 1, 0], sizes = [16, 16, 4], strides = [1, 1, 1]} : vector<16x18x4xbf16> to vector<16x16x4xbf16>
    %c0_23 = arith.constant 0 : index
    %c0_24 = arith.constant 0 : index
    %c28 = arith.constant 28 : index
    %29 = vector.load %arg7[%c0_23, %c0_24, %c28] : memref<16x16x36xbf16, #tpu.memory_space<vmem>>, vector<16x16x4xbf16>
    tpu.vector_store %arg7[%c0_23, %c0_24, %c28], %28 {strides = array<i32>} : memref<16x16x36xbf16, #tpu.memory_space<vmem>>, vector<16x16x4xbf16>,
    %30 = vector.extract_strided_slice %25 {offsets = [0, 2, 0], sizes = [16, 16, 4], strides = [1, 1, 1]} : vector<16x18x4xbf16> to vector<16x16x4xbf16>
    %c0_25 = arith.constant 0 : index
    %c0_26 = arith.constant 0 : index
    %c32 = arith.constant 32 : index
    %31 = vector.load %arg7[%c0_25, %c0_26, %c32] : memref<16x16x36xbf16, #tpu.memory_space<vmem>>, vector<16x16x4xbf16>
    tpu.vector_store %arg7[%c0_25, %c0_26, %c32], %30 {strides = array<i32>} : memref<16x16x36xbf16, #tpu.memory_space<vmem>>, vector<16x16x4xbf16>,
    %c0_27 = arith.constant 0 : index
    %c0_28 = arith.constant 0 : index
    %c0_29 = arith.constant 0 : index
    %32 = vector.load %arg7[%c0_27, %c0_28, %c0_29] : memref<16x16x36xbf16, #tpu.memory_space<vmem>>, vector<16x16x36xbf16>
    %33 = vector.shape_cast %32 : vector<16x16x36xbf16> to vector<256x36xbf16>
    %c0_30 = arith.constant 0 : index
    %c0_31 = arith.constant 0 : index
    %34 = vector.load %arg3[%c0_30, %c0_31] : memref<36x128xbf16, #tpu.memory_space<vmem>>, vector<36x128xbf16>
    %cst = arith.constant dense<0.000000e+00> : vector<256x128xf32>
    %35 = tpu.matmul %33, %34, %cst {dimension_numbers = #tpu.dot_dimension_numbers<[1], [0], [0], [1], [0, 0, 1, 1], [], []>} : vector<256x36xbf16>, vector<36x128xbf16>, vector<256x128xf32> -> vector<256x128xf32>
    %c0_32 = arith.constant 0 : index
    %c0_33 = arith.constant 0 : index
    %36 = vector.load %arg4[%c0_32, %c0_33] : memref<1x128xf32, #tpu.memory_space<vmem>>, vector<1x128xf32>
    %37 = vector.broadcast %36 : vector<1x128xf32> to vector<256x128xf32>
    %38 = arith.addf %35, %37 : vector<256x128xf32>
    %39 = arith.truncf %38 : vector<256x128xf32> to vector<256x128xbf16>
    %c0_34 = arith.constant 0 : index
    %c0_35 = arith.constant 0 : index
    %c0_36 = arith.constant 0 : index
    %40 = vector.load %arg5[%c0_34, %c0_35, %c0_36] : memref<1x256x128xbf16, #tpu.memory_space<vmem>>, vector<1x256x128xbf16>
    %41 = vector.shape_cast %40 : vector<1x256x128xbf16> to vector<256x128xbf16>
    %42 = vector.shape_cast %39 : vector<256x128xbf16> to vector<1x256x128xbf16>
    tpu.vector_store %arg5[%c0_34, %c0_35, %c0_36], %42 {strides = array<i32>} : memref<1x256x128xbf16, #tpu.memory_space<vmem>>, vector<1x256x128xbf16>,
    %cst_37 = arith.constant dense<0.000000e+00> : vector<128xf32>
    %43 = vector.multi_reduction <add>, %38, %cst_37 [0] : vector<256x128xf32> to vector<128xf32>
    %44 = vector.shape_cast %43 : vector<128xf32> to vector<1x128xf32>
    %c0_38 = arith.constant 0 : index
    %c0_39 = arith.constant 0 : index
    %c0_40 = arith.constant 0 : index
    %45 = vector.load %arg6[%c0_38, %c0_39, %c0_40] : memref<1x2x128xf32, #tpu.memory_space<vmem>>, vector<1x1x128xf32>
    %46 = vector.shape_cast %45 : vector<1x1x128xf32> to vector<1x128xf32>
    %47 = vector.shape_cast %44 : vector<1x128xf32> to vector<1x1x128xf32>
    tpu.vector_store %arg6[%c0_38, %c0_39, %c0_40], %47 {strides = array<i32>} : memref<1x2x128xf32, #tpu.memory_space<vmem>>, vector<1x1x128xf32>,
    %48 = arith.mulf %38, %38 : vector<256x128xf32>
    %cst_41 = arith.constant dense<0.000000e+00> : vector<128xf32>
    %49 = vector.multi_reduction <add>, %48, %cst_41 [0] : vector<256x128xf32> to vector<128xf32>
    %50 = vector.shape_cast %49 : vector<128xf32> to vector<1x128xf32>
    %c0_42 = arith.constant 0 : index
    %c1 = arith.constant 1 : index
    %c0_43 = arith.constant 0 : index
    %51 = vector.load %arg6[%c0_42, %c1, %c0_43] : memref<1x2x128xf32, #tpu.memory_space<vmem>>, vector<1x1x128xf32>
    %52 = vector.shape_cast %51 : vector<1x1x128xf32> to vector<1x128xf32>
    %53 = vector.shape_cast %50 : vector<1x128xf32> to vector<1x1x128xf32>
    tpu.vector_store %arg6[%c0_42, %c1, %c0_43], %53 {strides = array<i32>} : memref<1x2x128xf32, #tpu.memory_space<vmem>>, vector<1x1x128xf32>,
    return
  }
  func.func @transform_0(%arg0: i32, %arg1: i32) -> (i32, i32, i32, i32) {
    %c0_i32 = arith.constant 0 : i32
    %c0_i32_0 = arith.constant 0 : i32
    %c0_i32_1 = arith.constant 0 : i32
    %c0_i32_2 = arith.constant 0 : i32
    return %arg0, %c0_i32, %c0_i32_0, %c0_i32_1 : i32, i32, i32, i32
  }
  func.func @transform_1(%arg0: i32, %arg1: i32) -> (i32, i32) {
    %c0_i32 = arith.constant 0 : i32
    %c0_i32_0 = arith.constant 0 : i32
    %c0_i32_1 = arith.constant 0 : i32
    return %c0_i32, %c0_i32_0 : i32, i32
  }
  func.func @transform_2(%arg0: i32, %arg1: i32) -> (i32, i32) {
    %c0_i32 = arith.constant 0 : i32
    %c0_i32_0 = arith.constant 0 : i32
    %c0_i32_1 = arith.constant 0 : i32
    return %c0_i32, %c0_i32_0 : i32, i32
  }
  func.func @transform_3(%arg0: i32, %arg1: i32) -> (i32, i32, i32) {
    %c0_i32 = arith.constant 0 : i32
    %c0_i32_0 = arith.constant 0 : i32
    return %arg0, %arg1, %c0_i32 : i32, i32, i32
  }
  func.func @transform_4(%arg0: i32, %arg1: i32) -> (i32, i32, i32) {
    %c1_i32 = arith.constant 1 : i32
    %0 = arith.muli %arg0, %c1_i32 : i32
    %1 = arith.addi %0, %arg1 : i32
    %c0_i32 = arith.constant 0 : i32
    %c0_i32_0 = arith.constant 0 : i32
    %c0_i32_1 = arith.constant 0 : i32
    return %1, %c0_i32, %c0_i32_0 : i32, i32, i32
  }
}

</mosaic_0001>

<bundles_post_ra>
// kernel: conv2d_block_forward.3
= control target key start
LH: loop header
LB: loop body
LE: loop exit
PB: predicated region body
PF: predicated region fallthrough
CT: control target
= control target key end

     0   :  { %s1017_s0 = inlined_call_operand.vmem [shape: bf16[512,128], index: 0, kind: input, shape index: {}]   ;;  %s1018_s1 = inlined_call_operand.vmem [shape: f32[1,128], index: 1, kind: input, shape index: {}]   ;;  %s1019_s2 = inlined_call_operand.vmem [shape: f32[1,128], index: 2, kind: input, shape index: {}]   ;;  %s1020_s3 = inlined_call_operand.vmem [shape: f32[512,128], index: 3, kind: output, shape index: {}]  }
   0x1   :  { %v411_v0 = vld [vmem:[%s1017_s0] sm:$0xff]   ;;  %v538_v5 = vld [vmem:[%s1017_s0 + $0x8] sm:$0xff]   ;;  %v539_v8 = vld [vmem:[%s1017_s0 + $0x10] sm:$0xff]  }
   0x2   :  { %v597_v1 = vld [vmem:[%s1018_s1] ss:$0 sm:$0xff]  ;;  %v412_v2 = vunpack.c.l.bf16 %v411_v0  ;;  %v413_v4 = vunpack.c.h.bf16 %v411_v0  ;;  %v416_v6 = vunpack.c.l.bf16 %v538_v5  ;;  %v417_v7 = vunpack.c.h.bf16 %v538_v5  ;;  %v540_v9 = vld [vmem:[%s1017_s0 + $0x18] sm:$0xff]   ;;  %v542_v31 = vld [vmem:[%s1017_s0 + $0x28] sm:$0xff]  }
   0x3   :  { %v602_v3 = vld [vmem:[%s1019_s2] ss:$0 sm:$0xff]  ;;  %v420_v12 = vunpack.c.l.bf16 %v539_v8  ;;  %v421_v13 = vunpack.c.h.bf16 %v539_v8  ;;  %v424_v16 = vunpack.c.l.bf16 %v540_v9  ;;  %v425_v17 = vunpack.c.h.bf16 %v540_v9  ;;  %v543_v36 = vld [vmem:[%s1017_s0 + $0x30] sm:$0xff]   ;;  %v544_v41 = vld [vmem:[%s1017_s0 + $0x38] sm:$0xff]  }
   0x4   :  { %v146_v10 = vmul.f32 %v597_v1, %v412_v2  ;;  %v147_v11 = vmul.f32 %v597_v1, %v413_v4  ;;  %v148_v14 = vmul.f32 %v597_v1, %v416_v6  ;;  %v149_v15 = vmul.f32 %v597_v1, %v417_v7  ;;  %v541_v26 = vld [vmem:[%s1017_s0 + $0x20] sm:$0xff]   ;;  %v546_v5 = vld [vmem:[%s1017_s0 + $0x48] sm:$0xff]  }
   0x5   :  { %v150_v20 = vmul.f32 %v597_v1, %v420_v12  ;;  %v151_v21 = vmul.f32 %v597_v1, %v421_v13  ;;  %v152_v24 = vmul.f32 %v597_v1, %v424_v16  ;;  %v153_v25 = vmul.f32 %v597_v1, %v425_v17  ;;  %v545_v62 = vld [vmem:[%s1017_s0 + $0x40] sm:$0xff]  }
   0x6   :  { %v214_v18 = vadd.f32 %v602_v3, %v146_v10  ;;  %v215_v19 = vadd.f32 %v602_v3, %v147_v11  ;;  %v216_v22 = vadd.f32 %v602_v3, %v148_v14  ;;  %v217_v23 = vadd.f32 %v602_v3, %v149_v15  ;;  %v547_v10 = vld [vmem:[%s1017_s0 + $0x50] sm:$0xff]   ;;  %v548_v15 = vld [vmem:[%s1017_s0 + $0x58] sm:$0xff]  }
   0x7   :  { %v218_v29 = vadd.f32 %v602_v3, %v150_v20  ;;  %v219_v30 = vadd.f32 %v602_v3, %v151_v21  ;;  %v220_v34 = vadd.f32 %v602_v3, %v152_v24  ;;  %v221_v35 = vadd.f32 %v602_v3, %v153_v25 }
   0x8   :  { %v278_v27 = vmax.f32 %v214_v18, 0.0  ;;  %v279_v28 = vmax.f32 %v215_v19, 0.0  ;;  %v280_v32 = vmax.f32 %v216_v22, 0.0  ;;  %v281_v33 = vmax.f32 %v217_v23, 0.0 }
   0x9   :  { %v282_v37 = vmax.f32 %v218_v29, 0.0  ;;  %v283_v38 = vmax.f32 %v219_v30, 0.0  ;;  %v428_v39 = vunpack.c.l.bf16 %v541_v26  ;;  %v429_v40 = vunpack.c.h.bf16 %v541_v26 }
   0xa   :  { %342 = vst [vmem:[%s1020_s3] sm:$0xff] %v278_v27  ;;  %v284_v42 = vmax.f32 %v220_v34, 0.0  ;;  %v285_v43 = vmax.f32 %v221_v35, 0.0  ;;  %v432_v44 = vunpack.c.l.bf16 %v542_v31  ;;  %v433_v45 = vunpack.c.h.bf16 %v542_v31 }
   0xb   :  { %343 = vst [vmem:[%s1020_s3 + $0x8] sm:$0xff] %v279_v28  ;;  %v154_v46 = vmul.f32 %v597_v1, %v428_v39  ;;  %v155_v47 = vmul.f32 %v597_v1, %v429_v40  ;;  %v436_v48 = vunpack.c.l.bf16 %v543_v36  ;;  %v437_v49 = vunpack.c.h.bf16 %v543_v36  ;;  %v549_v36 = vld [vmem:[%s1017_s0 + $0x60] sm:$0xff]  }
   0xc   :  { %344 = vst [vmem:[%s1020_s3 + $0x10] sm:$0xff] %v280_v32  ;;  %v156_v50 = vmul.f32 %v597_v1, %v432_v44  ;;  %v157_v51 = vmul.f32 %v597_v1, %v433_v45  ;;  %v440_v52 = vunpack.c.l.bf16 %v544_v41  ;;  %v441_v53 = vunpack.c.h.bf16 %v544_v41  ;;  %v550_v41 = vld [vmem:[%s1017_s0 + $0x68] sm:$0xff]  }
   0xd   :  { %345 = vst [vmem:[%s1020_s3 + $0x18] sm:$0xff] %v281_v33  ;;  %v222_v54 = vadd.f32 %v602_v3, %v154_v46  ;;  %v223_v55 = vadd.f32 %v602_v3, %v155_v47  ;;  %v158_v56 = vmul.f32 %v597_v1, %v436_v48  ;;  %v159_v57 = vmul.f32 %v597_v1, %v437_v49  ;;  %v551_v46 = vld [vmem:[%s1017_s0 + $0x70] sm:$0xff]  }
   0xe   :  { %346 = vst [vmem:[%s1020_s3 + $0x20] sm:$0xff] %v282_v37  ;;  %v224_v58 = vadd.f32 %v602_v3, %v156_v50  ;;  %v225_v59 = vadd.f32 %v602_v3, %v157_v51  ;;  %v160_v60 = vmul.f32 %v597_v1, %v440_v52  ;;  %v161_v61 = vmul.f32 %v597_v1, %v441_v53  ;;  %v552_v51 = vld [vmem:[%s1017_s0 + $0x78] sm:$0xff]  }
   0xf   :  { %347 = vst [vmem:[%s1020_s3 + $0x28] sm:$0xff] %v283_v38  ;;  %v286_v63 = vmax.f32 %v222_v54, 0.0  ;;  %v287_v0 = vmax.f32 %v223_v55, 0.0  ;;  %v226_v2 = vadd.f32 %v602_v3, %v158_v56  ;;  %v227_v4 = vadd.f32 %v602_v3, %v159_v57 }
  0x10   :  { %348 = vst [vmem:[%s1020_s3 + $0x30] sm:$0xff] %v284_v42  ;;  %v288_v6 = vmax.f32 %v224_v58, 0.0  ;;  %v289_v7 = vmax.f32 %v225_v59, 0.0  ;;  %v228_v8 = vadd.f32 %v602_v3, %v160_v60  ;;  %v229_v9 = vadd.f32 %v602_v3, %v161_v61 }
  0x11   :  { %349 = vst [vmem:[%s1020_s3 + $0x38] sm:$0xff] %v285_v43  ;;  %v290_v11 = vmax.f32 %v226_v2, 0.0  ;;  %v291_v12 = vmax.f32 %v227_v4, 0.0  ;;  %v444_v13 = vunpack.c.l.bf16 %v545_v62  ;;  %v445_v14 = vunpack.c.h.bf16 %v545_v62 }
  0x12   :  { %350 = vst [vmem:[%s1020_s3 + $0x40] sm:$0xff] %v286_v63  ;;  %v292_v16 = vmax.f32 %v228_v8, 0.0  ;;  %v293_v17 = vmax.f32 %v229_v9, 0.0  ;;  %v448_v18 = vunpack.c.l.bf16 %v546_v5  ;;  %v449_v19 = vunpack.c.h.bf16 %v546_v5 }
  0x13   :  { %351 = vst [vmem:[%s1020_s3 + $0x48] sm:$0xff] %v287_v0  ;;  %v162_v20 = vmul.f32 %v597_v1, %v444_v13  ;;  %v163_v21 = vmul.f32 %v597_v1, %v445_v14  ;;  %v452_v22 = vunpack.c.l.bf16 %v547_v10  ;;  %v453_v23 = vunpack.c.h.bf16 %v547_v10  ;;  %v553_v10 = vld [vmem:[%s1017_s0 + $0x80] sm:$0xff]  }
  0x14   :  { %352 = vst [vmem:[%s1020_s3 + $0x50] sm:$0xff] %v288_v6  ;;  %v164_v24 = vmul.f32 %v597_v1, %v448_v18  ;;  %v165_v25 = vmul.f32 %v597_v1, %v449_v19  ;;  %v456_v26 = vunpack.c.l.bf16 %v548_v15  ;;  %v457_v27 = vunpack.c.h.bf16 %v548_v15  ;;  %v554_v15 = vld [vmem:[%s1017_s0 + $0x88] sm:$0xff]  }
  0x15   :  { %353 = vst [vmem:[%s1020_s3 + $0x58] sm:$0xff] %v289_v7  ;;  %v230_v28 = vadd.f32 %v602_v3, %v162_v20  ;;  %v231_v29 = vadd.f32 %v602_v3, %v163_v21  ;;  %v166_v30 = vmul.f32 %v597_v1, %v452_v22  ;;  %v167_v31 = vmul.f32 %v597_v1, %v453_v23  ;;  %v555_v20 = vld [vmem:[%s1017_s0 + $0x90] sm:$0xff]  }
  0x16   :  { %354 = vst [vmem:[%s1020_s3 + $0x60] sm:$0xff] %v290_v11  ;;  %v232_v32 = vadd.f32 %v602_v3, %v164_v24  ;;  %v233_v33 = vadd.f32 %v602_v3, %v165_v25  ;;  %v168_v34 = vmul.f32 %v597_v1, %v456_v26  ;;  %v169_v35 = vmul.f32 %v597_v1, %v457_v27  ;;  %v556_v25 = vld [vmem:[%s1017_s0 + $0x98] sm:$0xff]  }
  0x17   :  { %355 = vst [vmem:[%s1020_s3 + $0x68] sm:$0xff] %v291_v12  ;;  %v294_v37 = vmax.f32 %v230_v28, 0.0  ;;  %v295_v38 = vmax.f32 %v231_v29, 0.0  ;;  %v234_v39 = vadd.f32 %v602_v3, %v166_v30  ;;  %v235_v40 = vadd.f32 %v602_v3, %v167_v31 }
  0x18   :  { %356 = vst [vmem:[%s1020_s3 + $0x70] sm:$0xff] %v292_v16  ;;  %v296_v42 = vmax.f32 %v232_v32, 0.0  ;;  %v297_v43 = vmax.f32 %v233_v33, 0.0  ;;  %v236_v44 = vadd.f32 %v602_v3, %v168_v34  ;;  %v237_v45 = vadd.f32 %v602_v3, %v169_v35 }
  0x19   :  { %357 = vst [vmem:[%s1020_s3 + $0x78] sm:$0xff] %v293_v17  ;;  %v298_v47 = vmax.f32 %v234_v39, 0.0  ;;  %v299_v48 = vmax.f32 %v235_v40, 0.0  ;;  %v460_v49 = vunpack.c.l.bf16 %v549_v36  ;;  %v461_v50 = vunpack.c.h.bf16 %v549_v36 }
  0x1a   :  { %358 = vst [vmem:[%s1020_s3 + $0x80] sm:$0xff] %v294_v37  ;;  %v300_v52 = vmax.f32 %v236_v44, 0.0  ;;  %v301_v53 = vmax.f32 %v237_v45, 0.0  ;;  %v464_v54 = vunpack.c.l.bf16 %v550_v41  ;;  %v465_v55 = vunpack.c.h.bf16 %v550_v41 }
  0x1b   :  { %359 = vst [vmem:[%s1020_s3 + $0x88] sm:$0xff] %v295_v38  ;;  %v170_v56 = vmul.f32 %v597_v1, %v460_v49  ;;  %v171_v57 = vmul.f32 %v597_v1, %v461_v50  ;;  %v468_v58 = vunpack.c.l.bf16 %v551_v46  ;;  %v469_v59 = vunpack.c.h.bf16 %v551_v46  ;;  %v557_v46 = vld [vmem:[%s1017_s0 + $0xa0] sm:$0xff]  }
  0x1c   :  { %360 = vst [vmem:[%s1020_s3 + $0x90] sm:$0xff] %v296_v42  ;;  %v172_v60 = vmul.f32 %v597_v1, %v464_v54  ;;  %v173_v61 = vmul.f32 %v597_v1, %v465_v55  ;;  %v472_v62 = vunpack.c.l.bf16 %v552_v51  ;;  %v473_v63 = vunpack.c.h.bf16 %v552_v51  ;;  %v558_v51 = vld [vmem:[%s1017_s0 + $0xa8] sm:$0xff]  }
  0x1d   :  { %361 = vst [vmem:[%s1020_s3 + $0x98] sm:$0xff] %v297_v43  ;;  %v238_v0 = vadd.f32 %v602_v3, %v170_v56  ;;  %v239_v2 = vadd.f32 %v602_v3, %v171_v57  ;;  %v174_v4 = vmul.f32 %v597_v1, %v468_v58  ;;  %v175_v5 = vmul.f32 %v597_v1, %v469_v59  ;;  %v559_v56 = vld [vmem:[%s1017_s0 + $0xb0] sm:$0xff]  }
  0x1e   :  { %362 = vst [vmem:[%s1020_s3 + $0xa0] sm:$0xff] %v298_v47  ;;  %v240_v6 = vadd.f32 %v602_v3, %v172_v60  ;;  %v241_v7 = vadd.f32 %v602_v3, %v173_v61  ;;  %v176_v8 = vmul.f32 %v597_v1, %v472_v62  ;;  %v177_v9 = vmul.f32 %v597_v1, %v473_v63  ;;  %v560_v61 = vld [vmem:[%s1017_s0 + $0xb8] sm:$0xff]  }
  0x1f   :  { %363 = vst [vmem:[%s1020_s3 + $0xa8] sm:$0xff] %v299_v48  ;;  %v302_v11 = vmax.f32 %v238_v0, 0.0  ;;  %v303_v12 = vmax.f32 %v239_v2, 0.0  ;;  %v242_v13 = vadd.f32 %v602_v3, %v174_v4  ;;  %v243_v14 = vadd.f32 %v602_v3, %v175_v5 }
  0x20   :  { %364 = vst [vmem:[%s1020_s3 + $0xb0] sm:$0xff] %v300_v52  ;;  %v304_v16 = vmax.f32 %v240_v6, 0.0  ;;  %v305_v17 = vmax.f32 %v241_v7, 0.0  ;;  %v244_v18 = vadd.f32 %v602_v3, %v176_v8  ;;  %v245_v19 = vadd.f32 %v602_v3, %v177_v9 }
  0x21   :  { %365 = vst [vmem:[%s1020_s3 + $0xb8] sm:$0xff] %v301_v53  ;;  %v306_v21 = vmax.f32 %v242_v13, 0.0  ;;  %v307_v22 = vmax.f32 %v243_v14, 0.0  ;;  %v476_v23 = vunpack.c.l.bf16 %v553_v10  ;;  %v477_v24 = vunpack.c.h.bf16 %v553_v10 }
  0x22   :  { %366 = vst [vmem:[%s1020_s3 + $0xc0] sm:$0xff] %v302_v11  ;;  %v308_v26 = vmax.f32 %v244_v18, 0.0  ;;  %v309_v27 = vmax.f32 %v245_v19, 0.0  ;;  %v480_v28 = vunpack.c.l.bf16 %v554_v15  ;;  %v481_v29 = vunpack.c.h.bf16 %v554_v15 }
  0x23   :  { %367 = vst [vmem:[%s1020_s3 + $0xc8] sm:$0xff] %v303_v12  ;;  %v178_v30 = vmul.f32 %v597_v1, %v476_v23  ;;  %v179_v31 = vmul.f32 %v597_v1, %v477_v24  ;;  %v484_v32 = vunpack.c.l.bf16 %v555_v20  ;;  %v485_v33 = vunpack.c.h.bf16 %v555_v20  ;;  %v561_v20 = vld [vmem:[%s1017_s0 + $0xc0] sm:$0xff]  }
  0x24   :  { %368 = vst [vmem:[%s1020_s3 + $0xd0] sm:$0xff] %v304_v16  ;;  %v180_v34 = vmul.f32 %v597_v1, %v480_v28  ;;  %v181_v35 = vmul.f32 %v597_v1, %v481_v29  ;;  %v488_v36 = vunpack.c.l.bf16 %v556_v25  ;;  %v489_v37 = vunpack.c.h.bf16 %v556_v25  ;;  %v562_v25 = vld [vmem:[%s1017_s0 + $0xc8] sm:$0xff]  }
  0x25   :  { %369 = vst [vmem:[%s1020_s3 + $0xd8] sm:$0xff] %v305_v17  ;;  %v246_v38 = vadd.f32 %v602_v3, %v178_v30  ;;  %v247_v39 = vadd.f32 %v602_v3, %v179_v31  ;;  %v182_v40 = vmul.f32 %v597_v1, %v484_v32  ;;  %v183_v41 = vmul.f32 %v597_v1, %v485_v33  ;;  %v563_v30 = vld [vmem:[%s1017_s0 + $0xd0] sm:$0xff]  }
  0x26   :  { %370 = vst [vmem:[%s1020_s3 + $0xe0] sm:$0xff] %v306_v21  ;;  %v248_v42 = vadd.f32 %v602_v3, %v180_v34  ;;  %v249_v43 = vadd.f32 %v602_v3, %v181_v35  ;;  %v184_v44 = vmul.f32 %v597_v1, %v488_v36  ;;  %v185_v45 = vmul.f32 %v597_v1, %v489_v37  ;;  %v564_v35 = vld [vmem:[%s1017_s0 + $0xd8] sm:$0xff]  }
  0x27   :  { %371 = vst [vmem:[%s1020_s3 + $0xe8] sm:$0xff] %v307_v22  ;;  %v310_v47 = vmax.f32 %v246_v38, 0.0  ;;  %v311_v48 = vmax.f32 %v247_v39, 0.0  ;;  %v250_v49 = vadd.f32 %v602_v3, %v182_v40  ;;  %v251_v50 = vadd.f32 %v602_v3, %v183_v41 }
  0x28   :  { %372 = vst [vmem:[%s1020_s3 + $0xf0] sm:$0xff] %v308_v26  ;;  %v312_v52 = vmax.f32 %v248_v42, 0.0  ;;  %v313_v53 = vmax.f32 %v249_v43, 0.0  ;;  %v252_v54 = vadd.f32 %v602_v3, %v184_v44  ;;  %v253_v55 = vadd.f32 %v602_v3, %v185_v45 }
  0x29   :  { %373 = vst [vmem:[%s1020_s3 + $0xf8] sm:$0xff] %v309_v27  ;;  %v314_v57 = vmax.f32 %v250_v49, 0.0  ;;  %v315_v58 = vmax.f32 %v251_v50, 0.0  ;;  %v492_v59 = vunpack.c.l.bf16 %v557_v46  ;;  %v493_v60 = vunpack.c.h.bf16 %v557_v46 }
  0x2a   :  { %374 = vst [vmem:[%s1020_s3 + $0x100] sm:$0xff] %v310_v47  ;;  %v316_v62 = vmax.f32 %v252_v54, 0.0  ;;  %v317_v63 = vmax.f32 %v253_v55, 0.0  ;;  %v496_v0 = vunpack.c.l.bf16 %v558_v51  ;;  %v497_v2 = vunpack.c.h.bf16 %v558_v51 }
  0x2b   :  { %375 = vst [vmem:[%s1020_s3 + $0x108] sm:$0xff] %v311_v48  ;;  %v186_v4 = vmul.f32 %v597_v1, %v492_v59  ;;  %v187_v5 = vmul.f32 %v597_v1, %v493_v60  ;;  %v500_v6 = vunpack.c.l.bf16 %v559_v56  ;;  %v501_v7 = vunpack.c.h.bf16 %v559_v56  ;;  %v565_v56 = vld [vmem:[%s1017_s0 + $0xe0] sm:$0xff]  }
  0x2c   :  { %376 = vst [vmem:[%s1020_s3 + $0x110] sm:$0xff] %v312_v52  ;;  %v188_v8 = vmul.f32 %v597_v1, %v496_v0  ;;  %v189_v9 = vmul.f32 %v597_v1, %v497_v2  ;;  %v504_v10 = vunpack.c.l.bf16 %v560_v61  ;;  %v505_v11 = vunpack.c.h.bf16 %v560_v61  ;;  %v566_v61 = vld [vmem:[%s1017_s0 + $0xe8] sm:$0xff]  }
  0x2d   :  { %377 = vst [vmem:[%s1020_s3 + $0x118] sm:$0xff] %v313_v53  ;;  %v254_v12 = vadd.f32 %v602_v3, %v186_v4  ;;  %v255_v13 = vadd.f32 %v602_v3, %v187_v5  ;;  %v190_v14 = vmul.f32 %v597_v1, %v500_v6  ;;  %v191_v15 = vmul.f32 %v597_v1, %v501_v7  ;;  %v567_v4 = vld [vmem:[%s1017_s0 + $0xf0] sm:$0xff]  }
  0x2e   :  { %378 = vst [vmem:[%s1020_s3 + $0x120] sm:$0xff] %v314_v57  ;;  %v256_v16 = vadd.f32 %v602_v3, %v188_v8  ;;  %v257_v17 = vadd.f32 %v602_v3, %v189_v9  ;;  %v192_v18 = vmul.f32 %v597_v1, %v504_v10  ;;  %v193_v19 = vmul.f32 %v597_v1, %v505_v11  ;;  %v568_v9 = vld [vmem:[%s1017_s0 + $0xf8] sm:$0xff]  }
  0x2f   :  { %379 = vst [vmem:[%s1020_s3 + $0x128] sm:$0xff] %v315_v58  ;;  %v318_v21 = vmax.f32 %v254_v12, 0.0  ;;  %v319_v22 = vmax.f32 %v255_v13, 0.0  ;;  %v258_v23 = vadd.f32 %v602_v3, %v190_v14  ;;  %v259_v24 = vadd.f32 %v602_v3, %v191_v15 }
  0x30   :  { %380 = vst [vmem:[%s1020_s3 + $0x130] sm:$0xff] %v316_v62  ;;  %v320_v26 = vmax.f32 %v256_v16, 0.0  ;;  %v321_v27 = vmax.f32 %v257_v17, 0.0  ;;  %v260_v28 = vadd.f32 %v602_v3, %v192_v18  ;;  %v261_v29 = vadd.f32 %v602_v3, %v193_v19 }
  0x31   :  { %381 = vst [vmem:[%s1020_s3 + $0x138] sm:$0xff] %v317_v63  ;;  %v322_v31 = vmax.f32 %v258_v23, 0.0  ;;  %v323_v32 = vmax.f32 %v259_v24, 0.0  ;;  %v508_v33 = vunpack.c.l.bf16 %v561_v20  ;;  %v509_v34 = vunpack.c.h.bf16 %v561_v20 }
  0x32   :  { %382 = vst [vmem:[%s1020_s3 + $0x140] sm:$0xff] %v318_v21  ;;  %v324_v36 = vmax.f32 %v260_v28, 0.0  ;;  %v325_v37 = vmax.f32 %v261_v29, 0.0  ;;  %v512_v38 = vunpack.c.l.bf16 %v562_v25  ;;  %v513_v39 = vunpack.c.h.bf16 %v562_v25 }
  0x33   :  { %383 = vst [vmem:[%s1020_s3 + $0x148] sm:$0xff] %v319_v22  ;;  %v194_v40 = vmul.f32 %v597_v1, %v508_v33  ;;  %v195_v41 = vmul.f32 %v597_v1, %v509_v34  ;;  %v516_v42 = vunpack.c.l.bf16 %v563_v30  ;;  %v517_v43 = vunpack.c.h.bf16 %v563_v30 }
  0x34   :  { %384 = vst [vmem:[%s1020_s3 + $0x150] sm:$0xff] %v320_v26  ;;  %v196_v44 = vmul.f32 %v597_v1, %v512_v38  ;;  %v197_v45 = vmul.f32 %v597_v1, %v513_v39  ;;  %v520_v46 = vunpack.c.l.bf16 %v564_v35  ;;  %v521_v47 = vunpack.c.h.bf16 %v564_v35 }
  0x35   :  { %385 = vst [vmem:[%s1020_s3 + $0x158] sm:$0xff] %v321_v27  ;;  %v262_v48 = vadd.f32 %v602_v3, %v194_v40  ;;  %v263_v49 = vadd.f32 %v602_v3, %v195_v41  ;;  %v198_v50 = vmul.f32 %v597_v1, %v516_v42  ;;  %v199_v51 = vmul.f32 %v597_v1, %v517_v43 }
  0x36   :  { %386 = vst [vmem:[%s1020_s3 + $0x160] sm:$0xff] %v322_v31  ;;  %v264_v52 = vadd.f32 %v602_v3, %v196_v44  ;;  %v265_v53 = vadd.f32 %v602_v3, %v197_v45  ;;  %v200_v54 = vmul.f32 %v597_v1, %v520_v46  ;;  %v201_v55 = vmul.f32 %v597_v1, %v521_v47 }
  0x37   :  { %387 = vst [vmem:[%s1020_s3 + $0x168] sm:$0xff] %v323_v32  ;;  %v326_v57 = vmax.f32 %v262_v48, 0.0  ;;  %v327_v58 = vmax.f32 %v263_v49, 0.0  ;;  %v266_v59 = vadd.f32 %v602_v3, %v198_v50  ;;  %v267_v60 = vadd.f32 %v602_v3, %v199_v51 }
  0x38   :  { %388 = vst [vmem:[%s1020_s3 + $0x170] sm:$0xff] %v324_v36  ;;  %v328_v62 = vmax.f32 %v264_v52, 0.0  ;;  %v329_v63 = vmax.f32 %v265_v53, 0.0  ;;  %v268_v0 = vadd.f32 %v602_v3, %v200_v54  ;;  %v269_v2 = vadd.f32 %v602_v3, %v201_v55 }
  0x39   :  { %389 = vst [vmem:[%s1020_s3 + $0x178] sm:$0xff] %v325_v37  ;;  %v330_v5 = vmax.f32 %v266_v59, 0.0  ;;  %v331_v6 = vmax.f32 %v267_v60, 0.0  ;;  %v524_v7 = vunpack.c.l.bf16 %v565_v56  ;;  %v525_v8 = vunpack.c.h.bf16 %v565_v56 }
  0x3a   :  { %390 = vst [vmem:[%s1020_s3 + $0x180] sm:$0xff] %v326_v57  ;;  %v332_v10 = vmax.f32 %v268_v0, 0.0  ;;  %v333_v11 = vmax.f32 %v269_v2, 0.0  ;;  %v528_v12 = vunpack.c.l.bf16 %v566_v61  ;;  %v529_v13 = vunpack.c.h.bf16 %v566_v61 }
  0x3b   :  { %391 = vst [vmem:[%s1020_s3 + $0x188] sm:$0xff] %v327_v58  ;;  %v202_v14 = vmul.f32 %v597_v1, %v524_v7  ;;  %v203_v15 = vmul.f32 %v597_v1, %v525_v8  ;;  %v532_v16 = vunpack.c.l.bf16 %v567_v4  ;;  %v533_v17 = vunpack.c.h.bf16 %v567_v4 }
  0x3c   :  { %392 = vst [vmem:[%s1020_s3 + $0x190] sm:$0xff] %v328_v62  ;;  %v204_v18 = vmul.f32 %v597_v1, %v528_v12  ;;  %v205_v19 = vmul.f32 %v597_v1, %v529_v13  ;;  %v536_v20 = vunpack.c.l.bf16 %v568_v9  ;;  %v537_v21 = vunpack.c.h.bf16 %v568_v9 }
  0x3d   :  { %393 = vst [vmem:[%s1020_s3 + $0x198] sm:$0xff] %v329_v63  ;;  %v270_v22 = vadd.f32 %v602_v3, %v202_v14  ;;  %v271_v23 = vadd.f32 %v602_v3, %v203_v15  ;;  %v206_v24 = vmul.f32 %v597_v1, %v532_v16  ;;  %v207_v25 = vmul.f32 %v597_v1, %v533_v17 }
  0x3e   :  { %394 = vst [vmem:[%s1020_s3 + $0x1a0] sm:$0xff] %v330_v5  ;;  %v272_v26 = vadd.f32 %v602_v3, %v204_v18  ;;  %v273_v27 = vadd.f32 %v602_v3, %v205_v19  ;;  %v208_v28 = vmul.f32 %v597_v1, %v536_v20  ;;  %v209_v29 = vmul.f32 %v597_v1, %v537_v21 }
  0x3f   :  { %395 = vst [vmem:[%s1020_s3 + $0x1a8] sm:$0xff] %v331_v6  ;;  %v334_v30 = vmax.f32 %v270_v22, 0.0  ;;  %v335_v31 = vmax.f32 %v271_v23, 0.0  ;;  %v274_v32 = vadd.f32 %v602_v3, %v206_v24  ;;  %v275_v33 = vadd.f32 %v602_v3, %v207_v25 }
  0x40   :  { %396 = vst [vmem:[%s1020_s3 + $0x1b0] sm:$0xff] %v332_v10  ;;  %v336_v34 = vmax.f32 %v272_v26, 0.0  ;;  %v337_v35 = vmax.f32 %v273_v27, 0.0  ;;  %v276_v36 = vadd.f32 %v602_v3, %v208_v28  ;;  %v277_v1 = vadd.f32 %v602_v3, %v209_v29 }
  0x41   :  { %397 = vst [vmem:[%s1020_s3 + $0x1b8] sm:$0xff] %v333_v11  ;;  %v338_v37 = vmax.f32 %v274_v32, 0.0  ;;  %v339_v38 = vmax.f32 %v275_v33, 0.0 }
  0x42   :  { %398 = vst [vmem:[%s1020_s3 + $0x1c0] sm:$0xff] %v334_v30  ;;  %v340_v39 = vmax.f32 %v276_v36, 0.0  ;;  %v341_v3 = vmax.f32 %v277_v1, 0.0 }
  0x43   :  { %399 = vst [vmem:[%s1020_s3 + $0x1c8] sm:$0xff] %v335_v31 }
  0x44   :  { %400 = vst [vmem:[%s1020_s3 + $0x1d0] sm:$0xff] %v336_v34 }
  0x45   :  { %401 = vst [vmem:[%s1020_s3 + $0x1d8] sm:$0xff] %v337_v35 }
  0x46   :  { %402 = vst [vmem:[%s1020_s3 + $0x1e0] sm:$0xff] %v338_v37 }
  0x47   :  { %403 = vst [vmem:[%s1020_s3 + $0x1e8] sm:$0xff] %v339_v38 }
  0x48   :  { %404 = vst [vmem:[%s1020_s3 + $0x1f0] sm:$0xff] %v340_v39 }
  0x49   :  { %405 = vst [vmem:[%s1020_s3 + $0x1f8] sm:$0xff] %v341_v3 }

// kernel: conv2d_block_forward.2
= control target key start
LH: loop header
LB: loop body
LE: loop exit
PB: predicated region body
PF: predicated region fallthrough
CT: control target
= control target key end

     0   :  { %s4148_s15 = smov 0   ;;  %s4150_s16 = smov 0   ;;  %s6218_s0 = inlined_call_operand.vmem [shape: bf16[2,18,18,4], index: 0, kind: input, shape index: {}]   ;;  %s6219_s1 = inlined_call_operand.vmem [shape: bf16[36,128], index: 1, kind: input, shape index: {}]   ;;  %s6220_s2 = inlined_call_operand.vmem [shape: f32[1,128], index: 2, kind: input, shape index: {}]   ;;  %s6221_s3 = inlined_call_operand.vmem [shape: bf16[2,256,128], index: 3, kind: output, shape index: {0}]   ;;  %s6222_s4 = inlined_call_operand.vmem [shape: f32[2,2,128], index: 4, kind: output, shape index: {1}]  }
   0x1   :  { %s4152_s17 = smov 0  }
   0x2 LB: > { %s27_s18 = sadd.s32 1, %s4109_s16  ;;  %p3676_p0 = scmp.ge.s32.totalorder %s4113_s17, 1  ;;  %s4113_s17 = sphi %s4152_s17, %s15_s17   ;;  %s4109_s16 = sphi %s4150_s16, %s6266_s16   ;;  %s4105_s15 = sphi %s4148_s15, %s6265_s15  }
   0x3   : > { %p29_p1 = scmp.ge.s32.totalorder %s27_s18, 2  ;;  %p181_p2 = scmp.lt.s32.totalorder %s4113_s17, 3 }
   0x5   : > { %s6268_s18 = smov (%p29_p1, %s27_s18), 0  ;;  %p182_p3 = pnand %p3676_p0, %p181_p2 }
   0x7   : > { %185 = sbr.rel (%p182_p3) target bundleno = 991 (0x3df), region = 32 }
   0xc   : > { %p216_p4 = scmp.lt.s32.totalorder %s4105_s15, 1  ;;  %vm323_vm0 = vsmask.f32 3328  ;;  %vm324_vm1 = vsmask.f32 7440  ;;  %s4115_s23 = smov 4  }
   0xd   : > { %vm4208_vm2 = vmor %vm323_vm0, %vm324_vm1  ;;  %vm887_vm3 = vcmask 1042432   ;;  %vm888_vm4 = vcmask 1046532   ;;  %vm290_vm5 = vcmask 27648   ;;  %s4116_s24 = smov 8   ;;  %vm806_vm7 = vcmask 60448   ;;  %s4117_s25 = smov 12  }
   0xe   : > { %s6270_s15 = smov (!%p216_p4, %s4105_s15), 1  ;;  %vm4526_vm6 = vmor %vm887_vm3, %vm888_vm4  ;;  %vm1098_vm8 = vcmask 93248   ;;  %s4118_s26 = smov 16   ;;  %vm1311_vm9 = vcmask 126048   ;;  %vm1824_vm10 = vcmask 158848   ;;  %vm2081_vm11 = vcmask 191648  }
   0xf   : > { %s4038_s19 = smul.u32 216, %s6270_s15  ;;  %s4119_s27 = smov 20   ;;  %vm3282_vm12 = vcmask 1041408   ;;  %vm2294_vm13 = vcmask 224448   ;;  %vm2807_vm14 = vcmask 257248   ;;  %vm3064_vm15 = vcmask 290048  }
  0x10   : > { %s4120_s28 = smov 24   ;;  %s4121_s29 = smov 28   ;;  %vm3233_vm0 = vcmask 293888  }
  0x11   : > { %s4172_s22 = scalar_lea.vmem %s6218_s0, %s4038_s19  ;;  %s4122_s30 = smov 32  }
  0x12   : > { %v4175_v0 = vld [vmem:[%s4172_s22 + $0xc] sm:$0xf]  ;;  %v4178_v1 = vld [vmem:[%s4172_s22 + $0x10] sm:$0xf]  ;;  %v4181_v2 = vld [vmem:[%s4172_s22] sm:$0xf] }
  0x13   : > { %v351_v3 = vshrl.u32 %v4175_v0, 16  ;;  %v354_v4 = vshll.u32 %v4175_v0, 16  ;;  %v360_v5 = vshll.u32 %v4178_v1, 16  ;;  %v4187_v6 = vld [vmem:[%s4172_s22 + $0x4] sm:$0xf]  ;;  %v327_v7 = vshrl.u32 %v4181_v2, 16 }
  0x14   : > { %v330_v8 = vshll.u32 %v4181_v2, 16  ;;  %v336_v9 = vshll.u32 %v4187_v6, 16  ;;  %v4193_v10 = vld [vmem:[%s4172_s22 + $0x14] sm:$0x1]  ;;  %v364_v11 = vshrl.u32 %v4178_v1, 16  ;;  %v340_v12 = vshrl.u32 %v4187_v6, 16 }
  0x15   : > { %v353_v13 = vrot.slane %v351_v3, 4  ;;  %v356_v14 = vrot.slane %v354_v4, 5  ;;  %v362_v15 = vrot.slane %v360_v5, 5  ;;  %v329_v16 = vrot.slane %v327_v7, 4  ;;  %v4198_v17 = vld [vmem:[%s4172_s22 + $0x8] sm:$0x1] }
  0x16   : > { %v332_v18 = vrot.slane %v330_v8, 5  ;;  %v338_v19 = vrot.slane %v336_v9, 5  ;;  %v366_v20 = vrot.slane %v364_v11, 4  ;;  %v370_v21 = vshll.u32 %v4193_v10, 16  ;;  %v4202_v22 = vld [vmem:[%s4172_s22 + $0x28] sm:$0xf] }
  0x17   : > { %v357_v23 = vor.u32 %v356_v14, %v353_v13  ;;  %v342_v24 = vrot.slane %v340_v12, 4  ;;  %v346_v25 = vshll.u32 %v4198_v17, 16  ;;  %v408_v26 = vshll.u32 %v4202_v22, 16  ;;  %v4214_v31 = vld [vmem:[%s4172_s22 + $0x24] sm:$0xf]  ;;  %s3915_s13 = sshll.u32 %s6270_s15, 7 }
  0x18   : > { %v333_v28 = vor.u32 %v332_v18, %v329_v16  ;;  %v367_v29 = vor.u32 %v366_v20, %v362_v15  ;;  %v412_v30 = vshrl.u32 %v4202_v22, 16  ;;  %v372_v35 = vrot.slane %v370_v21, 5  ;;  %v4217_v37 = vld [vmem:[%s4172_s22 + $0x18] sm:$0xf]  ;;  %v4226_v42 = vld [vmem:[%s4172_s22 + $0x1c] sm:$0xf]  ;;  %s6064_s20 = scalar_lea.vmem %s6221_s3, %s3915_s13 }
  0x19   : > { %v358_v32 = vrot.slane %v357_v23, 4  ;;  %v343_v33 = vor.u32 %v342_v24, %v338_v19  ;;  %v348_v36 = vrot.slane %v346_v25, 5  ;;  %v4221_v39 = vrot.slane %v408_v26, 5  ;;  %v4232_v46 = vld [vmem:[%s4172_s22 + $0x2c] sm:$0x1]  ;;  %s3680_s21 = sshll.u32 %s6270_s15, 1 }
  0x1a   : > { %v334_v34 = vrot.slane %v333_v28, 4  ;;  %v399_v40 = vshrl.u32 %v4214_v31, 16  ;;  %v402_v41 = vshll.u32 %v4214_v31, 16  ;;  %v368_v44 = vrot.slane %v367_v29, 4  ;;  %v4239_v53 = vld [vmem:[%s4172_s22 + $0x3c] sm:$0xf] }
  0x1b   : > { %v363_v38 = vsel %vm4208_vm2, %v358_v32, %v362_v15  ;;  %v344_v45 = vrot.slane %v343_v33, 4  ;;  %v414_v47 = vrot.slane %v412_v30, 4  ;;  %v375_v50 = vshrl.u32 %v4217_v37, 16  ;;  %v4243_v56 = vld [vmem:[%s4172_s22 + $0x34] sm:$0xf] }
  0x1c   : > { %714 = vrot.lane.b32.xlu1 %v363_v38, %s4115_s23  ;;  %v339_v43 = vsel %vm4208_vm2, %v334_v34, %v338_v19  ;;  %v401_v48 = vrot.slane %v399_v40, 4  ;;  %v404_v49 = vrot.slane %v402_v41, 5  ;;  %v378_v51 = vshll.u32 %v4217_v37, 16  ;;  %v4253_v4 = vld [vmem:[%s4172_s22 + $0x20] sm:$0x1] }
  0x1d   : > { %710 = vrot.lane.b32.xlu0 %v339_v43, %s4115_s23  ;;  %v384_v52 = vshll.u32 %v4226_v42, 16  ;;  %v418_v54 = vshll.u32 %v4232_v46, 16  ;;  %v377_v55 = vrot.slane %v375_v50, 4  ;;  %v373_v57 = vsel %vm4208_vm2, %v368_v44, %v372_v35  ;;  %v4261_v16 = vld [vmem:[%s4172_s22 + $0x4c] sm:$0xf] }
  0x1e   : > { %v349_v58 = vsel %vm4208_vm2, %v344_v45, %v348_v36  ;;  %v415_v59 = vor.u32 %v414_v47, %v4221_v39  ;;  %v380_v60 = vrot.slane %v378_v51, 5  ;;  %v405_v61 = vor.u32 %v404_v49, %v401_v48  ;;  %v4265_v19 = vld [vmem:[%s4172_s22 + $0x40] sm:$0xf]  ;;  %v4270_v24 = vld [vmem:[%s4172_s22 + $0x38] sm:$0x1] }
  0x1f   : > { %v386_v62 = vrot.slane %v384_v52, 5  ;;  %v447_v63 = vshrl.u32 %v4239_v53, 16  ;;  %v450_v3 = vshll.u32 %v4239_v53, 16  ;;  %v432_v7 = vshll.u32 %v4243_v56, 16  ;;  %v4275_v29 = vld [vmem:[%s4172_s22 + $0x30] sm:$0xf] }
  0x20   : > { %v381_v5 = vor.u32 %v380_v60, %v377_v55  ;;  %v436_v8 = vshrl.u32 %v4243_v56, 16  ;;  %v388_v9 = vshrl.u32 %v4226_v42, 16  ;;  %v420_v11 = vrot.slane %v418_v54, 5  ;;  %v4281_v33 = vld [vmem:[%s4172_s22 + $0x48] sm:$0xf] }
  0x21   : > { %v416_v12 = vrot.slane %v415_v59, 4  ;;  %v394_v15 = vshll.u32 %v4253_v4, 16  ;;  %v406_v18 = vrot.slane %v405_v61, 4  ;;  %v449_v20 = vrot.slane %v447_v63, 4  ;;  %295 = vst.msk [vmem:[#allocation2 + $0x10] sm:$0xf] %vm290_vm5, %v4217_v37 }
  0x22   : > { %v382_v13 = vrot.slane %v381_v5, 4  ;;  %v390_v14 = vrot.slane %v388_v9, 4  ;;  %v452_v21 = vrot.slane %v450_v3, 5  ;;  %v4272_v25 = vrot.slane %v432_v7, 5  ;;  %v4305_v3 = vld [vmem:[%s4172_s22 + $0x60] sm:$0xf] }
  0x23   : > { %v438_v26 = vrot.slane %v436_v8, 4  ;;  %v480_v30 = vshll.u32 %v4261_v16, 16  ;;  %v484_v32 = vshrl.u32 %v4261_v16, 16  ;;  %v421_v34 = vsel %vm4208_vm2, %v416_v12, %v420_v11  ;;  %v4311_v8 = vld [vmem:[%s4172_s22 + $0x58] sm:$0xf] }
  0x24   : > { %716 = vrot.lane.b32.xlu1 %v373_v57, %s4115_s23  ;;  %v387_v23 = vsel %vm4208_vm2, %v382_v13, %v386_v62  ;;  %v391_v28 = vor.u32 %v390_v14, %v386_v62  ;;  %v456_v35 = vshll.u32 %v4265_v19, 16  ;;  %v396_v38 = vrot.slane %v394_v15, 5  ;;  %v4301_v57 = vld [vmem:[%s4172_s22 + $0x50] sm:$0x1]  ;;  %v4315_v12 = vld [vmem:[%s4172_s22 + $0x44] sm:$0x1] }
  0x25   : > { %712 = vrot.lane.b32.xlu0 %v349_v58, %s4115_s23  ;;  %718 = vrot.lane.b32.xlu2 %v387_v23, %s4115_s23  ;;  %v453_v40 = vor.u32 %v452_v21, %v449_v20  ;;  %v442_v41 = vshll.u32 %v4270_v24, 16  ;;  %v423_v43 = vshrl.u32 %v4275_v29, 16  ;;  %v426_v44 = vshll.u32 %v4275_v29, 16  ;;  %6239 = vst [vmem:[#allocation3_spill] sm:$0xff] %v4301_v57  ;;  %v4322_v20 = vld [vmem:[%s4172_s22 + $0x54] sm:$0xf] }
  0x26   : > { %v392_v36 = vrot.slane %v391_v28, 4  ;;  %v411_v45 = vsel %vm4208_vm2, %v406_v18, %v4221_v39  ;;  %v439_v47 = vor.u32 %v438_v26, %v4272_v25  ;;  %v471_v48 = vshrl.u32 %v4281_v33, 16  ;;  %291 = vst.msk [vmem:[#allocation2] sm:$0xf] %vm290_vm5, %v4181_v2 }
  0x27   : > { %v474_v49 = vshll.u32 %v4281_v33, 16  ;;  %v4295_v50 = vrot.slane %v480_v30, 5  ;;  %v486_v51 = vrot.slane %v484_v32, 4  ;;  %v425_v52 = vrot.slane %v423_v43, 4  ;;  %292 = vst.msk [vmem:[#allocation2 + $0x4] sm:$0xf] %vm290_vm5, %v4187_v6 }
  0x28   : > { %v428_v54 = vrot.slane %v426_v44, 5  ;;  %v397_v55 = vsel %vm4208_vm2, %v392_v36, %v396_v38  ;;  %v454_v39 = vrot.slane %v453_v40, 4  ;;  %v458_v58 = vrot.slane %v456_v35, 5  ;;  %v4333_v35 = vld [vmem:[%s4172_s22 + $0x64] sm:$0xf] }
  0x29   : > { %v440_v60 = vrot.slane %v439_v47, 4  ;;  %v444_v61 = vrot.slane %v442_v41, 5  ;;  %v473_v62 = vrot.slane %v471_v48, 4  ;;  %v476_v63 = vrot.slane %v474_v49, 5  ;;  %v4339_v44 = vld [vmem:[%s4172_s22 + $0x5c] sm:$0x1] }
  0x2a   : > { %v429_v59 = vor.u32 %v428_v54, %v425_v52  ;;  %v487_v5 = vor.u32 %v486_v51, %v4295_v50  ;;  %v490_v7 = vshll.u32 %v4301_v57, 16  ;;  %v460_v9 = vshrl.u32 %v4265_v19, 16  ;;  %6240 = vst [vmem:[#allocation4_spill] sm:$0xff] %v4339_v44  ;;  %v4345_v49 = vld [vmem:[%s4172_s22 + $0x70] sm:$0xf] }
  0x2b   : > { %v459_v13 = vsel %vm4208_vm2, %v454_v39, %v458_v58  ;;  %v519_v14 = vshrl.u32 %v4305_v3, 16  ;;  %v522_v15 = vshll.u32 %v4305_v3, 16  ;;  %v445_v21 = vsel %vm4208_vm2, %v440_v60, %v444_v61  ;;  %v4352_v54 = vld [vmem:[%s4172_s22 + $0x6c] sm:$0xf]  ;;  %v4498_v57 = vld [vmem:[%s4172_s22 + $0xbc] sm:$0x1] }
  0x2c   : > { %724 = vrot.lane.b32.xlu1 %v421_v34, %s4115_s23  ;;  %v430_v11 = vrot.slane %v429_v59, 4  ;;  %v462_v18 = vrot.slane %v460_v9, 4  ;;  %v477_v23 = vor.u32 %v476_v63, %v473_v62  ;;  %v504_v26 = vshll.u32 %v4311_v8, 16  ;;  %293 = vst.msk [vmem:[#allocation2 + $0x8] sm:$0xf] %vm290_vm5, %v4175_v0 }
  0x2d   : > { %722 = vrot.lane.b32.xlu0 %v411_v45, %s4115_s23  ;;  %720 = vrot.lane.b32.xlu2 %v397_v55, %s4115_s23  ;;  %v508_v28 = vshrl.u32 %v4311_v8, 16  ;;  %v488_v30 = vrot.slane %v487_v5, 4  ;;  %v492_v32 = vrot.slane %v490_v7, 5  ;;  %v466_v38 = vshll.u32 %v4315_v12, 16  ;;  %294 = vst.msk [vmem:[#allocation2 + $0xc] sm:$0xf] %vm290_vm5, %v4178_v1 }
  0x2e   : > { %v435_v34 = vsel %vm4208_vm2, %v430_v11, %v4272_v25  ;;  %v463_v36 = vor.u32 %v462_v18, %v458_v58  ;;  %v495_v40 = vshrl.u32 %v4322_v20, 16  ;;  %v521_v41 = vrot.slane %v519_v14, 4  ;;  %296 = vst.msk [vmem:[#allocation2 + $0x14] sm:$0xf] %vm290_vm5, %v4226_v42 }
  0x2f   : > { %v524_v43 = vrot.slane %v522_v15, 5  ;;  %v498_v45 = vshll.u32 %v4322_v20, 16  ;;  %v478_v47 = vrot.slane %v477_v23, 4  ;;  %v4342_v48 = vrot.slane %v504_v26, 5  ;;  %297 = vst.msk [vmem:[#allocation2 + $0x18] sm:$0xf] %vm290_vm5, %v4214_v31 }
  0x30   : > { %v510_v25 = vrot.slane %v508_v28, 4  ;;  %v493_v51 = vsel %vm4208_vm2, %v488_v30, %v492_v32  ;;  %v528_v52 = vshll.u32 %v4333_v35, 16  ;;  %v464_v55 = vrot.slane %v463_v36, 4  ;;  %v4372_v36 = vld [vmem:[%s4172_s22 + $0x84] sm:$0xf] }
  0x31   : > { %v468_v39 = vrot.slane %v466_v38, 5  ;;  %v497_v58 = vrot.slane %v495_v40, 4  ;;  %v500_v59 = vrot.slane %v498_v45, 5  ;;  %v525_v60 = vor.u32 %v524_v43, %v521_v41  ;;  %v4376_v38 = vld [vmem:[%s4172_s22 + $0x7c] sm:$0xf] }
  0x32   : > { %v514_v61 = vshll.u32 %v4339_v44, 16  ;;  %v552_v62 = vshll.u32 %v4345_v49, 16  ;;  %v556_v63 = vshrl.u32 %v4345_v49, 16  ;;  %v483_v5 = vsel %vm4208_vm2, %v478_v47, %v4295_v50  ;;  %v4380_v43 = vld [vmem:[%s4172_s22 + $0x68] sm:$0x1] }
  0x33   : > { %v511_v7 = vor.u32 %v510_v25, %v4342_v48  ;;  %v543_v9 = vshrl.u32 %v4352_v54, 16  ;;  %v546_v11 = vshll.u32 %v4352_v54, 16  ;;  %v501_v14 = vor.u32 %v500_v59, %v497_v58  ;;  %6242 = vst [vmem:[#allocation6_spill] sm:$0xff] %v4380_v43  ;;  %v4475_v44 = vld [vmem:[%s4172_s22 + $0xb8] sm:$0xf] }
  0x34   : > { %730 = vrot.lane.b32.xlu1 %v459_v13, %s4115_s23  ;;  %v469_v13 = vsel %vm4208_vm2, %v464_v55, %v468_v39  ;;  %v532_v15 = vshrl.u32 %v4333_v35, 16  ;;  %v526_v50 = vrot.slane %v525_v60, 4  ;;  %v530_v18 = vrot.slane %v528_v52, 5  ;;  %v4387_v55 = vld [vmem:[%s4172_s22 + $0x78] sm:$0xf]  ;;  %6247 = vst [vmem:[#allocation11_spill] sm:$0xff] %v4475_v44 }
  0x35   : > { %728 = vrot.lane.b32.xlu0 %v445_v21, %s4115_s23  ;;  %726 = vrot.lane.b32.xlu2 %v435_v34, %s4115_s23  ;;  %v4369_v21 = vld [vmem:[%s4172_s22 + $0x74] sm:$0x1]  ;;  %v554_v23 = vrot.slane %v552_v62, 5  ;;  %v558_v26 = vrot.slane %v556_v63, 4  ;;  %v512_v28 = vrot.slane %v511_v7, 4  ;;  %v516_v30 = vrot.slane %v514_v61, 5 }
  0x36   : > { %6241 = vst [vmem:[#allocation5_spill] sm:$0xff] %v4369_v21  ;;  %v545_v32 = vrot.slane %v543_v9, 4  ;;  %v548_v34 = vrot.slane %v546_v11, 5  ;;  %v562_v40 = vshll.u32 %v4369_v21, 16  ;;  %v502_v41 = vrot.slane %v501_v14, 4 }
  0x37   : > { %v534_v45 = vrot.slane %v532_v15, 4  ;;  %v531_v47 = vsel %vm4208_vm2, %v526_v50, %v530_v18  ;;  %v559_v25 = vor.u32 %v558_v26, %v554_v23  ;;  %v594_v52 = vshll.u32 %v4372_v36, 16  ;;  %v4405_v14 = vld [vmem:[%s4172_s22 + $0x88] sm:$0xf]  ;;  %298 = vst.msk [vmem:[#allocation2 + $0x1c] sm:$0xf] %vm290_vm5, %v4202_v22 }
  0x38   : > { %v517_v39 = vsel %vm4208_vm2, %v512_v28, %v516_v30  ;;  %v549_v58 = vor.u32 %v548_v34, %v545_v32  ;;  %v576_v59 = vshll.u32 %v4376_v38, 16  ;;  %v580_v60 = vshrl.u32 %v4376_v38, 16  ;;  %v4408_v28 = vld [vmem:[%s4172_s22 + $0x80] sm:$0x1]  ;;  %v4416_v34 = vld [vmem:[%s4172_s22 + $0x90] sm:$0xf] }
  0x39   : > { %v538_v61 = vshll.u32 %v4380_v43, 16  ;;  %v507_v62 = vsel %vm4208_vm2, %v502_v41, %v4342_v48  ;;  %v535_v63 = vor.u32 %v534_v45, %v530_v18  ;;  %v567_v7 = vshrl.u32 %v4387_v55, 16  ;;  %6243 = vst [vmem:[#allocation7_spill] sm:$0xff] %v4408_v28 }
  0x3a   : > { %v570_v9 = vshll.u32 %v4387_v55, 16  ;;  %v560_v11 = vrot.slane %v559_v25, 4  ;;  %v596_v50 = vrot.slane %v594_v52, 5  ;;  %v550_v26 = vrot.slane %v549_v58, 4  ;;  %299 = vst.msk [vmem:[#allocation2 + $0x20] sm:$0xf] %vm290_vm5, %v4275_v29 }
  0x3b   : > { %v4410_v48 = vrot.slane %v576_v59, 5  ;;  %v582_v18 = vrot.slane %v580_v60, 4  ;;  %v536_v41 = vrot.slane %v535_v63, 4  ;;  %v569_v45 = vrot.slane %v567_v7, 4  ;;  %300 = vst.msk [vmem:[#allocation2 + $0x24] sm:$0xf] %vm290_vm5, %v4243_v56 }
  0x3c   : > { %736 = vrot.lane.b32.xlu1 %v493_v51, %s4115_s23  ;;  %v591_v51 = vshrl.u32 %v4372_v36, 16  ;;  %v600_v52 = vshll.u32 %v4405_v14, 16  ;;  %v555_v58 = vsel %vm4208_vm2, %v550_v26, %v554_v23  ;;  %v615_v60 = vshrl.u32 %v4416_v34, 16  ;;  %301 = vst.msk [vmem:[#allocation2 + $0x28] sm:$0xf] %vm290_vm5, %v4239_v53 }
  0x3d   : > { %734 = vrot.lane.b32.xlu0 %v483_v5, %s4115_s23  ;;  %732 = vrot.lane.b32.xlu2 %v469_v13, %s4115_s23  ;;  %v4399_v5 = vld [vmem:[%s4172_s22 + $0x94] sm:$0xf]  ;;  %v564_v13 = vrot.slane %v562_v40, 5  ;;  %v540_v40 = vrot.slane %v538_v61, 5  ;;  %v583_v59 = vor.u32 %v582_v18, %v4410_v48  ;;  %v618_v61 = vshll.u32 %v4416_v34, 16 }
  0x3e   : > { %v593_v15 = vrot.slane %v591_v51, 4  ;;  %v624_v30 = vshll.u32 %v4399_v5, 16  ;;  %v628_v32 = vshrl.u32 %v4399_v5, 16  ;;  %v617_v18 = vrot.slane %v615_v60, 4  ;;  %302 = vst.msk [vmem:[#allocation2 + $0x2c] sm:$0xf] %vm290_vm5, %v4265_v19 }
  0x3f   : > { %v565_v25 = vsel %vm4208_vm2, %v560_v11, %v564_v13  ;;  %v541_v7 = vsel %vm4208_vm2, %v536_v41, %v540_v40  ;;  %v604_v11 = vshrl.u32 %v4405_v14, 16  ;;  %303 = vst.msk [vmem:[#allocation2 + $0x30] sm:$0xf] %vm290_vm5, %v4281_v33 }
  0x40   : > { %v597_v51 = vor.u32 %v596_v50, %v593_v15  ;;  %v630_v63 = vrot.slane %v628_v32, 4  ;;  %v602_v15 = vrot.slane %v600_v52, 5  ;;  %v584_v50 = vrot.slane %v583_v59, 4  ;;  %v4438_v32 = vld [vmem:[%s4172_s22 + $0xa8] sm:$0xf] }
  0x41   : > { %v4454_v59 = vld [vmem:[%s4172_s22 + $0x9c] sm:$0xf]  ;;  %304 = vst.msk [vmem:[#allocation2 + $0x34] sm:$0xf] %vm290_vm5, %v4261_v16 }
  0x42   : > { %v598_v13 = vrot.slane %v597_v51, 4  ;;  %v606_v51 = vrot.slane %v604_v11, 4  ;;  %305 = vst.msk [vmem:[#allocation2 + $0x38] sm:$0xf] %vm290_vm5, %v4322_v20 }
  0x43   : > { %306 = vst.msk [vmem:[#allocation2 + $0x3c] sm:$0xf] %vm290_vm5, %v4311_v8 }
  0x44   : > { %742 = vrot.lane.b32.xlu1 %v531_v47, %s4115_s23  ;;  %v572_v47 = vrot.slane %v570_v9, 5  ;;  %v4433_v9 = vld [vmem:[%s4172_s22 + $0x98] sm:$0x1]  ;;  %v603_v52 = vsel %vm4208_vm2, %v598_v13, %v602_v15  ;;  %307 = vst.msk [vmem:[#allocation2 + $0x40] sm:$0xf] %vm290_vm5, %v4305_v3 }
  0x45   : > { %740 = vrot.lane.b32.xlu0 %v517_v39, %s4115_s23  ;;  %738 = vrot.lane.b32.xlu2 %v507_v62, %s4115_s23  ;;  %v586_v39 = vshll.u32 %v4408_v28, 16  ;;  %v4427_v62 = vrot.slane %v624_v30, 5  ;;  %6244 = vst [vmem:[#allocation8_spill] sm:$0xff] %v4433_v9  ;;  %v620_v30 = vrot.slane %v618_v61, 5  ;;  %v634_v40 = vshll.u32 %v4433_v9, 16 }
  0x46   : > { %v573_v23 = vor.u32 %v572_v47, %v569_v45  ;;  %v4444_v45 = vld [vmem:[%s4172_s22 + $0xa0] sm:$0xf]  ;;  %v4466_v28 = vld [vmem:[%s4172_s22 + $0xac] sm:$0xf]  ;;  %308 = vst.msk [vmem:[#allocation2 + $0x44] sm:$0xf] %vm290_vm5, %v4333_v35 }
  0x47   : > { %v588_v26 = vrot.slane %v586_v39, 5  ;;  %v631_v41 = vor.u32 %v630_v63, %v4427_v62  ;;  %v663_v39 = vshrl.u32 %v4438_v32, 16  ;;  %v621_v61 = vor.u32 %v620_v30, %v617_v18  ;;  %309 = vst.msk [vmem:[#allocation2 + $0x48] sm:$0xf] %vm290_vm5, %v4352_v54 }
  0x48   : > { %v574_v47 = vrot.slane %v573_v23, 4  ;;  %v648_v63 = vshll.u32 %v4444_v45, 16  ;;  %v636_v11 = vrot.slane %v634_v40, 5  ;;  %v642_v18 = vshll.u32 %v4454_v59, 16  ;;  %v4472_v40 = vld [vmem:[%s4172_s22 + $0xa4] sm:$0x1] }
  0x49   : > { %v589_v60 = vsel %vm4208_vm2, %v584_v50, %v588_v26  ;;  %v632_v23 = vrot.slane %v631_v41, 4  ;;  %v607_v50 = vor.u32 %v606_v51, %v602_v15  ;;  %v639_v26 = vshrl.u32 %v4454_v59, 16  ;;  %6246 = vst [vmem:[#allocation10_spill] sm:$0xff] %v4472_v40 }
  0x4a   : > { %v579_v9 = vsel %vm4208_vm2, %v574_v47, %v4410_v48  ;;  %v665_v30 = vrot.slane %v663_v39, 4  ;;  %v672_v15 = vshll.u32 %v4466_v28, 16  ;;  %v4482_v47 = vld [vmem:[%s4172_s22 + $0xb4] sm:$0xf]  ;;  %310 = vst.msk [vmem:[#allocation2 + $0x4c] sm:$0xf] %vm290_vm5, %v4345_v49 }
  0x4b   : > { %v637_v48 = vsel %vm4208_vm2, %v632_v23, %v636_v11  ;;  %6248 = vst [vmem:[#allocation12_spill] sm:$0xff] %v4482_v47  ;;  %v608_v51 = vrot.slane %v607_v50, 4  ;;  %v641_v39 = vrot.slane %v639_v26, 4  ;;  %v687_v11 = vshrl.u32 %v4482_v47, 16 }
  0x4c   : > { %748 = vrot.lane.b32.xlu1 %v565_v25, %s4115_s23  ;;  %v4447_v25 = vld [vmem:[%s4172_s22 + $0x8c] sm:$0x1]  ;;  %v690_v50 = vshll.u32 %v4482_v47, 16  ;;  %311 = vst.msk [vmem:[#allocation2 + $0x50] sm:$0xf] %vm290_vm5, %v4387_v55 }
  0x4d   : > { %746 = vrot.lane.b32.xlu0 %v555_v58, %s4115_s23  ;;  %744 = vrot.lane.b32.xlu2 %v541_v7, %s4115_s23  ;;  %6245 = vst [vmem:[#allocation9_spill] sm:$0xff] %v4447_v25  ;;  %v666_v58 = vshll.u32 %v4438_v32, 16  ;;  %v652_v7 = vshrl.u32 %v4444_v45, 16  ;;  %v610_v13 = vshll.u32 %v4447_v25, 16  ;;  %v622_v25 = vrot.slane %v621_v61, 4 }
  0x4e   : > { %v658_v61 = vshll.u32 %v4472_v40, 16  ;;  %v692_v47 = vrot.slane %v690_v50, 5  ;;  %312 = vst.msk [vmem:[#allocation2 + $0x54] sm:$0xf] %vm290_vm5, %v4376_v38 }
  0x4f   : > { %v668_v41 = vrot.slane %v666_v58, 5  ;;  %v654_v21 = vrot.slane %v652_v7, 4  ;;  %v644_v58 = vrot.slane %v642_v18, 5  ;;  %v700_v7 = vshrl.u32 %v4475_v44, 16  ;;  %313 = vst.msk [vmem:[#allocation2 + $0x58] sm:$0xf] %vm290_vm5, %v4372_v36 }
  0x50   : > { %v676_v18 = vshrl.u32 %v4466_v28, 16  ;;  %314 = vst.msk [vmem:[#allocation2 + $0x5c] sm:$0xf] %vm290_vm5, %v4405_v14 }
  0x51   : > { %v669_v43 = vor.u32 %v668_v41, %v665_v30  ;;  %v645_v26 = vor.u32 %v644_v58, %v641_v39  ;;  %v674_v41 = vrot.slane %v672_v15, 5  ;;  %v706_v58 = vshll.u32 %v4498_v57, 16  ;;  %315 = vst.msk [vmem:[#allocation2 + $0x60] sm:$0xf] %vm290_vm5, %v4416_v34 }
  0x52   : > { %316 = vst.msk [vmem:[#allocation2 + $0x64] sm:$0xf] %vm290_vm5, %v4399_v5 }
  0x53   : > { %v670_v30 = vrot.slane %v669_v43, 4  ;;  %v4505_v43 = vld [vmem:[%s4172_s22 + $0xb0] sm:$0x1]  ;;  %317 = vst.msk [vmem:[#allocation2 + $0x68] sm:$0xf] %vm290_vm5, %v4454_v59 }
  0x54   : > { %754 = vrot.lane.b32.xlu1 %v603_v52, %s4115_s23  ;;  %v650_v52 = vrot.slane %v648_v63, 5  ;;  %v696_v63 = vshll.u32 %v4475_v44, 16  ;;  %v689_v44 = vrot.slane %v687_v11, 4  ;;  %v708_v11 = vrot.slane %v706_v58, 5  ;;  %318 = vst.msk [vmem:[#allocation2 + $0x6c] sm:$0xf] %vm290_vm5, %v4444_v45 }
  0x55   : > { %752 = vrot.lane.b32.xlu0 %v589_v60, %s4115_s23  ;;  %750 = vrot.lane.b32.xlu2 %v579_v9, %s4115_s23  ;;  %v612_v60 = vrot.slane %v610_v13, 5  ;;  %v627_v9 = vsel %vm4208_vm2, %v622_v25, %v4427_v62  ;;  %v702_v62 = vrot.slane %v700_v7, 4  ;;  %v660_v25 = vrot.slane %v658_v61, 5  ;;  %319 = vst.msk [vmem:[#allocation2 + $0x70] sm:$0xf] %vm290_vm5, %v4438_v32 }
  0x56   : > { %v655_v23 = vor.u32 %v654_v21, %v650_v52  ;;  %v698_v40 = vrot.slane %v696_v63, 5  ;;  %v693_v61 = vor.u32 %v692_v47, %v689_v44  ;;  %v3685_v58 = vrot.slane %v4275_v29, 9  ;;  %320 = vst.msk [vmem:[#allocation2 + $0x74] sm:$0xf] %vm290_vm5, %v4466_v28 }
  0x57   : > { %v613_v13 = vsel %vm4208_vm2, %v608_v51, %v612_v60  ;;  %v678_v51 = vrot.slane %v676_v18, 4  ;;  %v675_v60 = vsel %vm4208_vm2, %v670_v30, %v674_v41  ;;  %v3682_v30 = vrot.slane %v4175_v0, 9 }
  0x58   : > { %v656_v21 = vrot.slane %v655_v23, 4  ;;  %v703_v39 = vor.u32 %v702_v62, %v698_v40  ;;  %v694_v50 = vrot.slane %v693_v61, 4  ;;  %v916_v61 = vrot.slane %v4232_v46, 5 }
  0x59   : > { %v679_v7 = vor.u32 %v678_v51, %v674_v41  ;;  %v899_v41 = vrot.slane %v4178_v1, 5  ;;  %v906_v51 = vrot.slane %v4226_v42, 5  ;;  %v3683_v1 = vrot.slane %v4217_v37, 9 }
  0x5a   : > { %v661_v15 = vsel %vm4208_vm2, %v656_v21, %v660_v25  ;;  %v704_v23 = vrot.slane %v703_v39, 4  ;;  %v699_v47 = vsel %vm4208_vm2, %v694_v50, %v698_v40  ;;  %v895_v21 = vrot.slane %v4198_v17, 5 }
  0x5b   : > { %v3681_v25 = vrot.slane %v4181_v2, 9  ;;  %v908_v0 = vrot.slane %v906_v51, 4  ;;  %v901_v42 = vrot.slane %v899_v41, 4  ;;  %v907_v37 = vsel %vm4526_vm6, %v3683_v1, %v906_v51 }
  0x5c   : > { %760 = vrot.lane.b32.xlu1 %v637_v48, %s4115_s23  ;;  %v646_v48 = vrot.slane %v645_v26, 4  ;;  %v709_v44 = vsel %vm4208_vm2, %v704_v23, %v708_v11  ;;  %v913_v39 = vrot.slane %v4202_v22, 5  ;;  %v920_v22 = vrot.slane %v4243_v56, 5 }
  0x5d   : > { %758 = vrot.lane.b32.xlu0 %v627_v9, %s4115_s23  ;;  %756 = vrot.lane.b32.xlu2 %v613_v13, %s4115_s23  ;;  %v682_v9 = vshll.u32 %v4505_v43, 16  ;;  %v680_v13 = vrot.slane %v679_v7, 4  ;;  %v3684_v29 = vrot.slane %v4214_v31, 9  ;;  %v3686_v23 = vrot.slane %v4239_v53, 9 }
  0x5e   : > { %v651_v63 = vsel %vm4208_vm2, %v646_v48, %v650_v52  ;;  %v892_v52 = vrot.slane %v4187_v6, 5  ;;  %v900_v48 = vsel %vm4526_vm6, %v3682_v30, %v899_v41  ;;  %v909_v6 = vrot.slane %v4253_v4, 5  ;;  %v6253_v41 = vld [vmem:[#allocation3_spill] sm:$0xff] }
  0x5f   : > { %v684_v26 = vrot.slane %v682_v9, 5  ;;  %v921_v56 = vsel %vm4526_vm6, %v3685_v58, %v920_v22  ;;  %v914_v31 = vsel %vm4526_vm6, %v3684_v29, %v913_v39  ;;  %v930_v9 = vrot.slane %v4315_v12, 5 }
  0x60   : > { %v894_v40 = vrot.slane %v892_v52, 4  ;;  %v893_v2 = vsel %vm4526_vm6, %v3681_v25, %v892_v52  ;;  %v910_v4 = vsel %vm4526_vm6, %v908_v0, %v909_v6  ;;  %v922_v11 = vrot.slane %v920_v22, 4  ;;  %v6252_v52 = vld [vmem:[#allocation11_spill] sm:$0xff] }
  0x61   : > { %v685_v18 = vsel %vm4208_vm2, %v680_v13, %v684_v26  ;;  %v923_v50 = vrot.slane %v4270_v24, 5  ;;  %v934_v26 = vrot.slane %v4261_v16, 5  ;;  %v941_v16 = vrot.slane %v4311_v8, 5  ;;  %322 = vst.msk [vmem:[#allocation2 + $0x7c] sm:$0xf] %vm290_vm5, %v6252_v52 }
  0x62   : > { %v896_v17 = vsel %vm4526_vm6, %v894_v40, %v895_v21  ;;  %v937_v40 = vrot.slane %v6253_v41, 5  ;;  %v3687_v25 = vrot.slane %v4281_v33, 9  ;;  %v948_v8 = vrot.slane %v4333_v35, 5 }
  0x63   : > { %v924_v24 = vsel %vm4526_vm6, %v922_v11, %v923_v50  ;;  %v936_v30 = vrot.slane %v934_v26, 4  ;;  %v3689_v1 = vrot.slane %v4305_v3, 9  ;;  %v955_v58 = vrot.slane %v4345_v49, 5 }
  0x64   : > { %766 = vrot.lane.b32.xlu1 %v675_v60, %s4115_s23  ;;  %v902_v60 = vrot.slane %v4193_v10, 5  ;;  %v950_v33 = vrot.slane %v948_v8, 4  ;;  %v3691_v22 = vrot.slane %v4387_v55, 9  ;;  %v969_v55 = vrot.slane %v4405_v14, 5 }
  0x65   : > { %764 = vrot.lane.b32.xlu0 %v661_v15, %s4115_s23  ;;  %762 = vrot.lane.b32.xlu2 %v651_v63, %s4115_s23  ;;  %v915_v15 = vrot.slane %v913_v39, 4  ;;  %v927_v63 = vrot.slane %v4265_v19, 5  ;;  %v938_v51 = vsel %vm4526_vm6, %v936_v30, %v937_v40  ;;  %v957_v29 = vrot.slane %v955_v58, 4 }
  0x66   : > { %v903_v10 = vsel %vm4526_vm6, %v901_v42, %v902_v60  ;;  %v943_v42 = vrot.slane %v941_v16, 4  ;;  %v6255_v60 = vld [vmem:[#allocation4_spill] sm:$0xff]  ;;  %v3692_v50 = vrot.slane %v4372_v36, 9  ;;  %v983_v30 = vrot.slane %v4444_v45, 5 }
  0x67   : > { %v917_v7 = vsel %vm4526_vm6, %v915_v15, %v916_v61  ;;  %v929_v19 = vrot.slane %v927_v63, 4  ;;  %v928_v13 = vsel %vm4526_vm6, %v3686_v23, %v927_v63  ;;  %v962_v15 = vrot.slane %v4376_v38, 5 }
  0x69   : > { %v931_v12 = vsel %vm4526_vm6, %v929_v19, %v930_v9  ;;  %v971_v9 = vrot.slane %v969_v55, 4 }
  0x6c   : > { %772 = vrot.lane.b32.xlu1 %v709_v44, %s4115_s23  ;;  %v6251_v44 = vld [vmem:[#allocation12_spill] sm:$0xff] }
  0x6d   : > { %770 = vrot.lane.b32.xlu0 %v699_v47, %s4115_s23  ;;  %768 = vrot.lane.b32.xlu2 %v685_v18, %s4115_s23  ;;  %321 = vst.msk [vmem:[#allocation2 + $0x78] sm:$0xf] %vm290_vm5, %v6251_v44  ;;  %v3688_v47 = vrot.slane %v4322_v20, 9 }
  0x6f   : > { %v942_v20 = vsel %vm4526_vm6, %v3688_v47, %v941_v16  ;;  %v970_v47 = vsel %vm4526_vm6, %v3692_v50, %v969_v55  ;;  %v976_v16 = vrot.slane %v4399_v5, 5  ;;  %v4812_v50 = vld [vmem:[%s4172_s22 + $0x34] sm:$0xf] }
  0x71   : > { %v978_v40 = vrot.slane %v976_v16, 4 }
  0x74   : > { %1006 = vrot.lane.b32.xlu1 %v900_v48, %s4116_s24 }
  0x75   : > { %1004 = vrot.lane.b32.xlu0 %v896_v17, %s4116_s24  ;;  %1002 = vrot.lane.b32.xlu2 %v893_v2, %s4116_s24  ;;  %v935_v17 = vsel %vm4526_vm6, %v3687_v25, %v934_v26  ;;  %v6254_v2 = vld [vmem:[#allocation6_spill] sm:$0xff] }
  0x76   : > { %v951_v0 = vrot.slane %v6254_v2, 5  ;;  %v3695_v2 = vrot.slane %v4438_v32, 9  ;;  %v997_v32 = vrot.slane %v6252_v52, 5  ;;  %v3696_v52 = vrot.slane %v6251_v44, 9 }
  0x7c   : > { %1012 = vrot.lane.b32.xlu1 %v910_v4, %s4116_s24  ;;  %v944_v4 = vrot.slane %v6255_v60, 5 }
  0x7d   : > { %1010 = vrot.lane.b32.xlu0 %v907_v37, %s4116_s24  ;;  %1008 = vrot.lane.b32.xlu2 %v903_v10, %s4116_s24  ;;  %v952_v37 = vsel %vm4526_vm6, %v950_v33, %v951_v0  ;;  %v949_v10 = vsel %vm4526_vm6, %v3689_v1, %v948_v8  ;;  %v985_v0 = vrot.slane %v983_v30, 4 }
  0x7e   : > { %v945_v3 = vsel %vm4526_vm6, %v943_v42, %v944_v4 }
  0x7f   : > { %v719_v46 = vpop.permute.xlu2 %718 }
  0x80   : > { %811 = vst.msk [vmem:[#allocation2 + $0x10] sm:$0xf] %vm806_vm7, %v719_v46  ;;  %v3690_v46 = vrot.slane %v4352_v54, 9  ;;  %v6257_v54 = vld [vmem:[#allocation9_spill] sm:$0xff] }
  0x81   : > { %v972_v23 = vrot.slane %v6257_v54, 5  ;;  %v4803_v54 = vld [vmem:[%s4172_s22 + $0x40] sm:$0xf] }
  0x82   : > { %v956_v19 = vsel %vm4526_vm6, %v3690_v46, %v955_v58  ;;  %v4753_v58 = vld [vmem:[%s4172_s22 + $0xc] sm:$0xf] }
  0x83   : > { %v973_v26 = vsel %vm4526_vm6, %v971_v9, %v972_v23 }
  0x84   : > { %1018 = vrot.lane.b32.xlu1 %v921_v56, %s4116_s24  ;;  %v6256_v56 = vld [vmem:[#allocation5_spill] sm:$0xff] }
  0x85   : > { %1016 = vrot.lane.b32.xlu0 %v917_v7, %s4116_s24  ;;  %1014 = vrot.lane.b32.xlu2 %v914_v31, %s4116_s24  ;;  %v958_v63 = vrot.slane %v6256_v56, 5  ;;  %v963_v7 = vsel %vm4526_vm6, %v3691_v22, %v962_v15  ;;  %v4770_v56 = vld [vmem:[%s4172_s22 + $0x18] sm:$0xf] }
  0x87   : > { %v721_v53 = vpop.permute.xlu2 %720  ;;  %v959_v38 = vsel %vm4526_vm6, %v957_v29, %v958_v63  ;;  %v4776_v63 = vld [vmem:[%s4172_s22 + $0x10] sm:$0xf] }
  0x88   : > { %812 = vst.msk [vmem:[#allocation2 + $0x14] sm:$0xf] %vm806_vm7, %v721_v53  ;;  %v6258_v53 = vld [vmem:[#allocation7_spill] sm:$0xff] }
  0x8c   : > { %1024 = vrot.lane.b32.xlu1 %v931_v12, %s4116_s24  ;;  %v964_v12 = vrot.slane %v962_v15, 4 }
  0x8d   : > { %1022 = vrot.lane.b32.xlu0 %v928_v13, %s4116_s24  ;;  %1020 = vrot.lane.b32.xlu2 %v924_v24, %s4116_s24  ;;  %v965_v13 = vrot.slane %v6258_v53, 5  ;;  %v4821_v53 = vld [vmem:[%s4172_s22 + $0x54] sm:$0xf] }
  0x8e   : > { %v715_v18 = vpop.permute.xlu1 %714 }
  0x8f   : > { %809 = vst.msk [vmem:[#allocation2 + $0x8] sm:$0xf] %vm806_vm7, %v715_v18  ;;  %v711_v21 = vpop.permute.xlu0 %710  ;;  %v727_v48 = vpop.permute.xlu2 %726  ;;  %v966_v36 = vsel %vm4526_vm6, %v964_v12, %v965_v13  ;;  %v3694_v18 = vrot.slane %v4454_v59, 9  ;;  %v990_v59 = vrot.slane %v4466_v28, 5 }
  0x90   : > { %807 = vst.msk [vmem:[#allocation2] sm:$0xf] %vm806_vm7, %v711_v21  ;;  %v6259_v21 = vld [vmem:[#allocation8_spill] sm:$0xff] }
  0x91   : > { %815 = vst.msk [vmem:[#allocation2 + $0x20] sm:$0xf] %vm806_vm7, %v727_v48  ;;  %v979_v25 = vrot.slane %v6259_v21, 5  ;;  %v984_v8 = vsel %vm4526_vm6, %v3694_v18, %v983_v30  ;;  %v4842_v30 = vld [vmem:[%s4172_s22 + $0x60] sm:$0xf] }
  0x93   : > { %v980_v45 = vsel %vm4526_vm6, %v978_v40, %v979_v25  ;;  %v4857_v25 = vld [vmem:[%s4172_s22 + $0x78] sm:$0xf] }
  0x94   : > { %1030 = vrot.lane.b32.xlu1 %v942_v20, %s4116_s24  ;;  %v3693_v20 = vrot.slane %v4416_v34, 9  ;;  %v993_v34 = vrot.slane %v4505_v43, 5  ;;  %v991_v43 = vsel %vm4526_vm6, %v3695_v2, %v990_v59 }
  0x95   : > { %1028 = vrot.lane.b32.xlu0 %v938_v51, %s4116_s24  ;;  %1026 = vrot.lane.b32.xlu2 %v935_v17, %s4116_s24  ;;  %v992_v17 = vrot.slane %v990_v59, 4 }
  0x96   : > { %v717_v6 = vpop.permute.xlu1 %716  ;;  %v977_v51 = vsel %vm4526_vm6, %v3693_v20, %v976_v16  ;;  %v4860_v20 = vld [vmem:[%s4172_s22 + $0x70] sm:$0xf] }
  0x97   : > { %810 = vst.msk [vmem:[#allocation2 + $0xc] sm:$0xf] %vm806_vm7, %v717_v6  ;;  %v713_v35 = vpop.permute.xlu0 %712  ;;  %v733_v39 = vpop.permute.xlu2 %732  ;;  %v6260_v6 = vld [vmem:[#allocation10_spill] sm:$0xff] }
  0x98   : > { %808 = vst.msk [vmem:[#allocation2 + $0x4] sm:$0xf] %vm806_vm7, %v713_v35  ;;  %v986_v1 = vrot.slane %v6260_v6, 5  ;;  %v994_v35 = vsel %vm4526_vm6, %v992_v17, %v993_v34  ;;  %v4878_v17 = vld [vmem:[%s4172_s22 + $0x84] sm:$0xf] }
  0x99   : > { %818 = vst.msk [vmem:[#allocation2 + $0x2c] sm:$0xf] %vm806_vm7, %v733_v39  ;;  %v1000_v39 = vrot.slane %v4498_v57, 5  ;;  %v998_v57 = vsel %vm4526_vm6, %v3696_v52, %v997_v32  ;;  %v4884_v34 = vld [vmem:[%s4172_s22 + $0x7c] sm:$0xf] }
  0x9a   : > { %v987_v60 = vsel %vm4526_vm6, %v985_v0, %v986_v1  ;;  %v4896_v6 = vld [vmem:[%s4172_s22 + $0x94] sm:$0xf]  ;;  %v4902_v1 = vld [vmem:[%s4172_s22 + $0x90] sm:$0xf]  ;;  %v4924_v52 = vld [vmem:[%s4172_s22 + $0xa0] sm:$0xf] }
  0x9c   : > { %1036 = vrot.lane.b32.xlu1 %v952_v37, %s4116_s24  ;;  %v999_v37 = vrot.slane %v997_v32, 4  ;;  %v1358_v32 = vshrl.u32 %v4776_v63, 16 }
  0x9d   : > { %1034 = vrot.lane.b32.xlu0 %v949_v10, %s4116_s24  ;;  %1032 = vrot.lane.b32.xlu2 %v945_v3, %s4116_s24 }
  0x9e   : > { %v725_v61 = vpop.permute.xlu1 %724  ;;  %v1001_v22 = vsel %vm4526_vm6, %v999_v37, %v1000_v39  ;;  %v1345_v37 = vshrl.u32 %v4753_v58, 16  ;;  %v1348_v39 = vshll.u32 %v4753_v58, 16 }
  0x9f   : > { %814 = vst.msk [vmem:[#allocation2 + $0x1c] sm:$0xf] %vm806_vm7, %v725_v61  ;;  %v723_v49 = vpop.permute.xlu0 %722  ;;  %v739_v31 = vpop.permute.xlu2 %738  ;;  %v4767_v61 = vld [vmem:[%s4172_s22 + $0x1c] sm:$0xf] }
  0xa0   : > { %813 = vst.msk [vmem:[#allocation2 + $0x18] sm:$0xf] %vm806_vm7, %v723_v49 }
  0xa1   : > { %821 = vst.msk [vmem:[#allocation2 + $0x38] sm:$0xf] %vm806_vm7, %v739_v31  ;;  %v4788_v31 = vld [vmem:[%s4172_s22 + $0x28] sm:$0xf] }
  0xa4   : > { %1042 = vrot.lane.b32.xlu1 %v963_v7, %s4116_s24  ;;  %v4785_v7 = vld [vmem:[%s4172_s22 + $0x30] sm:$0xf] }
  0xa5   : > { %1040 = vrot.lane.b32.xlu0 %v959_v38, %s4116_s24  ;;  %1038 = vrot.lane.b32.xlu2 %v956_v19, %s4116_s24  ;;  %v4794_v38 = vld [vmem:[%s4172_s22 + $0x24] sm:$0xf] }
  0xa6   : > { %v731_v11 = vpop.permute.xlu1 %730 }
  0xa7   : > { %817 = vst.msk [vmem:[#allocation2 + $0x28] sm:$0xf] %vm806_vm7, %v731_v11  ;;  %v729_v14 = vpop.permute.xlu0 %728  ;;  %v745_v24 = vpop.permute.xlu2 %744  ;;  %v4806_v11 = vld [vmem:[%s4172_s22 + $0x3c] sm:$0xf] }
  0xa8   : > { %816 = vst.msk [vmem:[#allocation2 + $0x24] sm:$0xf] %vm806_vm7, %v729_v14 }
  0xa9   : > { %824 = vst.msk [vmem:[#allocation2 + $0x44] sm:$0xf] %vm806_vm7, %v745_v24  ;;  %v4830_v24 = vld [vmem:[%s4172_s22 + $0x48] sm:$0xf] }
  0xac   : > { %1048 = vrot.lane.b32.xlu1 %v973_v26, %s4116_s24  ;;  %v4824_v26 = vld [vmem:[%s4172_s22 + $0x4c] sm:$0xf] }
  0xad   : > { %1046 = vrot.lane.b32.xlu0 %v970_v47, %s4116_s24  ;;  %1044 = vrot.lane.b32.xlu2 %v966_v36, %s4116_s24  ;;  %v4839_v36 = vld [vmem:[%s4172_s22 + $0x64] sm:$0xf] }
  0xae   : > { %v737_v41 = vpop.permute.xlu1 %736 }
  0xaf   : > { %820 = vst.msk [vmem:[#allocation2 + $0x34] sm:$0xf] %vm806_vm7, %v737_v41  ;;  %v735_v5 = vpop.permute.xlu0 %734  ;;  %v751_v48 = vpop.permute.xlu2 %750  ;;  %v4848_v41 = vld [vmem:[%s4172_s22 + $0x58] sm:$0xf] }
  0xb0   : > { %819 = vst.msk [vmem:[#allocation2 + $0x30] sm:$0xf] %vm806_vm7, %v735_v5 }
  0xb1   : > { %827 = vst.msk [vmem:[#allocation2 + $0x50] sm:$0xf] %vm806_vm7, %v751_v48 }
  0xb2   : > { %6261 = vst [vmem:[#allocation12_spill] sm:$0xff] %v4848_v41 }
  0xb4   : > { %1054 = vrot.lane.b32.xlu1 %v984_v8, %s4116_s24  ;;  %v4866_v8 = vld [vmem:[%s4172_s22 + $0x6c] sm:$0xf] }
  0xb5   : > { %1052 = vrot.lane.b32.xlu0 %v980_v45, %s4116_s24  ;;  %1050 = vrot.lane.b32.xlu2 %v977_v51, %s4116_s24  ;;  %v4875_v45 = vld [vmem:[%s4172_s22 + $0x88] sm:$0xf] }
  0xb6   : > { %v743_v33 = vpop.permute.xlu1 %742 }
  0xb7   : > { %823 = vst.msk [vmem:[#allocation2 + $0x40] sm:$0xf] %vm806_vm7, %v743_v33  ;;  %v741_v28 = vpop.permute.xlu0 %740  ;;  %v757_v42 = vpop.permute.xlu2 %756 }
  0xb8   : > { %822 = vst.msk [vmem:[#allocation2 + $0x3c] sm:$0xf] %vm806_vm7, %v741_v28  ;;  %v4893_v28 = vld [vmem:[%s4172_s22 + $0x9c] sm:$0xf] }
  0xb9   : > { %830 = vst.msk [vmem:[#allocation2 + $0x5c] sm:$0xf] %vm806_vm7, %v757_v42 }
  0xbc   : > { %1060 = vrot.lane.b32.xlu1 %v994_v35, %s4116_s24 }
  0xbd   : > { %1058 = vrot.lane.b32.xlu0 %v991_v43, %s4116_s24  ;;  %1056 = vrot.lane.b32.xlu2 %v987_v60, %s4116_s24  ;;  %v1354_v43 = vshll.u32 %v4776_v63, 16  ;;  %v4913_v60 = vld [vmem:[%s4172_s22 + $0xac] sm:$0xf] }
  0xbe   : > { %v749_v4 = vpop.permute.xlu1 %748 }
  0xbf   : > { %826 = vst.msk [vmem:[#allocation2 + $0x4c] sm:$0xf] %vm806_vm7, %v749_v4  ;;  %v747_v10 = vpop.permute.xlu0 %746  ;;  %v763_v3 = vpop.permute.xlu2 %762 }
  0xc0   : > { %825 = vst.msk [vmem:[#allocation2 + $0x48] sm:$0xf] %vm806_vm7, %v747_v10  ;;  %v4918_v10 = vld [vmem:[%s4172_s22 + $0xa8] sm:$0xf] }
  0xc1   : > { %833 = vst.msk [vmem:[#allocation2 + $0x68] sm:$0xf] %vm806_vm7, %v763_v3  ;;  %v1356_v3 = vrot.slane %v1354_v43, 5 }
  0xc4   : > { %1215 = vrot.lane.b32.xlu1 %v4753_v58, %s4117_s25  ;;  %v4929_v58 = vld [vmem:[%s4172_s22 + $0x14] sm:$0x1] }
  0xc5   : > { %1064 = vrot.lane.b32.xlu0 %v1001_v22, %s4116_s24  ;;  %1062 = vrot.lane.b32.xlu2 %v998_v57, %s4116_s24  ;;  %v1360_v22 = vrot.slane %v1358_v32, 4  ;;  %v1347_v57 = vrot.slane %v1345_v37, 4  ;;  %v1426_v37 = vshll.u32 %v4812_v50, 16  ;;  %s235_s24 = scalar_lea.vmem %s6222_s4, %s3680_s21 }
  0xc6   : > { %v755_v44 = vpop.permute.xlu1 %754 }
  0xc7   : > { %829 = vst.msk [vmem:[#allocation2 + $0x58] sm:$0xf] %vm806_vm7, %v755_v44  ;;  %v753_v15 = vpop.permute.xlu0 %752  ;;  %v769_v29 = vpop.permute.xlu2 %768  ;;  %v1350_v44 = vrot.slane %v1348_v39, 5  ;;  %v1430_v39 = vshrl.u32 %v4812_v50, 16 }
  0xc8   : > { %828 = vst.msk [vmem:[#allocation2 + $0x54] sm:$0xf] %vm806_vm7, %v753_v15 }
  0xc9   : > { %836 = vst.msk [vmem:[#allocation2 + $0x74] sm:$0xf] %vm806_vm7, %v769_v29 }
  0xcc   : > { %1221 = vrot.lane.b32.xlu1 %v4767_v61, %s4117_s25 }
  0xcd   : > { %1219 = vrot.lane.b32.xlu0 %v4770_v56, %s4117_s25  ;;  %1217 = vrot.lane.b32.xlu2 %v4776_v63, %s4117_s25 }
  0xce   : > { %v761_v49 = vpop.permute.xlu1 %760 }
  0xcf   : > { %832 = vst.msk [vmem:[#allocation2 + $0x64] sm:$0xf] %vm806_vm7, %v761_v49  ;;  %v759_v46 = vpop.permute.xlu0 %758  ;;  %v1003_v55 = vpop.permute.xlu2 %1002  ;;  %v1393_v49 = vshrl.u32 %v4794_v38, 16 }
  0xd0   : > { %831 = vst.msk [vmem:[#allocation2 + $0x60] sm:$0xf] %vm806_vm7, %v759_v46  ;;  %v1396_v46 = vshll.u32 %v4794_v38, 16 }
  0xd1   : > { %1099 = vst.msk [vmem:[#allocation2] sm:$0xf] %vm1098_vm8, %v1003_v55  ;;  %v4938_v55 = vld [vmem:[%s4172_s22 + $0xc0] sm:$0xf] }
  0xd4   : > { %1227 = vrot.lane.b32.xlu1 %v4785_v7, %s4117_s25 }
  0xd5   : > { %1225 = vrot.lane.b32.xlu0 %v4788_v31, %s4117_s25  ;;  %1223 = vrot.lane.b32.xlu2 %v4794_v38, %s4117_s25 }
  0xd6   : > { %v767_v19 = vpop.permute.xlu1 %766 }
  0xd7   : > { %835 = vst.msk [vmem:[#allocation2 + $0x70] sm:$0xf] %vm806_vm7, %v767_v19  ;;  %v765_v9 = vpop.permute.xlu0 %764  ;;  %v1009_v23 = vpop.permute.xlu2 %1008  ;;  %v1361_v19 = vor.u32 %v1360_v22, %v1356_v3 }
  0xd8   : > { %834 = vst.msk [vmem:[#allocation2 + $0x6c] sm:$0xf] %vm806_vm7, %v765_v9  ;;  %v1364_v9 = vshll.u32 %v4929_v58, 16 }
  0xd9   : > { %1102 = vst.msk [vmem:[#allocation2 + $0xc] sm:$0xf] %vm1098_vm8, %v1009_v23 }
  0xdc   : > { %1233 = vrot.lane.b32.xlu1 %v4803_v54, %s4117_s25 }
  0xdd   : > { %1231 = vrot.lane.b32.xlu0 %v4806_v11, %s4117_s25  ;;  %1229 = vrot.lane.b32.xlu2 %v4812_v50, %s4117_s25 }
  0xde   : > { %v773_v14 = vpop.permute.xlu1 %772 }
  0xdf   : > { %838 = vst.msk [vmem:[#allocation2 + $0x7c] sm:$0xf] %vm806_vm7, %v773_v14  ;;  %v771_v12 = vpop.permute.xlu0 %770  ;;  %v1015_v13 = vpop.permute.xlu2 %1014  ;;  %v1378_v14 = vshll.u32 %v4767_v61, 16 }
  0xe0   : > { %837 = vst.msk [vmem:[#allocation2 + $0x78] sm:$0xf] %vm806_vm7, %v771_v12  ;;  %v1382_v12 = vshrl.u32 %v4767_v61, 16 }
  0xe1   : > { %1105 = vst.msk [vmem:[#allocation2 + $0x18] sm:$0xf] %vm1098_vm8, %v1015_v13  ;;  %v4944_v13 = vld [vmem:[%s4172_s22 + $0xb8] sm:$0xf] }
  0xe4   : > { %1239 = vrot.lane.b32.xlu1 %v4821_v53, %s4117_s25 }
  0xe5   : > { %1237 = vrot.lane.b32.xlu0 %v4824_v26, %s4117_s25  ;;  %1235 = vrot.lane.b32.xlu2 %v4830_v24, %s4117_s25 }
  0xe6   : > { %v1007_v47 = vpop.permute.xlu1 %1006 }
  0xe7   : > { %1101 = vst.msk [vmem:[#allocation2 + $0x8] sm:$0xf] %vm1098_vm8, %v1007_v47  ;;  %v1005_v16 = vpop.permute.xlu0 %1004  ;;  %v1021_v18 = vpop.permute.xlu2 %1020  ;;  %v1351_v47 = vor.u32 %v1350_v44, %v1347_v57  ;;  %v1402_v44 = vshll.u32 %v4788_v31, 16 }
  0xe8   : > { %1100 = vst.msk [vmem:[#allocation2 + $0x4] sm:$0xf] %vm1098_vm8, %v1005_v16  ;;  %v1369_v16 = vshrl.u32 %v4770_v56, 16 }
  0xe9   : > { %1108 = vst.msk [vmem:[#allocation2 + $0x24] sm:$0xf] %vm1098_vm8, %v1021_v18  ;;  %v1372_v18 = vshll.u32 %v4770_v56, 16 }
  0xea   : > { %v1371_v43 = vrot.slane %v1369_v16, 4 }
  0xeb   : > { %v1374_v32 = vrot.slane %v1372_v18, 5 }
  0xec   : > { %1245 = vrot.lane.b32.xlu1 %v4839_v36, %s4117_s25 }
  0xed   : > { %1243 = vrot.lane.b32.xlu0 %v4842_v30, %s4117_s25  ;;  %1241 = vrot.lane.b32.xlu2 %v4848_v41, %s4117_s25 }
  0xee   : > { %v1013_v40 = vpop.permute.xlu1 %1012 }
  0xef   : > { %1104 = vst.msk [vmem:[#allocation2 + $0x14] sm:$0xf] %vm1098_vm8, %v1013_v40  ;;  %v1011_v21 = vpop.permute.xlu0 %1010  ;;  %v1027_v5 = vpop.permute.xlu2 %1026  ;;  %v4952_v40 = vld [vmem:[%s4172_s22 + $0xb4] sm:$0xf] }
  0xf0   : > { %1103 = vst.msk [vmem:[#allocation2 + $0x10] sm:$0xf] %vm1098_vm8, %v1011_v21  ;;  %v1395_v21 = vrot.slane %v1393_v49, 4 }
  0xf1   : > { %1111 = vst.msk [vmem:[#allocation2 + $0x30] sm:$0xf] %vm1098_vm8, %v1027_v5  ;;  %v1398_v5 = vrot.slane %v1396_v46, 5 }
  0xf3   : > { %v1399_v57 = vor.u32 %v1398_v5, %v1395_v21 }
  0xf4   : > { %1251 = vrot.lane.b32.xlu1 %v4857_v25, %s4117_s25 }
  0xf5   : > { %1249 = vrot.lane.b32.xlu0 %v4860_v20, %s4117_s25  ;;  %1247 = vrot.lane.b32.xlu2 %v4866_v8, %s4117_s25 }
  0xf6   : > { %v1019_v59 = vpop.permute.xlu1 %1018 }
  0xf7   : > { %1107 = vst.msk [vmem:[#allocation2 + $0x20] sm:$0xf] %vm1098_vm8, %v1019_v59  ;;  %v1017_v48 = vpop.permute.xlu0 %1016  ;;  %v1033_v51 = vpop.permute.xlu2 %1032  ;;  %v1362_v59 = vrot.slane %v1361_v19, 4 }
  0xf8   : > { %1106 = vst.msk [vmem:[#allocation2 + $0x1c] sm:$0xf] %vm1098_vm8, %v1017_v48  ;;  %v1366_v48 = vrot.slane %v1364_v9, 5  ;;  %v1406_v9 = vshrl.u32 %v4788_v31, 16 }
  0xf9   : > { %1114 = vst.msk [vmem:[#allocation2 + $0x3c] sm:$0xf] %vm1098_vm8, %v1033_v51  ;;  %v4956_v51 = vrot.slane %v1378_v14, 5  ;;  %v1375_v14 = vor.u32 %v1374_v32, %v1371_v43  ;;  %v1468_v32 = vshll.u32 %v4830_v24, 16 }
  0xfa   : > { %v1367_v22 = vsel %vm4208_vm2, %v1362_v59, %v1366_v48  ;;  %v4986_v48 = vld [vmem:[%s4172_s22 + $0x38] sm:$0x1] }
  0xfb   : > { %v1376_v43 = vrot.slane %v1375_v14, 4 }
  0xfc   : > { %1257 = vrot.lane.b32.xlu1 %v4875_v45, %s4117_s25 }
  0xfd   : > { %1255 = vrot.lane.b32.xlu0 %v4878_v17, %s4117_s25  ;;  %1253 = vrot.lane.b32.xlu2 %v4884_v34, %s4117_s25 }
  0xfe   : > { %v1025_v33 = vpop.permute.xlu1 %1024 }
  0xff   : > { %1110 = vst.msk [vmem:[#allocation2 + $0x2c] sm:$0xf] %vm1098_vm8, %v1025_v33  ;;  %v1023_v2 = vpop.permute.xlu0 %1022  ;;  %v1039_v0 = vpop.permute.xlu2 %1038  ;;  %v1384_v33 = vrot.slane %v1382_v12, 4  ;;  %v4982_v12 = vrot.slane %v1426_v37, 5 }
 0x100   : > { %1109 = vst.msk [vmem:[#allocation2 + $0x28] sm:$0xf] %vm1098_vm8, %v1023_v2 }
 0x101   : > { %1117 = vst.msk [vmem:[#allocation2 + $0x48] sm:$0xf] %vm1098_vm8, %v1039_v0  ;;  %v1352_v0 = vrot.slane %v1351_v47, 4  ;;  %v1385_v46 = vor.u32 %v1384_v33, %v4956_v51  ;;  %v1404_v47 = vrot.slane %v1402_v44, 5  ;;  %v1454_v44 = vshrl.u32 %v4803_v54, 16 }
 0x103   : > { %v1357_v49 = vsel %vm4208_vm2, %v1352_v0, %v1356_v3  ;;  %v1400_v3 = vrot.slane %v1399_v57, 4  ;;  %v1386_v5 = vrot.slane %v1385_v46, 4  ;;  %v1450_v0 = vshll.u32 %v4803_v54, 16  ;;  %v5000_v57 = vld [vmem:[%s4172_s22 + $0x2c] sm:$0x1] }
 0x104   : > { %1263 = vrot.lane.b32.xlu1 %v4893_v28, %s4117_s25  ;;  %v1444_v46 = vshll.u32 %v4806_v11, 16  ;;  %v1412_v14 = vshll.u32 %v5000_v57, 16 }
 0x105   : > { %1261 = vrot.lane.b32.xlu0 %v4896_v6, %s4117_s25  ;;  %1259 = vrot.lane.b32.xlu2 %v4902_v1, %s4117_s25 }
 0x106   : > { %v1031_v35 = vpop.permute.xlu1 %1030 }
 0x107   : > { %1113 = vst.msk [vmem:[#allocation2 + $0x38] sm:$0xf] %vm1098_vm8, %v1031_v35  ;;  %v1029_v42 = vpop.permute.xlu0 %1028  ;;  %v1045_v4 = vpop.permute.xlu2 %1044 }
 0x108   : > { %1112 = vst.msk [vmem:[#allocation2 + $0x34] sm:$0xf] %vm1098_vm8, %v1029_v42  ;;  %v4962_v42 = vld [vmem:[%s4172_s22 + $0x20] sm:$0x1] }
 0x109   : > { %1120 = vst.msk [vmem:[#allocation2 + $0x54] sm:$0xf] %vm1098_vm8, %v1045_v4  ;;  %v1417_v4 = vshrl.u32 %v4785_v7, 16  ;;  %v1388_v19 = vshll.u32 %v4962_v42, 16 }
 0x10b   : > { %v1419_v16 = vrot.slane %v1417_v4, 4  ;;  %v1390_v59 = vrot.slane %v1388_v19, 5  ;;  %v1405_v4 = vsel %vm4208_vm2, %v1400_v3, %v1404_v47  ;;  %v1381_v19 = vsel %vm4208_vm2, %v1376_v43, %v4956_v51 }
 0x10c   : > { %1269 = vrot.lane.b32.xlu1 %v4913_v60, %s4117_s25  ;;  %v1470_v3 = vrot.slane %v1468_v32, 5  ;;  %v1414_v43 = vrot.slane %v1412_v14, 5  ;;  %v1502_v32 = vshrl.u32 %v4848_v41, 16  ;;  %v1478_v14 = vshrl.u32 %v4824_v26, 16 }
 0x10d   : > { %1267 = vrot.lane.b32.xlu0 %v4918_v10, %s4117_s25  ;;  %1265 = vrot.lane.b32.xlu2 %v4924_v52, %s4117_s25 }
 0x10e   : > { %v1037_v15 = vpop.permute.xlu1 %1036 }
 0x10f   : > { %1116 = vst.msk [vmem:[#allocation2 + $0x44] sm:$0xf] %vm1098_vm8, %v1037_v15  ;;  %v1035_v29 = vpop.permute.xlu0 %1034  ;;  %v1051_v23 = vpop.permute.xlu2 %1050 }
 0x110   : > { %1115 = vst.msk [vmem:[#allocation2 + $0x40] sm:$0xf] %vm1098_vm8, %v1035_v29  ;;  %v1420_v29 = vshll.u32 %v4785_v7, 16  ;;  %v1432_v7 = vrot.slane %v1430_v39, 4  ;;  %v1436_v39 = vshll.u32 %v4986_v48, 16 }
 0x111   : > { %1123 = vst.msk [vmem:[#allocation2 + $0x60] sm:$0xf] %vm1098_vm8, %v1051_v23  ;;  %v4980_v23 = vld [vmem:[%s4172_s22 + $0xc4] sm:$0xf] }
 0x112   : > { %v1422_v18 = vrot.slane %v1420_v29, 5  ;;  %v1433_v37 = vor.u32 %v1432_v7, %v4982_v12  ;;  %v1391_v29 = vsel %vm4208_vm2, %v1386_v5, %v1390_v59  ;;  %v1456_v5 = vrot.slane %v1454_v44, 4 }
 0x113   : > { %v1474_v44 = vshll.u32 %v4824_v26, 16 }
 0x114   : > { %1275 = vrot.lane.b32.xlu1 %v4938_v55, %s4117_s25 }
 0x115   : > { %1273 = vrot.lane.b32.xlu0 %v4944_v13, %s4117_s25  ;;  %1271 = vrot.lane.b32.xlu2 %v4952_v40, %s4117_s25 }
 0x116   : > { %v1043_v2 = vpop.permute.xlu1 %1042 }
 0x117   : > { %1119 = vst.msk [vmem:[#allocation2 + $0x50] sm:$0xf] %vm1098_vm8, %v1043_v2  ;;  %v1041_v35 = vpop.permute.xlu0 %1040  ;;  %v1057_v15 = vpop.permute.xlu2 %1056  ;;  %v1408_v2 = vrot.slane %v1406_v9, 4 }
 0x118   : > { %1118 = vst.msk [vmem:[#allocation2 + $0x4c] sm:$0xf] %vm1098_vm8, %v1041_v35  ;;  %v1465_v35 = vshrl.u32 %v4830_v24, 16 }
 0x119   : > { %1126 = vst.msk [vmem:[#allocation2 + $0x6c] sm:$0xf] %vm1098_vm8, %v1057_v15  ;;  %v1441_v15 = vshrl.u32 %v4806_v11, 16  ;;  %v1409_v9 = vor.u32 %v1408_v2, %v1404_v47  ;;  %v5019_v47 = vld [vmem:[%s4172_s22 + $0x44] sm:$0x1]  ;;  %v1489_v2 = vshrl.u32 %v4821_v53, 16 }
 0x11a   : > { %v1467_v7 = vrot.slane %v1465_v35, 4  ;;  %v1498_v35 = vshll.u32 %v4848_v41, 16 }
 0x11b   : > { %v1443_v59 = vrot.slane %v1441_v15, 4 }
 0x11c   : > { %1730 = vrot.lane.b32.xlu1 %v1367_v22, %s4118_s26 }
 0x11d   : > { %1728 = vrot.lane.b32.xlu0 %v1357_v49, %s4118_s26  ;;  %1277 = vrot.lane.b32.xlu2 %v4980_v23, %s4117_s25  ;;  %v1423_v49 = vor.u32 %v1422_v18, %v1419_v16  ;;  %v1438_v16 = vrot.slane %v1436_v39, 5  ;;  %v5014_v18 = vrot.slane %v1450_v0, 5  ;;  %v1410_v0 = vrot.slane %v1409_v9, 4 }
 0x11e   : > { %v1049_v21 = vpop.permute.xlu1 %1048  ;;  %v1471_v39 = vor.u32 %v1470_v3, %v1467_v7  ;;  %v1491_v9 = vrot.slane %v1489_v2, 4  ;;  %v5039_v3 = vrot.slane %v1498_v35, 5 }
 0x11f   : > { %1122 = vst.msk [vmem:[#allocation2 + $0x5c] sm:$0xf] %vm1098_vm8, %v1049_v21  ;;  %v1047_v33 = vpop.permute.xlu0 %1046  ;;  %v1063_v22 = vpop.permute.xlu2 %1062  ;;  %v1434_v21 = vrot.slane %v1433_v37, 4  ;;  %v1415_v7 = vsel %vm4208_vm2, %v1410_v0, %v1414_v43  ;;  %v1513_v0 = vshrl.u32 %v4842_v30, 16  ;;  %v1480_v43 = vrot.slane %v1478_v14, 4 }
 0x120   : > { %1121 = vst.msk [vmem:[#allocation2 + $0x58] sm:$0xf] %vm1098_vm8, %v1047_v33 }
 0x121   : > { %1129 = vst.msk [vmem:[#allocation2 + $0x78] sm:$0xf] %vm1098_vm8, %v1063_v22  ;;  %v1446_v22 = vrot.slane %v1444_v46, 5  ;;  %v1439_v37 = vsel %vm4208_vm2, %v1434_v21, %v1438_v16  ;;  %v1457_v46 = vor.u32 %v1456_v5, %v5014_v18  ;;  %v1504_v21 = vrot.slane %v1502_v32, 4 }
 0x122   : > { %v1476_v16 = vrot.slane %v1474_v44, 5  ;;  %v1636_v32 = vshll.u32 %v4893_v28, 16  ;;  %v1540_v44 = vshll.u32 %v4866_v8, 16 }
 0x124   : > { %1736 = vrot.lane.b32.xlu1 %v1405_v4, %s4118_s26  ;;  %v1424_v4 = vrot.slane %v1423_v49, 4 }
 0x125   : > { %1734 = vrot.lane.b32.xlu0 %v1391_v29, %s4118_s26  ;;  %1732 = vrot.lane.b32.xlu2 %v1381_v19, %s4118_s26  ;;  %v1492_v29 = vshll.u32 %v4821_v53, 16  ;;  %v1460_v19 = vshll.u32 %v5019_v47, 16  ;;  %v1447_v53 = vor.u32 %v1446_v22, %v1443_v59  ;;  %v1516_v59 = vshll.u32 %v4842_v30, 16 }
 0x126   : > { %v1055_v33 = vpop.permute.xlu1 %1054  ;;  %v1429_v49 = vsel %vm4208_vm2, %v1424_v4, %v4982_v12  ;;  %v1472_v12 = vrot.slane %v1471_v39, 4  ;;  %v1633_v22 = vshrl.u32 %v4893_v28, 16  ;;  %v1537_v39 = vshrl.u32 %v4866_v8, 16 }
 0x127   : > { %1125 = vst.msk [vmem:[#allocation2 + $0x68] sm:$0xf] %vm1098_vm8, %v1055_v33  ;;  %v1053_v51 = vpop.permute.xlu0 %1052  ;;  %v1218_v15 = vpop.permute.xlu2 %1217  ;;  %v1494_v5 = vrot.slane %v1492_v29, 5  ;;  %v1522_v33 = vshll.u32 %v4839_v36, 16  ;;  %v1462_v2 = vrot.slane %v1460_v19, 5  ;;  %v1505_v29 = vor.u32 %v1504_v21, %v5039_v3 }
 0x128   : > { %1124 = vst.msk [vmem:[#allocation2 + $0x64] sm:$0xf] %vm1098_vm8, %v1053_v51  ;;  %v1458_v51 = vrot.slane %v1457_v46, 4  ;;  %v1477_v30 = vsel %vm4208_vm2, %v1472_v12, %v1476_v16  ;;  %v5061_v19 = vld [vmem:[%s4172_s22 + $0x50] sm:$0x1]  ;;  %v5068_v8 = vrot.slane %v1513_v0, 4 }
 0x129   : > { %1313 = vst.msk [vmem:[#allocation2 + $0x4] sm:$0xf] %vm1311_vm9, %v1218_v15  ;;  %v5044_v15 = vld [vmem:[%s4172_s22 + $0x5c] sm:$0x1]  ;;  %v5063_v14 = vrot.slane %v1522_v33, 5  ;;  %v1635_v12 = vrot.slane %v1633_v22, 4 }
 0x12a   : > { %6262 = vst [vmem:[#allocation11_spill] sm:$0xff] %v5044_v15  ;;  %v1463_v28 = vsel %vm4208_vm2, %v1458_v51, %v1462_v2  ;;  %v1638_v21 = vrot.slane %v1636_v32, 5  ;;  %v1506_v51 = vrot.slane %v1505_v29, 4  ;;  %v1564_v0 = vshll.u32 %v4857_v25, 16 }
 0x12c   : > { %1742 = vrot.lane.b32.xlu1 %v1439_v37, %s4118_s26  ;;  %v1526_v37 = vshrl.u32 %v4839_v36, 16  ;;  %v1448_v36 = vrot.slane %v1447_v53, 4 }
 0x12d   : > { %1740 = vrot.lane.b32.xlu0 %v1429_v49, %s4118_s26  ;;  %1738 = vrot.lane.b32.xlu2 %v1415_v7, %s4118_s26  ;;  %v1508_v49 = vshll.u32 %v5044_v15, 16  ;;  %v1495_v7 = vor.u32 %v1494_v5, %v1491_v9  ;;  %v1484_v15 = vshll.u32 %v5061_v19, 16  ;;  %v1539_v9 = vrot.slane %v1537_v39, 4  ;;  %v5086_v39 = vld [vmem:[%s4172_s22 + $0x68] sm:$0x1] }
 0x12e   : > { %v1061_v4 = vpop.permute.xlu1 %1060  ;;  %v1528_v53 = vrot.slane %v1526_v37, 4  ;;  %v1453_v33 = vsel %vm4208_vm2, %v1448_v36, %v5014_v18  ;;  %v1542_v5 = vrot.slane %v1540_v44, 5  ;;  %v1561_v37 = vshrl.u32 %v4857_v25, 16 }
 0x12f   : > { %1128 = vst.msk [vmem:[#allocation2 + $0x74] sm:$0xf] %vm1098_vm8, %v1061_v4  ;;  %v1059_v35 = vpop.permute.xlu0 %1058  ;;  %v1224_v46 = vpop.permute.xlu2 %1223  ;;  %v5070_v4 = vrot.slane %v1516_v59, 5  ;;  %v1510_v2 = vrot.slane %v1508_v49, 5  ;;  %v1585_v59 = vshrl.u32 %v4878_v17, 16  ;;  %v1496_v32 = vrot.slane %v1495_v7, 4 }
 0x130   : > { %1127 = vst.msk [vmem:[#allocation2 + $0x70] sm:$0xf] %vm1098_vm8, %v1059_v35  ;;  %v1481_v35 = vor.u32 %v1480_v43, %v1476_v16  ;;  %v1588_v18 = vshll.u32 %v4878_v17, 16  ;;  %v1642_v16 = vshll.u32 %v4924_v52, 16  ;;  %v1570_v36 = vshll.u32 %v4884_v34, 16 }
 0x131   : > { %1316 = vst.msk [vmem:[#allocation2 + $0x10] sm:$0xf] %vm1311_vm9, %v1224_v46  ;;  %v1574_v44 = vshrl.u32 %v4884_v34, 16  ;;  %v1511_v29 = vsel %vm4208_vm2, %v1506_v51, %v1510_v2  ;;  %v1543_v49 = vor.u32 %v1542_v5, %v1539_v9  ;;  %v1546_v46 = vshll.u32 %v4860_v20, 16 }
 0x132   : > { %v1482_v25 = vrot.slane %v1481_v35, 4  ;;  %v1639_v7 = vor.u32 %v1638_v21, %v1635_v12  ;;  %v1529_v41 = vor.u32 %v1528_v53, %v5063_v14  ;;  %v1532_v34 = vshll.u32 %v5086_v39, 16 }
 0x133   : > { %v1587_v35 = vrot.slane %v1585_v59, 4  ;;  %v5101_v51 = vrot.slane %v1642_v16, 5  ;;  %v1590_v12 = vrot.slane %v1588_v18, 5  ;;  %v5105_v21 = vrot.slane %v1570_v36, 5  ;;  %v5119_v36 = vld [vmem:[%s4172_s22 + $0x80] sm:$0x1] }
 0x134   : > { %1748 = vrot.lane.b32.xlu1 %v1477_v30, %s4118_s26  ;;  %v1486_v30 = vrot.slane %v1484_v15, 5  ;;  %v1550_v15 = vshrl.u32 %v4860_v20, 16  ;;  %v5103_v9 = vrot.slane %v1639_v7, 4  ;;  %v1519_v53 = vor.u32 %v5070_v4, %v5068_v8 }
 0x135   : > { %1746 = vrot.lane.b32.xlu0 %v1463_v28, %s4118_s26  ;;  %1744 = vrot.lane.b32.xlu2 %v1453_v33, %s4118_s26  ;;  %v1501_v33 = vsel %vm4208_vm2, %v1496_v32, %v5039_v3  ;;  %v1576_v5 = vrot.slane %v1574_v44, 4  ;;  %v1544_v20 = vrot.slane %v1543_v49, 4  ;;  %v1548_v2 = vrot.slane %v1546_v46, 5 }
 0x136   : > { %v1216_v22 = vpop.permute.xlu1 %1215  ;;  %v1487_v3 = vsel %vm4208_vm2, %v1482_v25, %v1486_v30  ;;  %v1566_v59 = vrot.slane %v1564_v0, 5  ;;  %v1594_v32 = vshll.u32 %v4875_v45, 16  ;;  %v1530_v16 = vrot.slane %v1529_v41, 4 }
 0x137   : > { %1312 = vst.msk [vmem:[#allocation2] sm:$0xf] %vm1311_vm9, %v1216_v22  ;;  %v1065_v43 = vpop.permute.xlu0 %1064  ;;  %v1230_v28 = vpop.permute.xlu2 %1229  ;;  %v1563_v22 = vrot.slane %v1561_v37, 4  ;;  %v1645_v37 = vsel %vm4208_vm2, %v5103_v9, %v5101_v51  ;;  %v1552_v25 = vrot.slane %v1550_v15, 4  ;;  %v1705_v8 = vshrl.u32 %v4938_v55, 16 }
 0x138   : > { %1130 = vst.msk [vmem:[#allocation2 + $0x7c] sm:$0xf] %vm1098_vm8, %v1065_v43  ;;  %v1534_v43 = vrot.slane %v1532_v34, 5  ;;  %v1708_v4 = vshll.u32 %v4938_v55, 16  ;;  %v1598_v0 = vshrl.u32 %v4875_v45, 16  ;;  %v1609_v30 = vshrl.u32 %v4902_v1, 16 }
 0x139   : > { %1319 = vst.msk [vmem:[#allocation2 + $0x1c] sm:$0xf] %vm1311_vm9, %v1230_v28  ;;  %v1520_v41 = vrot.slane %v1519_v53, 4  ;;  %v1612_v49 = vshll.u32 %v4902_v1, 16  ;;  %v1549_v46 = vsel %vm4208_vm2, %v1544_v20, %v1548_v2  ;;  %v1577_v55 = vor.u32 %v1576_v5, %v5105_v21 }
 0x13a   : > { %v1580_v28 = vshll.u32 %v5119_v36, 16  ;;  %v5136_v34 = vrot.slane %v1594_v32, 5  ;;  %v1535_v15 = vsel %vm4208_vm2, %v1530_v16, %v1534_v43  ;;  %v1707_v1 = vrot.slane %v1705_v8, 4 }
 0x13b   : > { %v1525_v53 = vsel %vm4208_vm2, %v1520_v41, %v5063_v14  ;;  %v1553_v5 = vor.u32 %v1552_v25, %v1548_v2  ;;  %v1614_v32 = vrot.slane %v1612_v49, 5  ;;  %v1600_v43 = vrot.slane %v1598_v0, 4 }
 0x13c   : > { %1754 = vrot.lane.b32.xlu1 %v1511_v29, %s4118_s26  ;;  %v1591_v29 = vor.u32 %v1590_v12, %v1587_v35  ;;  %v1710_v12 = vrot.slane %v1708_v4, 5  ;;  %v1582_v16 = vrot.slane %v1580_v28, 5  ;;  %v1657_v14 = vshrl.u32 %v4918_v10, 16 }
 0x13d   : > { %1752 = vrot.lane.b32.xlu0 %v1501_v33, %s4118_s26  ;;  %1750 = vrot.lane.b32.xlu2 %v1487_v3, %s4118_s26  ;;  %v5134_v33 = vld [vmem:[%s4172_s22 + $0x74] sm:$0x1]  ;;  %v1567_v3 = vor.u32 %v1566_v59, %v1563_v22  ;;  %v1611_v59 = vrot.slane %v1609_v30, 4  ;;  %v1714_v2 = vshll.u32 %v4980_v23, 16  ;;  %v1660_v30 = vshll.u32 %v4918_v10, 16 }
 0x13e   : > { %v1222_v18 = vpop.permute.xlu1 %1221  ;;  %v5141_v35 = vrot.slane %v1591_v29, 4  ;;  %v1556_v20 = vshll.u32 %v5134_v33, 16  ;;  %v1646_v41 = vshrl.u32 %v4924_v52, 16  ;;  %v1554_v0 = vrot.slane %v1553_v5, 4 }
 0x13f   : > { %1315 = vst.msk [vmem:[#allocation2 + $0xc] sm:$0xf] %vm1311_vm9, %v1222_v18  ;;  %v1220_v44 = vpop.permute.xlu0 %1219  ;;  %v1236_v7 = vpop.permute.xlu2 %1235  ;;  %v1578_v18 = vrot.slane %v1577_v55, 4  ;;  %v1568_v4 = vrot.slane %v1567_v3, 4  ;;  %v1618_v55 = vshll.u32 %v4896_v6, 16  ;;  %v1601_v3 = vor.u32 %v1600_v43, %v5136_v34 }
 0x140   : > { %1314 = vst.msk [vmem:[#allocation2 + $0x8] sm:$0xf] %vm1311_vm9, %v1220_v44  ;;  %v1597_v22 = vsel %vm4208_vm2, %v5141_v35, %v5136_v34  ;;  %v5158_v44 = vld [vmem:[%s4172_s22 + $0x8c] sm:$0x1]  ;;  %v1558_v29 = vrot.slane %v1556_v20, 5  ;;  %v1622_v20 = vshrl.u32 %v4896_v6, 16 }
 0x141   : > { %1322 = vst.msk [vmem:[#allocation2 + $0x28] sm:$0xf] %vm1311_vm9, %v1236_v7  ;;  %v1583_v49 = vsel %vm4208_vm2, %v1578_v18, %v1582_v16  ;;  %v1711_v7 = vor.u32 %v1710_v12, %v1707_v1  ;;  %v1604_v52 = vshll.u32 %v5158_v44, 16  ;;  %v1648_v1 = vrot.slane %v1646_v41, 4 }
 0x142   : > { %v1620_v18 = vrot.slane %v1618_v55, 5  ;;  %v1666_v43 = vshll.u32 %v4913_v60, 16  ;;  %v1694_v35 = vshrl.u32 %v4944_v13, 16 }
 0x143   : > { %v5174_v5 = vrot.slane %v1711_v7, 4 }
 0x144   : > { %1760 = vrot.lane.b32.xlu1 %v1549_v46, %s4118_s26  ;;  %v1615_v46 = vor.u32 %v1614_v32, %v1611_v59  ;;  %v1659_v59 = vrot.slane %v1657_v14, 4  ;;  %v1662_v32 = vrot.slane %v1660_v30, 5  ;;  %v5187_v14 = vld [vmem:[%s4172_s22 + $0xa4] sm:$0x1]  ;;  %v1681_v30 = vshrl.u32 %v4952_v40, 16 }
 0x145   : > { %1758 = vrot.lane.b32.xlu0 %v1535_v15, %s4118_s26  ;;  %1756 = vrot.lane.b32.xlu2 %v1525_v53, %s4118_s26  ;;  %v1573_v15 = vsel %vm4208_vm2, %v1568_v4, %v5105_v21  ;;  %v5172_v53 = vrot.slane %v1714_v2, 5  ;;  %v1559_v21 = vsel %vm4208_vm2, %v1554_v0, %v1558_v29  ;;  %v1606_v4 = vrot.slane %v1604_v52, 5 }
 0x146   : > { %v1228_v8 = vpop.permute.xlu1 %1227  ;;  %v1616_v12 = vrot.slane %v1615_v46, 4  ;;  %v1663_v41 = vor.u32 %v1662_v32, %v1659_v59  ;;  %v1684_v0 = vshll.u32 %v4952_v40, 16  ;;  %v1652_v46 = vshll.u32 %v5187_v14, 16 }
 0x147   : > { %1318 = vst.msk [vmem:[#allocation2 + $0x18] sm:$0xf] %vm1311_vm9, %v1228_v8  ;;  %v1226_v25 = vpop.permute.xlu0 %1225  ;;  %v1242_v28 = vpop.permute.xlu2 %1241  ;;  %v1717_v16 = vsel %vm4208_vm2, %v5174_v5, %v5172_v53  ;;  %v1602_v8 = vrot.slane %v1601_v3, 4  ;;  %v5201_v7 = vrot.slane %v1666_v43, 5  ;;  %v1683_v32 = vrot.slane %v1681_v30, 4 }
 0x148   : > { %1317 = vst.msk [vmem:[#allocation2 + $0x14] sm:$0xf] %vm1311_vm9, %v1226_v25  ;;  %v1624_v25 = vrot.slane %v1622_v20, 4  ;;  %v1621_v29 = vsel %vm4208_vm2, %v1616_v12, %v1620_v18  ;;  %v1664_v40 = vrot.slane %v1663_v41, 4  ;;  %v1654_v12 = vrot.slane %v1652_v46, 5 }
 0x149   : > { %1325 = vst.msk [vmem:[#allocation2 + $0x34] sm:$0xf] %vm1311_vm9, %v1242_v28  ;;  %v5199_v28 = vld [vmem:[%s4172_s22 + $0x98] sm:$0x1]  ;;  %v1607_v3 = vsel %vm4208_vm2, %v1602_v8, %v1606_v4 }
 0x14a   : > { %v1625_v52 = vor.u32 %v1624_v25, %v1620_v18  ;;  %v1628_v20 = vshll.u32 %v5199_v28, 16  ;;  %v1669_v59 = vsel %vm4208_vm2, %v1664_v40, %v5201_v7  ;;  %v5221_v18 = vld [vmem:[%s4172_s22 + $0xb0] sm:$0x1]  ;;  %v1718_v25 = vshrl.u32 %v4980_v23, 16 }
 0x14b   : > { %v1676_v34 = vshll.u32 %v5221_v18, 16 }
 0x14c   : > { %1766 = vrot.lane.b32.xlu1 %v1583_v49, %s4118_s26  ;;  %v1649_v49 = vor.u32 %v1648_v1, %v5101_v51  ;;  %v1626_v4 = vrot.slane %v1625_v52, 4  ;;  %v1696_v52 = vrot.slane %v1694_v35, 4  ;;  %v1878_v35 = vrot.slane %v4929_v58, 5 }
 0x14d   : > { %1764 = vrot.lane.b32.xlu0 %v1573_v15, %s4118_s26  ;;  %1762 = vrot.lane.b32.xlu2 %v1559_v21, %s4118_s26  ;;  %v1670_v15 = vshrl.u32 %v4913_v60, 16  ;;  %v1686_v21 = vrot.slane %v1684_v0, 5  ;;  %v1690_v0 = vshll.u32 %v4944_v13, 16  ;;  %v3744_v13 = vld [vmem:[%s4172_s22 + $0xc8] sm:$0x1] }
 0x14e   : > { %v1234_v6 = vpop.permute.xlu1 %1233  ;;  %v1650_v1 = vrot.slane %v1649_v49, 4  ;;  %v1724_v9 = vshll.u32 %v3744_v13, 16  ;;  %v1885_v13 = vrot.slane %v4962_v42, 5 }
 0x14f   : > { %1321 = vst.msk [vmem:[#allocation2 + $0x24] sm:$0xf] %vm1311_vm9, %v1234_v6  ;;  %v1232_v2 = vpop.permute.xlu0 %1231  ;;  %v1248_v55 = vpop.permute.xlu2 %1247  ;;  %v1672_v43 = vrot.slane %v1670_v15, 4  ;;  %v1687_v41 = vor.u32 %v1686_v21, %v1683_v32  ;;  %v3741_v32 = vld [vmem:[%s4172_s22 + $0xbc] sm:$0x1] }
 0x150   : > { %1320 = vst.msk [vmem:[#allocation2 + $0x20] sm:$0xf] %vm1311_vm9, %v1232_v2  ;;  %v1630_v2 = vrot.slane %v1628_v20, 5  ;;  %v1655_v30 = vsel %vm4208_vm2, %v1650_v1, %v1654_v12  ;;  %v1700_v12 = vshll.u32 %v3741_v32, 16 }
 0x151   : > { %1328 = vst.msk [vmem:[#allocation2 + $0x40] sm:$0xf] %vm1311_vm9, %v1248_v55  ;;  %v1673_v49 = vor.u32 %v1672_v43, %v5201_v7  ;;  %v1688_v46 = vrot.slane %v1687_v41, 4  ;;  %v1692_v55 = vrot.slane %v1690_v0, 5  ;;  %v1875_v0 = vrot.slane %v4776_v63, 5 }
 0x152   : > { %v1631_v23 = vsel %vm4208_vm2, %v1626_v4, %v1630_v2 }
 0x153   : > { %v1674_v15 = vrot.slane %v1673_v49, 4  ;;  %v1693_v20 = vsel %vm4208_vm2, %v1688_v46, %v1692_v55  ;;  %v1697_v1 = vor.u32 %v1696_v52, %v1692_v55  ;;  %v1882_v49 = vrot.slane %v4767_v61, 5 }
 0x154   : > { %1772 = vrot.lane.b32.xlu1 %v1621_v29, %s4118_s26  ;;  %v1877_v63 = vrot.slane %v1875_v0, 4 }
 0x155   : > { %1770 = vrot.lane.b32.xlu0 %v1607_v3, %s4118_s26  ;;  %1768 = vrot.lane.b32.xlu2 %v1597_v22, %s4118_s26  ;;  %v1720_v22 = vrot.slane %v1718_v25, 4  ;;  %v1678_v3 = vrot.slane %v1676_v34, 5  ;;  %v1698_v2 = vrot.slane %v1697_v1, 4  ;;  %v1702_v25 = vrot.slane %v1700_v12, 5 }
 0x156   : > { %v1240_v6 = vpop.permute.xlu1 %1239  ;;  %v1879_v61 = vsel %vm4526_vm6, %v1877_v63, %v1878_v35  ;;  %v3758_v63 = vrot.slane %v4918_v10, 9  ;;  %v4074_v35 = vld [vmem:[%s4172_s22 + $0x60] sm:$0xf]  ;;  %v4076_v10 = vld [vmem:[%s4172_s22 + $0x54] sm:$0xf] }
 0x157   : > { %1324 = vst.msk [vmem:[#allocation2 + $0x30] sm:$0xf] %vm1311_vm9, %v1240_v6  ;;  %v1238_v8 = vpop.permute.xlu0 %1237  ;;  %v1254_v29 = vpop.permute.xlu2 %1253  ;;  %v1721_v51 = vor.u32 %v1720_v22, %v5172_v53  ;;  %v1679_v21 = vsel %vm4208_vm2, %v1674_v15, %v1678_v3  ;;  %v1726_v6 = vrot.slane %v1724_v9, 5  ;;  %v4072_v22 = vld [vmem:[%s4172_s22 + $0xc] sm:$0xf]  ;;  %v1889_v53 = vrot.slane %v4788_v31, 5 }
 0x158   : > { %1323 = vst.msk [vmem:[#allocation2 + $0x2c] sm:$0xf] %vm1311_vm9, %v1238_v8  ;;  %v3745_v46 = vrot.slane %v4072_v22, 9  ;;  %v1892_v31 = vrot.slane %v5000_v57, 5  ;;  %v1884_v3 = vrot.slane %v1882_v49, 4  ;;  %v3749_v9 = vrot.slane %v4806_v11, 9 }
 0x159   : > { %1331 = vst.msk [vmem:[#allocation2 + $0x4c] sm:$0xf] %vm1311_vm9, %v1254_v29  ;;  %v1722_v43 = vrot.slane %v1721_v51, 4  ;;  %v1703_v29 = vsel %vm4208_vm2, %v1698_v2, %v1702_v25  ;;  %v3755_v51 = vrot.slane %v4878_v17, 9  ;;  %v4073_v17 = vld [vmem:[%s4172_s22 + $0x30] sm:$0xf] }
 0x15a   : > { %v1876_v58 = vsel %vm4526_vm6, %v3745_v46, %v1875_v0  ;;  %v1886_v42 = vsel %vm4526_vm6, %v1884_v3, %v1885_v13  ;;  %v3748_v12 = vrot.slane %v4073_v17, 9  ;;  %v3750_v25 = vrot.slane %v4830_v24, 9  ;;  %v4075_v22 = vld [vmem:[%s4172_s22 + $0x64] sm:$0xf] }
 0x15b   : > { %v1906_v0 = vrot.slane %v5019_v47, 5  ;;  %v1924_v46 = vrot.slane %v4075_v22, 5 }
 0x15c   : > { %1778 = vrot.lane.b32.xlu1 %v1655_v30, %s4118_s26  ;;  %v1727_v30 = vsel %vm4208_vm2, %v1722_v43, %v1726_v6 }
 0x15d   : > { %1776 = vrot.lane.b32.xlu0 %v1645_v37, %s4118_s26  ;;  %1774 = vrot.lane.b32.xlu2 %v1631_v23, %s4118_s26 }
 0x15e   : > { %v1246_v7 = vpop.permute.xlu1 %1245 }
 0x15f   : > { %1327 = vst.msk [vmem:[#allocation2 + $0x3c] sm:$0xf] %vm1311_vm9, %v1246_v7  ;;  %v1244_v40 = vpop.permute.xlu0 %1243  ;;  %v1260_v37 = vpop.permute.xlu2 %1259  ;;  %v3747_v7 = vrot.slane %v4794_v38, 9  ;;  %v1945_v38 = vrot.slane %v4875_v45, 5 }
 0x160   : > { %1326 = vst.msk [vmem:[#allocation2 + $0x38] sm:$0xf] %vm1311_vm9, %v1244_v40 }
 0x161   : > { %1334 = vst.msk [vmem:[#allocation2 + $0x58] sm:$0xf] %vm1311_vm9, %v1260_v37  ;;  %v1890_v57 = vsel %vm4526_vm6, %v3747_v7, %v1889_v53  ;;  %v5316_v11 = vsel %vm4526_vm6, %v3755_v51, %v1945_v38  ;;  %v4078_v51 = vld [vmem:[%s4172_s22 + $0x6c] sm:$0xf] }
 0x164   : > { %1784 = vrot.lane.b32.xlu1 %v1693_v20, %s4118_s26  ;;  %v1896_v20 = vrot.slane %v4812_v50, 5  ;;  %v1903_v50 = vrot.slane %v4803_v54, 5  ;;  %v1910_v54 = vrot.slane %v4824_v26, 5  ;;  %v1913_v26 = vrot.slane %v5061_v19, 5  ;;  %v6263_v19 = vld [vmem:[#allocation12_spill] sm:$0xff] }
 0x165   : > { %1782 = vrot.lane.b32.xlu0 %v1679_v21, %s4118_s26  ;;  %1780 = vrot.lane.b32.xlu2 %v1669_v59, %s4118_s26  ;;  %v3746_v59 = vrot.slane %v4770_v56, 9  ;;  %v1899_v21 = vrot.slane %v4986_v48, 5 }
 0x166   : > { %v1252_v8 = vpop.permute.xlu1 %1251  ;;  %v1898_v32 = vrot.slane %v1896_v20, 4  ;;  %v1904_v48 = vsel %vm4526_vm6, %v3749_v9, %v1903_v50  ;;  %v1911_v24 = vsel %vm4526_vm6, %v3750_v25, %v1910_v54 }
 0x167   : > { %1330 = vst.msk [vmem:[#allocation2 + $0x48] sm:$0xf] %vm1311_vm9, %v1252_v8  ;;  %v1250_v4 = vpop.permute.xlu0 %1249  ;;  %v1266_v41 = vpop.permute.xlu2 %1265  ;;  %v1883_v56 = vsel %vm4526_vm6, %v3746_v59, %v1882_v49  ;;  %v1897_v8 = vsel %vm4526_vm6, %v3748_v12, %v1896_v20  ;;  %v1917_v49 = vrot.slane %v6263_v19, 5  ;;  %v1934_v20 = vrot.slane %v5134_v33, 5 }
 0x168   : > { %1329 = vst.msk [vmem:[#allocation2 + $0x44] sm:$0xf] %vm1311_vm9, %v1250_v4  ;;  %v1900_v6 = vsel %vm4526_vm6, %v1898_v32, %v1899_v21  ;;  %v1912_v4 = vrot.slane %v1910_v54, 4 }
 0x169   : > { %1337 = vst.msk [vmem:[#allocation2 + $0x64] sm:$0xf] %vm1311_vm9, %v1266_v41  ;;  %v1905_v41 = vrot.slane %v1903_v50, 4  ;;  %v1926_v50 = vrot.slane %v1924_v46, 4 }
 0x16b   : > { %v1907_v47 = vsel %vm4526_vm6, %v1905_v41, %v1906_v0  ;;  %v4083_v41 = vld [vmem:[%s4172_s22 + $0xa0] sm:$0xf] }
 0x16c   : > { %1790 = vrot.lane.b32.xlu1 %v1727_v30, %s4118_s26  ;;  %v1959_v0 = vrot.slane %v4083_v41, 5  ;;  %v5480_v41 = vld [vmem:[%s4172_s22 + $0x28] sm:$0xf] }
 0x16d   : > { %1788 = vrot.lane.b32.xlu0 %v1717_v16, %s4118_s26  ;;  %1786 = vrot.lane.b32.xlu2 %v1703_v29, %s4118_s26  ;;  %v1891_v16 = vrot.slane %v1889_v53, 4  ;;  %v1914_v29 = vsel %vm4526_vm6, %v1912_v4, %v1913_v26  ;;  %v4081_v4 = vld [vmem:[%s4172_s22 + $0x78] sm:$0xf] }
 0x16e   : > { %v1258_v34 = vpop.permute.xlu1 %1257  ;;  %v3754_v26 = vrot.slane %v4081_v4, 9 }
 0x16f   : > { %1333 = vst.msk [vmem:[#allocation2 + $0x54] sm:$0xf] %vm1311_vm9, %v1258_v34  ;;  %v1256_v23 = vpop.permute.xlu0 %1255  ;;  %v1272_v5 = vpop.permute.xlu2 %1271  ;;  %v1893_v40 = vsel %vm4526_vm6, %v1891_v16, %v1892_v31  ;;  %v1966_v34 = vrot.slane %v4913_v60, 5  ;;  %v3751_v16 = vrot.slane %v4076_v10, 9 }
 0x170   : > { %1332 = vst.msk [vmem:[#allocation2 + $0x50] sm:$0xf] %vm1311_vm9, %v1256_v23  ;;  %v3752_v23 = vrot.slane %v4074_v35, 9 }
 0x171   : > { %1340 = vst.msk [vmem:[#allocation2 + $0x70] sm:$0xf] %vm1311_vm9, %v1272_v5  ;;  %v6264_v5 = vld [vmem:[#allocation11_spill] sm:$0xff]  ;;  %v5357_v31 = vsel %vm4526_vm6, %v3758_v63, %v1966_v34 }
 0x174   : > { %1989 = vrot.lane.b32.xlu1 %v1883_v56, %s4119_s27  ;;  %v1919_v56 = vrot.slane %v1917_v49, 4 }
 0x175   : > { %1987 = vrot.lane.b32.xlu0 %v1879_v61, %s4119_s27  ;;  %1985 = vrot.lane.b32.xlu2 %v1876_v58, %s4119_s27  ;;  %v1920_v61 = vrot.slane %v6264_v5, 5 }
 0x176   : > { %v1264_v55 = vpop.permute.xlu1 %1263 }
 0x177   : > { %1336 = vst.msk [vmem:[#allocation2 + $0x60] sm:$0xf] %vm1311_vm9, %v1264_v55  ;;  %v1262_v15 = vpop.permute.xlu0 %1261  ;;  %v1278_v52 = vpop.permute.xlu2 %1277  ;;  %v4077_v55 = vld [vmem:[%s4172_s22 + $0x70] sm:$0xf]  ;;  %v1921_v13 = vsel %vm4526_vm6, %v1919_v56, %v1920_v61  ;;  %v5422_v56 = vld [vmem:[%s4172_s22 + $0x1c] sm:$0xf] }
 0x178   : > { %1335 = vst.msk [vmem:[#allocation2 + $0x5c] sm:$0xf] %vm1311_vm9, %v1262_v15  ;;  %v1931_v7 = vrot.slane %v4077_v55, 5  ;;  %v1925_v15 = vsel %vm4526_vm6, %v3752_v23, %v1924_v46  ;;  %v1948_v23 = vrot.slane %v5158_v44, 5  ;;  %v1962_v44 = vrot.slane %v5187_v14, 5 }
 0x179   : > { %1343 = vst.msk [vmem:[#allocation2 + $0x7c] sm:$0xf] %vm1311_vm9, %v1278_v52  ;;  %v5426_v61 = vld [vmem:[%s4172_s22 + $0x18] sm:$0xf]  ;;  %v2337_v10 = vshll.u32 %v5422_v56, 16 }
 0x17a   : > { %v1933_v52 = vrot.slane %v1931_v7, 4  ;;  %v2328_v55 = vshrl.u32 %v5426_v61, 16 }
 0x17c   : > { %1995 = vrot.lane.b32.xlu1 %v1893_v40, %s4119_s27  ;;  %v1918_v40 = vsel %vm4526_vm6, %v3751_v16, %v1917_v49  ;;  %v1935_v32 = vsel %vm4526_vm6, %v1933_v52, %v1934_v20  ;;  %v1955_v49 = vrot.slane %v5199_v28, 5  ;;  %v2341_v16 = vshrl.u32 %v5422_v56, 16  ;;  %v4086_v52 = vld [vmem:[%s4172_s22 + $0xb4] sm:$0xf] }
 0x17d   : > { %1993 = vrot.lane.b32.xlu0 %v1890_v57, %s4119_s27  ;;  %1991 = vrot.lane.b32.xlu2 %v1886_v42, %s4119_s27  ;;  %v3753_v42 = vrot.slane %v4078_v51, 9  ;;  %v3759_v20 = vrot.slane %v4086_v52, 9  ;;  %v2330_v51 = vrot.slane %v2328_v55, 4 }
 0x17e   : > { %v1270_v37 = vpop.permute.xlu1 %1269 }
 0x17f   : > { %1339 = vst.msk [vmem:[#allocation2 + $0x6c] sm:$0xf] %vm1311_vm9, %v1270_v37  ;;  %v1268_v1 = vpop.permute.xlu0 %1267  ;;  %v1733_v43 = vpop.permute.xlu2 %1732  ;;  %v1927_v37 = vrot.slane %v5086_v39, 5  ;;  %v1932_v17 = vsel %vm4526_vm6, %v3753_v42, %v1931_v7  ;;  %v2331_v7 = vshll.u32 %v5426_v61, 16 }
 0x180   : > { %1338 = vst.msk [vmem:[#allocation2 + $0x68] sm:$0xf] %vm1311_vm9, %v1268_v1  ;;  %v4079_v1 = vld [vmem:[%s4172_s22 + $0x7c] sm:$0xf] }
 0x181   : > { %1827 = vst.msk [vmem:[#allocation2 + $0x8] sm:$0xf] %vm1824_vm10, %v1733_v43  ;;  %v1938_v33 = vrot.slane %v4079_v1, 5  ;;  %v1928_v12 = vsel %vm4526_vm6, %v1926_v50, %v1927_v37  ;;  %v2333_v42 = vrot.slane %v2331_v7, 5  ;;  %v1969_v37 = vrot.slane %v5221_v18, 5 }
 0x183   : > { %v1940_v54 = vrot.slane %v1938_v33, 4 }
 0x184   : > { %2001 = vrot.lane.b32.xlu1 %v1904_v48, %s4119_s27  ;;  %v1941_v48 = vrot.slane %v5119_v36, 5 }
 0x185   : > { %1999 = vrot.lane.b32.xlu0 %v1900_v6, %s4119_s27  ;;  %1997 = vrot.lane.b32.xlu2 %v1897_v8, %s4119_s27  ;;  %v4080_v6 = vld [vmem:[%s4172_s22 + $0x9c] sm:$0xf] }
 0x186   : > { %v1276_v2 = vpop.permute.xlu1 %1275  ;;  %v3757_v8 = vrot.slane %v4080_v6, 9  ;;  %v1942_v36 = vsel %vm4526_vm6, %v1940_v54, %v1941_v48 }
 0x187   : > { %1342 = vst.msk [vmem:[#allocation2 + $0x78] sm:$0xf] %vm1311_vm9, %v1276_v2  ;;  %v1274_v30 = vpop.permute.xlu0 %1273  ;;  %v1739_v59 = vpop.permute.xlu2 %1738  ;;  %v4082_v2 = vld [vmem:[%s4172_s22 + $0x94] sm:$0xf] }
 0x188   : > { %1341 = vst.msk [vmem:[#allocation2 + $0x74] sm:$0xf] %vm1311_vm9, %v1274_v30  ;;  %v1952_v25 = vrot.slane %v4082_v2, 5 }
 0x189   : > { %1830 = vst.msk [vmem:[#allocation2 + $0x14] sm:$0xf] %vm1824_vm10, %v1739_v59  ;;  %v1960_v59 = vsel %vm4526_vm6, %v3757_v8, %v1959_v0  ;;  %v2858_v8 = vrot.slane %v5422_v56, 5 }
 0x18a   : > { %v1954_v19 = vrot.slane %v1952_v25, 4 }
 0x18c   : > { %2007 = vrot.lane.b32.xlu1 %v1914_v29, %s4119_s27  ;;  %v1939_v29 = vsel %vm4526_vm6, %v3754_v26, %v1938_v33  ;;  %v1956_v28 = vsel %vm4526_vm6, %v1954_v19, %v1955_v49  ;;  %v2860_v26 = vrot.slane %v2858_v8, 4 }
 0x18d   : > { %2005 = vrot.lane.b32.xlu0 %v1911_v24, %s4119_s27  ;;  %2003 = vrot.lane.b32.xlu2 %v1907_v47, %s4119_s27  ;;  %v4084_v24 = vld [vmem:[%s4172_s22 + $0x90] sm:$0xf] }
 0x18e   : > { %v1731_v53 = vpop.permute.xlu1 %1730  ;;  %v3756_v63 = vrot.slane %v4084_v24, 9  ;;  %v2361_v24 = vshll.u32 %v5480_v41, 16 }
 0x18f   : > { %1826 = vst.msk [vmem:[#allocation2 + $0x4] sm:$0xf] %vm1824_vm10, %v1731_v53  ;;  %v1729_v58 = vpop.permute.xlu0 %1728  ;;  %v1745_v3 = vpop.permute.xlu2 %1744 }
 0x190   : > { %1825 = vst.msk [vmem:[#allocation2] sm:$0xf] %vm1824_vm10, %v1729_v58  ;;  %v1953_v46 = vsel %vm4526_vm6, %v3756_v63, %v1952_v25  ;;  %v5474_v25 = vld [vmem:[%s4172_s22 + $0x48] sm:$0xf]  ;;  %v2365_v63 = vshrl.u32 %v5480_v41, 16 }
 0x191   : > { %1833 = vst.msk [vmem:[#allocation2 + $0x20] sm:$0xf] %vm1824_vm10, %v1745_v3  ;;  %v2343_v3 = vrot.slane %v2341_v16, 4 }
 0x194   : > { %2013 = vrot.lane.b32.xlu1 %v1925_v15, %s4119_s27  ;;  %v2339_v15 = vrot.slane %v2337_v10, 5 }
 0x195   : > { %2011 = vrot.lane.b32.xlu0 %v1921_v13, %s4119_s27  ;;  %2009 = vrot.lane.b32.xlu2 %v1918_v40, %s4119_s27  ;;  %v5441_v13 = vld [vmem:[%s4172_s22 + $0xb8] sm:$0xf] }
 0x196   : > { %v1737_v57 = vpop.permute.xlu1 %1736  ;;  %v1973_v40 = vrot.slane %v5441_v13, 5 }
 0x197   : > { %1829 = vst.msk [vmem:[#allocation2 + $0x10] sm:$0xf] %vm1824_vm10, %v1737_v57  ;;  %v1735_v9 = vpop.permute.xlu0 %1734  ;;  %v1751_v21 = vpop.permute.xlu2 %1750 }
 0x198   : > { %1828 = vst.msk [vmem:[#allocation2 + $0xc] sm:$0xf] %vm1824_vm10, %v1735_v9  ;;  %v3763_v9 = vld [vmem:[%s4172_s22 + $0x20] sm:$0x1]  ;;  %v1974_v33 = vsel %vm4526_vm6, %v3759_v20, %v1973_v40 }
 0x199   : > { %1836 = vst.msk [vmem:[#allocation2 + $0x2c] sm:$0xf] %vm1824_vm10, %v1751_v21  ;;  %v2347_v21 = vshll.u32 %v3763_v9, 16  ;;  %v2861_v2 = vrot.slane %v3763_v9, 5 }
 0x19b   : > { %v2862_v49 = vsel %vm4526_vm6, %v2860_v26, %v2861_v2 }
 0x19c   : > { %2019 = vrot.lane.b32.xlu1 %v1935_v32, %s4119_s27  ;;  %v2344_v32 = vor.u32 %v2343_v3, %v2339_v15 }
 0x19d   : > { %2017 = vrot.lane.b32.xlu0 %v1932_v17, %s4119_s27  ;;  %2015 = vrot.lane.b32.xlu2 %v1928_v12, %s4119_s27  ;;  %v2334_v17 = vor.u32 %v2333_v42, %v2330_v51 }
 0x19e   : > { %v1743_v39 = vpop.permute.xlu1 %1742  ;;  %v2345_v18 = vrot.slane %v2344_v32, 4 }
 0x19f   : > { %1832 = vst.msk [vmem:[#allocation2 + $0x1c] sm:$0xf] %vm1824_vm10, %v1743_v39  ;;  %v1741_v43 = vpop.permute.xlu0 %1740  ;;  %v1757_v30 = vpop.permute.xlu2 %1756  ;;  %v2335_v39 = vrot.slane %v2334_v17, 4 }
 0x1a0   : > { %1831 = vst.msk [vmem:[#allocation2 + $0x18] sm:$0xf] %vm1824_vm10, %v1741_v43 }
 0x1a1   : > { %1839 = vst.msk [vmem:[#allocation2 + $0x38] sm:$0xf] %vm1824_vm10, %v1757_v30  ;;  %v2340_v6 = vsel %vm4208_vm2, %v2335_v39, %v2339_v15  ;;  %v5532_v39 = vld [vmem:[%s4172_s22 + $0x7c] sm:$0xf] }
 0x1a2   : > { %v2529_v26 = vshll.u32 %v5532_v39, 16  ;;  %v2533_v2 = vshrl.u32 %v5532_v39, 16 }
 0x1a4   : > { %2025 = vrot.lane.b32.xlu1 %v5316_v11, %s4119_s27  ;;  %v1947_v11 = vrot.slane %v1945_v38, 4  ;;  %v1961_v38 = vrot.slane %v1959_v0, 4  ;;  %v3809_v0 = vrot.slane %v5426_v61, 9 }
 0x1a5   : > { %2023 = vrot.lane.b32.xlu0 %v1942_v36, %s4119_s27  ;;  %2021 = vrot.lane.b32.xlu2 %v1939_v29, %s4119_s27  ;;  %v5485_v36 = vld [vmem:[%s4172_s22 + $0x24] sm:$0xf]  ;;  %v2424_v29 = vshrl.u32 %v5474_v25, 16 }
 0x1a6   : > { %v1749_v47 = vpop.permute.xlu1 %1748  ;;  %v1949_v53 = vsel %vm4526_vm6, %v1947_v11, %v1948_v23  ;;  %v1963_v14 = vsel %vm4526_vm6, %v1961_v38, %v1962_v44  ;;  %v2859_v11 = vsel %vm4526_vm6, %v3809_v0, %v2858_v8  ;;  %v3766_v38 = vld [vmem:[%s4172_s22 + $0x2c] sm:$0x1] }
 0x1a7   : > { %1835 = vst.msk [vmem:[#allocation2 + $0x28] sm:$0xf] %vm1824_vm10, %v1749_v47  ;;  %v1747_v35 = vpop.permute.xlu0 %1746  ;;  %v1763_v22 = vpop.permute.xlu2 %1762  ;;  %v2352_v47 = vshrl.u32 %v5485_v36, 16  ;;  %v2426_v23 = vrot.slane %v2424_v29, 4 }
 0x1a8   : > { %1834 = vst.msk [vmem:[#allocation2 + $0x24] sm:$0xf] %vm1824_vm10, %v1747_v35  ;;  %v2355_v35 = vshll.u32 %v5485_v36, 16 }
 0x1a9   : > { %1842 = vst.msk [vmem:[#allocation2 + $0x44] sm:$0xf] %vm1824_vm10, %v1763_v22  ;;  %v2354_v44 = vrot.slane %v2352_v47, 4 }
 0x1ac   : > { %2031 = vrot.lane.b32.xlu1 %v1956_v28, %s4119_s27 }
 0x1ad   : > { %2029 = vrot.lane.b32.xlu0 %v1953_v46, %s4119_s27  ;;  %2027 = vrot.lane.b32.xlu2 %v1949_v53, %s4119_s27  ;;  %v2363_v46 = vrot.slane %v2361_v24, 5  ;;  %v2367_v53 = vrot.slane %v2365_v63, 4 }
 0x1ae   : > { %v1755_v45 = vpop.permute.xlu1 %1754 }
 0x1af   : > { %1838 = vst.msk [vmem:[#allocation2 + $0x34] sm:$0xf] %vm1824_vm10, %v1755_v45  ;;  %v1753_v5 = vpop.permute.xlu0 %1752  ;;  %v1769_v58 = vpop.permute.xlu2 %1768  ;;  %v2368_v16 = vor.u32 %v2367_v53, %v2363_v46 }
 0x1b0   : > { %1837 = vst.msk [vmem:[#allocation2 + $0x30] sm:$0xf] %vm1824_vm10, %v1753_v5  ;;  %v5506_v5 = vld [vmem:[%s4172_s22 + $0x4c] sm:$0xf] }
 0x1b1   : > { %1845 = vst.msk [vmem:[#allocation2 + $0x50] sm:$0xf] %vm1824_vm10, %v1769_v58  ;;  %v2437_v55 = vshrl.u32 %v5506_v5, 16  ;;  %v2369_v20 = vrot.slane %v2368_v16, 4 }
 0x1b3   : > { %v2439_v42 = vrot.slane %v2437_v55, 4  ;;  %v2914_v55 = vrot.slane %v5532_v39, 5 }
 0x1b4   : > { %2037 = vrot.lane.b32.xlu1 %v5357_v31, %s4119_s27  ;;  %v1968_v31 = vrot.slane %v1966_v34, 4  ;;  %v2349_v34 = vrot.slane %v2347_v21, 5  ;;  %v3775_v21 = vld [vmem:[%s4172_s22 + $0x50] sm:$0x1] }
 0x1b5   : > { %2035 = vrot.lane.b32.xlu0 %v1963_v14, %s4119_s27  ;;  %2033 = vrot.lane.b32.xlu2 %v1960_v59, %s4119_s27  ;;  %v2427_v59 = vshll.u32 %v5474_v25, 16  ;;  %v2371_v14 = vshll.u32 %v3766_v38, 16  ;;  %v2443_v17 = vshll.u32 %v3775_v21, 16 }
 0x1b6   : > { %v1761_v57 = vpop.permute.xlu1 %1760  ;;  %v1970_v60 = vsel %vm4526_vm6, %v1968_v31, %v1969_v37  ;;  %v2350_v48 = vsel %vm4208_vm2, %v2345_v18, %v2349_v34  ;;  %v2865_v31 = vrot.slane %v5480_v41, 5  ;;  %v2868_v18 = vrot.slane %v3766_v38, 5 }
 0x1b7   : > { %1841 = vst.msk [vmem:[#allocation2 + $0x40] sm:$0xf] %vm1824_vm10, %v1761_v57  ;;  %v1759_v50 = vpop.permute.xlu0 %1758  ;;  %v1775_v1 = vpop.permute.xlu2 %1774  ;;  %v2429_v28 = vrot.slane %v2427_v59, 5  ;;  %v2373_v57 = vrot.slane %v2371_v14, 5  ;;  %v3810_v34 = vrot.slane %v5485_v36, 9  ;;  %v2531_v59 = vrot.slane %v2529_v26, 5 }
 0x1b8   : > { %1840 = vst.msk [vmem:[#allocation2 + $0x3c] sm:$0xf] %vm1824_vm10, %v1759_v50 }
 0x1b9   : > { %1848 = vst.msk [vmem:[#allocation2 + $0x5c] sm:$0xf] %vm1824_vm10, %v1775_v1  ;;  %v2430_v58 = vor.u32 %v2429_v28, %v2426_v23  ;;  %v2374_v32 = vsel %vm4208_vm2, %v2369_v20, %v2373_v57  ;;  %v3813_v28 = vrot.slane %v5474_v25, 9  ;;  %v5585_v57 = vld [vmem:[%s4172_s22 + $0x34] sm:$0xf] }
 0x1bb   : > { %v2431_v15 = vrot.slane %v2430_v58, 4 }
 0x1bc   : > { %2198 = vrot.lane.b32.xlu1 %v5426_v61, %s4120_s28  ;;  %v2433_v61 = vshll.u32 %v5506_v5, 16 }
 0x1bd   : > { %2041 = vrot.lane.b32.xlu0 %v1974_v33, %s4119_s27  ;;  %2039 = vrot.lane.b32.xlu2 %v1970_v60, %s4119_s27  ;;  %v2867_v60 = vrot.slane %v2865_v31, 4 }
 0x1be   : > { %v1767_v12 = vpop.permute.xlu1 %1766  ;;  %v2435_v3 = vrot.slane %v2433_v61, 5 }
 0x1bf   : > { %1844 = vst.msk [vmem:[#allocation2 + $0x4c] sm:$0xf] %vm1824_vm10, %v1767_v12  ;;  %v1765_v54 = vpop.permute.xlu0 %1764  ;;  %v1781_v43 = vpop.permute.xlu2 %1780  ;;  %v2869_v8 = vsel %vm4526_vm6, %v2867_v60, %v2868_v18 }
 0x1c0   : > { %1843 = vst.msk [vmem:[#allocation2 + $0x48] sm:$0xf] %vm1824_vm10, %v1765_v54  ;;  %v2436_v50 = vsel %vm4208_vm2, %v2431_v15, %v2435_v3  ;;  %v2440_v33 = vor.u32 %v2439_v42, %v2435_v3  ;;  %v2916_v15 = vrot.slane %v2914_v55, 4  ;;  %v5590_v42 = vld [vmem:[%s4172_s22 + $0x30] sm:$0xf] }
 0x1c1   : > { %1851 = vst.msk [vmem:[#allocation2 + $0x68] sm:$0xf] %vm1824_vm10, %v1781_v43 }
 0x1c2   : > { %v2441_v43 = vrot.slane %v2440_v33, 4  ;;  %v2379_v33 = vshll.u32 %v5590_v42, 16 }
 0x1c4   : > { %2713 = vrot.lane.b32.xlu1 %v2350_v48, %s4121_s29  ;;  %v5536_v48 = vld [vmem:[%s4172_s22 + $0x78] sm:$0xf] }
 0x1c5   : > { %2711 = vrot.lane.b32.xlu0 %v2340_v6, %s4121_s29  ;;  %2200 = vrot.lane.b32.xlu2 %v5422_v56, %s4120_s28  ;;  %v2357_v56 = vrot.slane %v2355_v35, 5  ;;  %v2445_v6 = vrot.slane %v2443_v17, 5  ;;  %v2520_v0 = vshrl.u32 %v5536_v48, 16  ;;  %v2889_v35 = vrot.slane %v3775_v21, 5 }
 0x1c6   : > { %v1773_v4 = vpop.permute.xlu1 %1772  ;;  %v2389_v21 = vshrl.u32 %v5585_v57, 16 }
 0x1c7   : > { %1847 = vst.msk [vmem:[#allocation2 + $0x58] sm:$0xf] %vm1824_vm10, %v1773_v4  ;;  %v1771_v30 = vpop.permute.xlu0 %1770  ;;  %v1787_v19 = vpop.permute.xlu2 %1786  ;;  %v2358_v7 = vor.u32 %v2357_v56, %v2354_v44  ;;  %v2446_v29 = vsel %vm4208_vm2, %v2441_v43, %v2445_v6  ;;  %v2522_v24 = vrot.slane %v2520_v0, 4  ;;  %v2381_v6 = vrot.slane %v2379_v33, 5 }
 0x1c8   : > { %1846 = vst.msk [vmem:[#allocation2 + $0x54] sm:$0xf] %vm1824_vm10, %v1771_v30  ;;  %v2886_v30 = vrot.slane %v5506_v5, 5 }
 0x1c9   : > { %1854 = vst.msk [vmem:[#allocation2 + $0x74] sm:$0xf] %vm1824_vm10, %v1787_v19  ;;  %v2359_v9 = vrot.slane %v2358_v7, 4  ;;  %v2535_v19 = vrot.slane %v2533_v2, 4 }
 0x1ca   : > { %v2888_v47 = vrot.slane %v2886_v30, 4  ;;  %v2887_v44 = vsel %vm4526_vm6, %v3813_v28, %v2886_v30 }
 0x1cb   : > { %v2364_v1 = vsel %vm4208_vm2, %v2359_v9, %v2363_v46 }
 0x1cc   : > { %2202 = vrot.lane.b32.xlu1 %v5485_v36, %s4120_s28  ;;  %v2523_v36 = vshll.u32 %v5536_v48, 16 }
 0x1cd   : > { %2970 = vrot.lane.b32.xlu0 %v2862_v49, %s4122_s30  ;;  %2968 = vrot.lane.b32.xlu2 %v2859_v11, %s4122_s30  ;;  %v3787_v11 = vld [vmem:[%s4172_s22 + $0x80] sm:$0x1] }
 0x1ce   : > { %v1779_v22 = vpop.permute.xlu1 %1778  ;;  %v2525_v63 = vrot.slane %v2523_v36, 5  ;;  %v2539_v46 = vshll.u32 %v3787_v11, 16  ;;  %v2917_v3 = vrot.slane %v3787_v11, 5 }
 0x1cf   : > { %1850 = vst.msk [vmem:[#allocation2 + $0x64] sm:$0xf] %vm1824_vm10, %v1779_v22  ;;  %v1777_v45 = vpop.permute.xlu0 %1776  ;;  %v1986_v10 = vpop.permute.xlu2 %1985  ;;  %v2536_v22 = vor.u32 %v2535_v19, %v2531_v59 }
 0x1d0   : > { %1849 = vst.msk [vmem:[#allocation2 + $0x60] sm:$0xf] %vm1824_vm10, %v1777_v45  ;;  %v2890_v45 = vsel %vm4526_vm6, %v2888_v47, %v2889_v35  ;;  %v2526_v38 = vor.u32 %v2525_v63, %v2522_v24  ;;  %v2541_v56 = vrot.slane %v2539_v46, 5  ;;  %v3778_v46 = vld [vmem:[%s4172_s22 + $0x5c] sm:$0x1] }
 0x1d1   : > { %2082 = vst.msk [vmem:[#allocation2] sm:$0xf] %vm2081_vm11, %v1986_v10 }
 0x1d2   : > { %v2527_v61 = vrot.slane %v2526_v38, 4  ;;  %v2467_v38 = vshll.u32 %v3778_v46, 16 }
 0x1d4   : > { %2216 = vrot.lane.b32.xlu1 %v5506_v5, %s4120_s28  ;;  %v2532_v14 = vsel %vm4208_vm2, %v2527_v61, %v2531_v59 }
 0x1d5   : > { %2214 = vrot.lane.b32.xlu0 %v5474_v25, %s4120_s28  ;;  %2204 = vrot.lane.b32.xlu2 %v5480_v41, %s4120_s28  ;;  %v2866_v41 = vsel %vm4526_vm6, %v3810_v34, %v2865_v31  ;;  %v2537_v25 = vrot.slane %v2536_v22, 4 }
 0x1d6   : > { %v1785_v52 = vpop.permute.xlu1 %1784 }
 0x1d7   : > { %1853 = vst.msk [vmem:[#allocation2 + $0x70] sm:$0xf] %vm1824_vm10, %v1785_v52  ;;  %v1783_v51 = vpop.permute.xlu0 %1782  ;;  %v1992_v37 = vpop.permute.xlu2 %1991  ;;  %v2542_v10 = vsel %vm4208_vm2, %v2537_v25, %v2541_v56  ;;  %v5579_v52 = vld [vmem:[%s4172_s22 + $0x54] sm:$0xf]  ;;  %v3811_v56 = vrot.slane %v5590_v42, 9 }
 0x1d8   : > { %1852 = vst.msk [vmem:[#allocation2 + $0x6c] sm:$0xf] %vm1824_vm10, %v1783_v51  ;;  %v3817_v51 = vrot.slane %v5536_v48, 9  ;;  %v2448_v9 = vshrl.u32 %v5579_v52, 16 }
 0x1d9   : > { %2085 = vst.msk [vmem:[#allocation2 + $0xc] sm:$0xf] %vm2081_vm11, %v1992_v37  ;;  %v2918_v37 = vsel %vm4526_vm6, %v2916_v15, %v2917_v3 }
 0x1da   : > { %v2915_v17 = vsel %vm4526_vm6, %v3817_v51, %v2914_v55  ;;  %v2450_v60 = vrot.slane %v2448_v9, 4  ;;  %v5650_v51 = vld [vmem:[%s4172_s22 + $0xa8] sm:$0xf] }
 0x1db   : > { %v5655_v9 = vld [vmem:[%s4172_s22 + $0x88] sm:$0xf] }
 0x1dc   : > { %2727 = vrot.lane.b32.xlu1 %v2436_v50, %s4121_s29  ;;  %v2451_v50 = vshll.u32 %v5579_v52, 16 }
 0x1dd   : > { %2717 = vrot.lane.b32.xlu0 %v2374_v32, %s4121_s29  ;;  %2715 = vrot.lane.b32.xlu2 %v2364_v1, %s4121_s29  ;;  %v2385_v32 = vshll.u32 %v5585_v57, 16  ;;  %v2376_v1 = vshrl.u32 %v5590_v42, 16 }
 0x1de   : > { %v1791_v12 = vpop.permute.xlu1 %1790  ;;  %v2453_v18 = vrot.slane %v2451_v50, 5  ;;  %v3814_v50 = vrot.slane %v5579_v52, 9 }
 0x1df   : > { %1856 = vst.msk [vmem:[#allocation2 + $0x7c] sm:$0xf] %vm1824_vm10, %v1791_v12  ;;  %v1789_v54 = vpop.permute.xlu0 %1788  ;;  %v1998_v4 = vpop.permute.xlu2 %1997  ;;  %v2387_v12 = vrot.slane %v2385_v32, 5  ;;  %v2378_v43 = vrot.slane %v2376_v1, 4  ;;  %v2616_v32 = vshrl.u32 %v5650_v51, 16 }
 0x1e0   : > { %1855 = vst.msk [vmem:[#allocation2 + $0x78] sm:$0xf] %vm1824_vm10, %v1789_v54  ;;  %v2454_v26 = vor.u32 %v2453_v18, %v2450_v60  ;;  %v2557_v60 = vshrl.u32 %v5655_v9, 16 }
 0x1e1   : > { %2088 = vst.msk [vmem:[#allocation2 + $0x18] sm:$0xf] %vm2081_vm11, %v1998_v4  ;;  %v2382_v36 = vor.u32 %v2381_v6, %v2378_v43 }
 0x1e3   : > { %v2383_v35 = vrot.slane %v2382_v36, 4  ;;  %v3933_v36 = vld [vmem:[%s6219_s1 + $0x8] sm:$0xff] }
 0x1e4   : > { %2974 = vrot.lane.b32.xlu1 %v2869_v8, %s4122_s30  ;;  %v5611_v8 = vld [vmem:[%s4172_s22 + $0x58] sm:$0xf] }
 0x1e5   : > { %2972 = vrot.lane.b32.xlu0 %v2866_v41, %s4122_s30  ;;  %2729 = vrot.lane.b32.xlu2 %v2446_v29, %s4121_s29  ;;  %v2457_v4 = vshll.u32 %v5611_v8, 16  ;;  %v2461_v0 = vshrl.u32 %v5611_v8, 16  ;;  %v2455_v29 = vrot.slane %v2454_v26, 4  ;;  %v2893_v55 = vrot.slane %v5611_v8, 5 }
 0x1e6   : > { %v1990_v49 = vpop.permute.xlu1 %1989 }
 0x1e7   : > { %2084 = vst.msk [vmem:[#allocation2 + $0x8] sm:$0xf] %vm2081_vm11, %v1990_v49  ;;  %v1988_v23 = vpop.permute.xlu0 %1987  ;;  %v2004_v53 = vpop.permute.xlu2 %2003  ;;  %v2459_v59 = vrot.slane %v2457_v4, 5  ;;  %v2463_v47 = vrot.slane %v2461_v0, 4  ;;  %v2559_v4 = vrot.slane %v2557_v60, 4  ;;  %v3821_v60 = vrot.slane %v5650_v51, 9 }
 0x1e8   : > { %2083 = vst.msk [vmem:[#allocation2 + $0x4] sm:$0xf] %vm2081_vm11, %v1988_v23  ;;  %v2872_v23 = vrot.slane %v5585_v57, 5  ;;  %v5684_v0 = vld [vmem:[%s4172_s22 + $0xac] sm:$0xf] }
 0x1e9   : > { %2091 = vst.msk [vmem:[#allocation2 + $0x24] sm:$0xf] %vm2081_vm11, %v2004_v53  ;;  %v2460_v11 = vsel %vm4208_vm2, %v2455_v29, %v2459_v59  ;;  %v2388_v53 = vsel %vm4208_vm2, %v2383_v35, %v2387_v12  ;;  %v2625_v29 = vshll.u32 %v5684_v0, 16  ;;  %v3932_v35 = vld [vmem:[%s6219_s1] sm:$0xff] }
 0x1ec   : > { %2230 = vrot.lane.b32.xlu1 %v5536_v48, %s4120_s28  ;;  %v3769_v48 = vld [vmem:[%s4172_s22 + $0x38] sm:$0x1] }
 0x1ed   : > { %2986 = vrot.lane.b32.xlu0 %v2890_v45, %s4122_s30  ;;  %2984 = vrot.lane.b32.xlu2 %v2887_v44, %s4122_s30  ;;  %v2395_v41 = vshll.u32 %v3769_v48, 16  ;;  %v2464_v45 = vor.u32 %v2463_v47, %v2459_v59  ;;  %v2874_v44 = vrot.slane %v2872_v23, 4  ;;  %v2875_v25 = vrot.slane %v3769_v48, 5 }
 0x1ee   : > { %v1996_v5 = vpop.permute.xlu1 %1995 }
 0x1ef   : > { %2087 = vst.msk [vmem:[#allocation2 + $0x14] sm:$0xf] %vm2081_vm11, %v1996_v5  ;;  %v1994_v58 = vpop.permute.xlu0 %1993  ;;  %v2010_v16 = vpop.permute.xlu2 %2009  ;;  %v2397_v24 = vrot.slane %v2395_v41, 5 }
 0x1f0   : > { %2086 = vst.msk [vmem:[#allocation2 + $0x10] sm:$0xf] %vm2081_vm11, %v1994_v58  ;;  %v2465_v58 = vrot.slane %v2464_v45, 4 }
 0x1f1   : > { %2094 = vst.msk [vmem:[#allocation2 + $0x30] sm:$0xf] %vm2081_vm11, %v2010_v16  ;;  %v2876_v16 = vsel %vm4526_vm6, %v2874_v44, %v2875_v25  ;;  %v2921_v25 = vrot.slane %v5655_v9, 5 }
 0x1f4   : > { %2745 = vrot.lane.b32.xlu1 %v2542_v10, %s4121_s29  ;;  %v2469_v10 = vrot.slane %v2467_v38, 5 }
 0x1f5   : > { %2743 = vrot.lane.b32.xlu0 %v2532_v14, %s4121_s29  ;;  %2232 = vrot.lane.b32.xlu2 %v5532_v39, %s4120_s28  ;;  %v2391_v39 = vrot.slane %v2389_v21, 4  ;;  %v2619_v21 = vshll.u32 %v5650_v51, 16 }
 0x1f6   : > { %v2002_v7 = vpop.permute.xlu1 %2001  ;;  %v2470_v15 = vsel %vm4208_vm2, %v2465_v58, %v2469_v10 }
 0x1f7   : > { %2090 = vst.msk [vmem:[#allocation2 + $0x20] sm:$0xf] %vm2081_vm11, %v2002_v7  ;;  %v2000_v20 = vpop.permute.xlu0 %1999  ;;  %v2016_v31 = vpop.permute.xlu2 %2015  ;;  %v2392_v30 = vor.u32 %v2391_v39, %v2387_v12  ;;  %v2873_v7 = vsel %vm4526_vm6, %v3811_v56, %v2872_v23  ;;  %v2894_v39 = vsel %vm4526_vm6, %v3814_v50, %v2893_v55  ;;  %v2621_v48 = vrot.slane %v2619_v21, 5 }
 0x1f8   : > { %2089 = vst.msk [vmem:[#allocation2 + $0x1c] sm:$0xf] %vm2081_vm11, %v2000_v20  ;;  %v2895_v20 = vrot.slane %v2893_v55, 4  ;;  %v2627_v23 = vrot.slane %v2625_v29, 5  ;;  %v2942_v50 = vrot.slane %v5684_v0, 5 }
 0x1f9   : > { %2097 = vst.msk [vmem:[#allocation2 + $0x3c] sm:$0xf] %vm2081_vm11, %v2016_v31  ;;  %v2393_v49 = vrot.slane %v2392_v30, 4  ;;  %v3133_v31 = vld [vmem:[%s6219_s1 + $0x10] sm:$0x3] }
 0x1fa   : > { %v3227_v33 = vunpack.c.l.b16 %v3133_v31  ;;  %v3790_v30 = vld [vmem:[%s4172_s22 + $0x8c] sm:$0x1]  ;;  %v2944_v21 = vrot.slane %v2942_v50, 4 }
 0x1fb   : > { %v2398_v22 = vsel %vm4208_vm2, %v2393_v49, %v2397_v24  ;;  %v2563_v24 = vshll.u32 %v3790_v30, 16  ;;  %v2924_v55 = vrot.slane %v3790_v30, 5 }
 0x1fc   : > { %2206 = vrot.lane.b32.xlu1 %v5590_v42, %s4120_s28 }
 0x1fd   : > { %3002 = vrot.lane.b32.xlu0 %v2918_v37, %s4122_s30  ;;  %3000 = vrot.lane.b32.xlu2 %v2915_v17, %s4122_s30  ;;  %v5663_v37 = vld [vmem:[%s4172_s22 + $0x84] sm:$0xf] }
 0x1fe   : > { %v2008_v34 = vpop.permute.xlu1 %2007  ;;  %v2544_v18 = vshrl.u32 %v5663_v37, 16  ;;  %v2547_v12 = vshll.u32 %v5663_v37, 16 }
 0x1ff   : > { %2093 = vst.msk [vmem:[#allocation2 + $0x2c] sm:$0xf] %vm2081_vm11, %v2008_v34  ;;  %v2006_v54 = vpop.permute.xlu0 %2005  ;;  %v2022_v2 = vpop.permute.xlu2 %2021  ;;  %v3230_v34 = vpack.c.b16 %v3227_v33, %v3227_v33  ;;  %v5728_v33 = vld [vmem:[%s4172_s22 + $0x60] sm:$0xf] }
 0x200   : > { %2092 = vst.msk [vmem:[#allocation2 + $0x28] sm:$0xf] %vm2081_vm11, %v2006_v54  ;;  %v2618_v54 = vrot.slane %v2616_v32, 4  ;;  %v2546_v26 = vrot.slane %v2544_v18, 4  ;;  %v2549_v41 = vrot.slane %v2547_v12, 5  ;;  %v2475_v12 = vshll.u32 %v5728_v33, 16 }
 0x201   : > { %2100 = vst.msk [vmem:[#allocation2 + $0x48] sm:$0xf] %vm2081_vm11, %v2022_v2  ;;  %v3284_v43 = vsel %vm3282_vm12, %v3230_v34, 0  ;;  %v5739_v18 = vld [vmem:[%s4172_s22 + $0x3c] sm:$0xf]  ;;  %v2472_v34 = vshrl.u32 %v5728_v33, 16 }
 0x202   : > { %3291 = vmatpush.bf16.msra.mxu0 %v3284_v43  ;;  %4029 = vmatpush.bf16.msra.mxu1 %v3284_v43  ;;  %v2622_v59 = vor.u32 %v2621_v48, %v2618_v54  ;;  %v2550_v47 = vor.u32 %v2549_v41, %v2546_v26  ;;  %v2477_v26 = vrot.slane %v2475_v12, 5  ;;  %v5805_v12 = vld [vmem:[%s4172_s22 + $0x94] sm:$0xf] }
 0x203   : > { %4030 = vmatpush.bf16.msra.mxu2 %v3284_v43  ;;  %4031 = vmatpush.bf16.msra.mxu3 %v3284_v43 }
 0x204   : > { %2220 = vrot.lane.b32.xlu1 %v5611_v8, %s4120_s28  ;;  %v2551_v38 = vrot.slane %v2550_v47, 4 }
 0x205   : > { %2218 = vrot.lane.b32.xlu0 %v5579_v52, %s4120_s28  ;;  %2208 = vrot.lane.b32.xlu2 %v5585_v57, %s4120_s28  ;;  %v2896_v57 = vrot.slane %v3778_v46, 5  ;;  %v2553_v52 = vshll.u32 %v5655_v9, 16  ;;  %v2565_v46 = vrot.slane %v2563_v24, 5 }
 0x206   : > { %v2014_v19 = vpop.permute.xlu1 %2013  ;;  %3292 = vmatpush.bf16.msra.mxu0 %v3933_v36  ;;  %4032 = vmatpush.bf16.msra.mxu1 %v3933_v36 }
 0x207   : > { %2096 = vst.msk [vmem:[#allocation2 + $0x38] sm:$0xf] %vm2081_vm11, %v2014_v19  ;;  %v2012_v63 = vpop.permute.xlu0 %2011  ;;  %v2028_v28 = vpop.permute.xlu2 %2027  ;;  %v2897_v17 = vsel %vm4526_vm6, %v2895_v20, %v2896_v57  ;;  %v2555_v8 = vrot.slane %v2553_v52, 5  ;;  %4033 = vmatpush.bf16.msra.mxu2 %v3933_v36  ;;  %4034 = vmatpush.bf16.msra.mxu3 %v3933_v36  ;;  %v5733_v52 = vld [vmem:[%s4172_s22 + $0x40] sm:$0xf] }
 0x208   : > { %2095 = vst.msk [vmem:[#allocation2 + $0x34] sm:$0xf] %vm2081_vm11, %v2012_v63  ;;  %v2629_v63 = vshrl.u32 %v5684_v0, 16  ;;  %v2409_v48 = vshll.u32 %v5733_v52, 16  ;;  %v2413_v43 = vshrl.u32 %v5733_v52, 16 }
 0x209   : > { %2103 = vst.msk [vmem:[#allocation2 + $0x54] sm:$0xf] %vm2081_vm11, %v2028_v28  ;;  %v2560_v49 = vor.u32 %v2559_v4, %v2555_v8  ;;  %v2556_v58 = vsel %vm4208_vm2, %v2551_v38, %v2555_v8  ;;  %v2943_v8 = vsel %vm4526_vm6, %v3821_v60, %v2942_v50  ;;  %v2474_v4 = vrot.slane %v2472_v34, 4  ;;  %v3772_v36 = vld [vmem:[%s4172_s22 + $0x44] sm:$0x1] }
 0x20a   : > { %3293 = vmatpush.bf16.msra.mxu0 %v3932_v35  ;;  %4035 = vmatpush.bf16.msra.mxu1 %v3932_v35  ;;  %v2631_v45 = vrot.slane %v2629_v63, 4  ;;  %v2411_v30 = vrot.slane %v2409_v48, 5  ;;  %v2415_v41 = vrot.slane %v2413_v43, 4 }
 0x20b   : > { %4036 = vmatpush.bf16.msra.mxu2 %v3932_v35  ;;  %4037 = vmatpush.bf16.msra.mxu3 %v3932_v35  ;;  %v2478_v24 = vor.u32 %v2477_v26, %v2474_v4  ;;  %v2419_v35 = vshll.u32 %v3772_v36, 16  ;;  %v2581_v4 = vshrl.u32 %v5805_v12, 16 }
 0x20c   : > { %2731 = vrot.lane.b32.xlu1 %v2460_v11, %s4121_s29  ;;  %v2623_v11 = vrot.slane %v2622_v59, 4  ;;  %v2632_v10 = vor.u32 %v2631_v45, %v2627_v23  ;;  %v2416_v47 = vor.u32 %v2415_v41, %v2411_v30 }
 0x20d   : > { %2721 = vrot.lane.b32.xlu0 %v2398_v22, %s4121_s29  ;;  %2719 = vrot.lane.b32.xlu2 %v2388_v53, %s4121_s29  ;;  %v2561_v22 = vrot.slane %v2560_v49, 4  ;;  %v2421_v45 = vrot.slane %v2419_v35, 5 }
 0x20e   : > { %v2020_v5 = vpop.permute.xlu1 %2019  ;;  %v2628_v44 = vsel %vm4208_vm2, %v2623_v11, %v2627_v23  ;;  %v2633_v20 = vrot.slane %v2632_v10, 4 }
 0x20f   : > { %2099 = vst.msk [vmem:[#allocation2 + $0x44] sm:$0xf] %vm2081_vm11, %v2020_v5  ;;  %v2018_v61 = vpop.permute.xlu0 %2017  ;;  %v2034_v14 = vpop.permute.xlu2 %2033  ;;  %v2566_v5 = vsel %vm4208_vm2, %v2561_v22, %v2565_v46 }
 0x210   : > { %2098 = vst.msk [vmem:[#allocation2 + $0x40] sm:$0xf] %vm2081_vm11, %v2018_v61  ;;  %v3799_v61 = vld [vmem:[%s4172_s22 + $0xb0] sm:$0x1] }
 0x211   : > { %2106 = vst.msk [vmem:[#allocation2 + $0x60] sm:$0xf] %vm2081_vm11, %v2034_v14  ;;  %v2923_v14 = vrot.slane %v2921_v25, 4 }
 0x214   : > { %2978 = vrot.lane.b32.xlu1 %v2876_v16, %s4122_s30  ;;  %v2635_v16 = vshll.u32 %v3799_v61, 16 }
 0x215   : > { %2976 = vrot.lane.b32.xlu0 %v2873_v7, %s4122_s30  ;;  %2733 = vrot.lane.b32.xlu2 %v2470_v15, %s4121_s29  ;;  %v3818_v7 = vrot.slane %v5663_v37, 9 }
 0x216   : > { %v2026_v3 = vpop.permute.xlu1 %2025  ;;  %v2637_v57 = vrot.slane %v2635_v16, 5  ;;  %v3781_v16 = vld [vmem:[%s4172_s22 + $0x68] sm:$0x1] }
 0x217   : > { %2102 = vst.msk [vmem:[#allocation2 + $0x50] sm:$0xf] %vm2081_vm11, %v2026_v3  ;;  %v2024_v42 = vpop.permute.xlu0 %2023  ;;  %v2040_v1 = vpop.permute.xlu2 %2039  ;;  %v2922_v31 = vsel %vm4526_vm6, %v3818_v7, %v2921_v25  ;;  %v2491_v7 = vshll.u32 %v3781_v16, 16  ;;  %v2903_v60 = vrot.slane %v3781_v16, 5 }
 0x218   : > { %2101 = vst.msk [vmem:[#allocation2 + $0x4c] sm:$0xf] %vm2081_vm11, %v2024_v42  ;;  %v2925_v42 = vsel %vm4526_vm6, %v2923_v14, %v2924_v55 }
 0x219   : > { %2109 = vst.msk [vmem:[#allocation2 + $0x6c] sm:$0xf] %vm2081_vm11, %v2040_v1  ;;  %v2945_v1 = vrot.slane %v3799_v61, 5  ;;  %v2879_v61 = vrot.slane %v5733_v52, 5  ;;  %v2493_v50 = vrot.slane %v2491_v7, 5 }
 0x21b   : > { %v2946_v54 = vsel %vm4526_vm6, %v2944_v21, %v2945_v1 }
 0x21c   : > { %2234 = vrot.lane.b32.xlu1 %v5663_v37, %s4120_s28  ;;  %v2638_v37 = vsel %vm4208_vm2, %v2633_v20, %v2637_v57  ;;  %v3812_v20 = vrot.slane %v5739_v18, 9 }
 0x21d   : > { %2990 = vrot.lane.b32.xlu0 %v2897_v17, %s4122_s30  ;;  %2988 = vrot.lane.b32.xlu2 %v2894_v39, %s4122_s30 }
 0x21e   : > { %v2032_v6 = vpop.permute.xlu1 %2031  ;;  %v2880_v21 = vsel %vm4526_vm6, %v3812_v20, %v2879_v61 }
 0x21f   : > { %2105 = vst.msk [vmem:[#allocation2 + $0x5c] sm:$0xf] %vm2081_vm11, %v2032_v6  ;;  %v2030_v2 = vpop.permute.xlu0 %2029  ;;  %v2201_v19 = vpop.permute.xlu2 %2200  ;;  %v2403_v6 = vshll.u32 %v5739_v18, 16 }
 0x220   : > { %2104 = vst.msk [vmem:[#allocation2 + $0x58] sm:$0xf] %vm2081_vm11, %v2030_v2 }
 0x221   : > { %2296 = vst.msk [vmem:[#allocation2 + $0x4] sm:$0xf] %vm2294_vm13, %v2201_v19  ;;  %v2405_v59 = vrot.slane %v2403_v6, 5  ;;  %v5759_v19 = vld [vmem:[%s4172_s22 + $0x64] sm:$0xf] }
 0x222   : > { %v2481_v49 = vshll.u32 %v5759_v19, 16  ;;  %v2485_v11 = vshrl.u32 %v5759_v19, 16 }
 0x224   : > { %2248 = vrot.lane.b32.xlu1 %v5684_v0, %s4120_s28  ;;  %v2483_v22 = vrot.slane %v2481_v49, 5  ;;  %v2487_v25 = vrot.slane %v2485_v11, 4  ;;  %v3793_v49 = vld [vmem:[%s4172_s22 + $0x98] sm:$0x1] }
 0x225   : > { %2246 = vrot.lane.b32.xlu0 %v5650_v51, %s4120_s28  ;;  %2236 = vrot.lane.b32.xlu2 %v5655_v9, %s4120_s28  ;;  %v2400_v51 = vshrl.u32 %v5739_v18, 16 }
 0x226   : > { %v2038_v28 = vpop.permute.xlu1 %2037  ;;  %v2488_v55 = vor.u32 %v2487_v25, %v2483_v22 }
 0x227   : > { %2108 = vst.msk [vmem:[#allocation2 + $0x68] sm:$0xf] %vm2081_vm11, %v2038_v28  ;;  %v2036_v53 = vpop.permute.xlu0 %2035  ;;  %v2969_v56 = vpop.permute.xlu2 %2968  ;;  %v2402_v29 = vrot.slane %v2400_v51, 4  ;;  %v2479_v28 = vrot.slane %v2478_v24, 4 }
 0x228   : > { %2107 = vst.msk [vmem:[#allocation2 + $0x64] sm:$0xf] %vm2081_vm11, %v2036_v53  ;;  %v2417_v53 = vrot.slane %v2416_v47, 4  ;;  %v5830_v47 = vld [vmem:[%s4172_s22 + $0xb8] sm:$0xf] }
 0x229   : > { %v2406_v23 = vor.u32 %v2405_v59, %v2402_v29  ;;  %v2583_v29 = vrot.slane %v2581_v4, 4  ;;  %v2649_v35 = vshll.u32 %v5830_v47, 16 }
 0x22a   : > { %v2422_v10 = vsel %vm4208_vm2, %v2417_v53, %v2421_v45 }
 0x22c   : > { %2759 = vrot.lane.b32.xlu1 %v2628_v44, %s4121_s29 }
 0x22d   : > { %2749 = vrot.lane.b32.xlu0 %v2566_v5, %s4121_s29  ;;  %2747 = vrot.lane.b32.xlu2 %v2556_v58, %s4121_s29  ;;  %v2484_v5 = vsel %vm4208_vm2, %v2479_v28, %v2483_v22  ;;  %v2587_v22 = vshll.u32 %v3793_v49, 16 }
 0x22e   : > { %v2199_v15 = vpop.permute.xlu1 %2198 }
 0x22f   : > { %2295 = vst.msk [vmem:[#allocation2] sm:$0xf] %vm2294_vm13, %v2199_v15  ;;  %v2042_v3 = vpop.permute.xlu0 %2041  ;;  %v2205_v9 = vpop.permute.xlu2 %2204  ;;  %v2881_v15 = vrot.slane %v2879_v61, 4 }
 0x230   : > { %2110 = vst.msk [vmem:[#allocation2 + $0x70] sm:$0xf] %vm2081_vm11, %v2042_v3  ;;  %v2882_v3 = vrot.slane %v3772_v36, 5 }
 0x231   : > { %2298 = vst.msk [vmem:[#allocation2 + $0xc] sm:$0xf] %vm2294_vm13, %v2205_v9  ;;  %v2489_v9 = vrot.slane %v2488_v55, 4 }
 0x233   : > { %v2494_v1 = vsel %vm4208_vm2, %v2489_v9, %v2493_v50  ;;  %v2931_v9 = vrot.slane %v3793_v49, 5 }
 0x234   : > { %3006 = vrot.lane.b32.xlu1 %v2925_v42, %s4122_s30 }
 0x235   : > { %3004 = vrot.lane.b32.xlu0 %v2922_v31, %s4122_s30  ;;  %2761 = vrot.lane.b32.xlu2 %v2638_v37, %s4121_s29  ;;  %v2883_v31 = vsel %vm4526_vm6, %v2881_v15, %v2882_v3  ;;  %v3802_v15 = vld [vmem:[%s4172_s22 + $0xbc] sm:$0x1] }
 0x236   : > { %v2714_v32 = vpop.permute.xlu1 %2713 }
 0x237   : > { %2809 = vst.msk [vmem:[#allocation2 + $0x4] sm:$0xf] %vm2807_vm14, %v2714_v32  ;;  %v2712_v17 = vpop.permute.xlu0 %2711  ;;  %v2716_v39 = vpop.permute.xlu2 %2715  ;;  %v2900_v32 = vrot.slane %v5759_v19, 5 }
 0x238   : > { %2808 = vst.msk [vmem:[#allocation2] sm:$0xf] %vm2807_vm14, %v2712_v17 }
 0x239   : > { %3065 = vst.msk [vmem:[#allocation2] sm:$0xf] %vm3064_vm15, %v2969_v56  ;;  %v2407_v56 = vrot.slane %v2406_v23, 4 }
 0x23b   : > { %v2412_v14 = vsel %vm4208_vm2, %v2407_v56, %v2411_v30  ;;  %v2589_v56 = vrot.slane %v2587_v22, 5 }
 0x23c   : > { %2210 = vrot.lane.b32.xlu1 %v5739_v18, %s4120_s28  ;;  %v5800_v18 = vld [vmem:[%s4172_s22 + $0xb4] sm:$0xf] }
 0x23d   : > { %3018 = vrot.lane.b32.xlu0 %v2946_v54, %s4122_s30  ;;  %3016 = vrot.lane.b32.xlu2 %v2943_v8, %s4122_s30  ;;  %v5810_v54 = vld [vmem:[%s4172_s22 + $0x90] sm:$0xf]  ;;  %v2640_v48 = vshrl.u32 %v5800_v18, 16  ;;  %v2643_v43 = vshll.u32 %v5800_v18, 16  ;;  %v2577_v8 = vshll.u32 %v5805_v12, 16 }
 0x23e   : > { %v2203_v2 = vpop.permute.xlu1 %2202  ;;  %v2568_v26 = vshrl.u32 %v5810_v54, 16  ;;  %v3819_v50 = vrot.slane %v5810_v54, 9 }
 0x23f   : > { %2297 = vst.msk [vmem:[#allocation2 + $0x8] sm:$0xf] %vm2294_vm13, %v2203_v2  ;;  %v2971_v0 = vpop.permute.xlu0 %2970  ;;  %v2730_v63 = vpop.permute.xlu2 %2729  ;;  %v2642_v30 = vrot.slane %v2640_v48, 4  ;;  %v2645_v41 = vrot.slane %v2643_v43, 5  ;;  %v2579_v36 = vrot.slane %v2577_v8, 5 }
 0x240   : > { %3066 = vst.msk [vmem:[#allocation2 + $0x4] sm:$0xf] %vm3064_vm15, %v2971_v0  ;;  %v2570_v24 = vrot.slane %v2568_v26, 4 }
 0x241   : > { %2810 = vst.msk [vmem:[#allocation2 + $0x8] sm:$0xf] %vm2807_vm14, %v2716_v39  ;;  %v3815_v39 = vrot.slane %v5728_v33, 9  ;;  %v2646_v11 = vor.u32 %v2645_v41, %v2642_v30  ;;  %v2584_v28 = vor.u32 %v2583_v29, %v2579_v36  ;;  %v2952_v30 = vrot.slane %v3802_v15, 5  ;;  %v3784_v41 = vld [vmem:[%s4172_s22 + $0x74] sm:$0x1] }
 0x242   : > { %v3822_v29 = vrot.slane %v5800_v18, 9 }
 0x243   : > { %v2901_v2 = vsel %vm4526_vm6, %v3815_v39, %v2900_v32  ;;  %v2647_v45 = vrot.slane %v2646_v11, 4  ;;  %v2585_v25 = vrot.slane %v2584_v28, 4  ;;  %v2949_v39 = vrot.slane %v5830_v47, 5 }
 0x244   : > { %2224 = vrot.lane.b32.xlu1 %v5759_v19, %s4120_s28 }
 0x245   : > { %2222 = vrot.lane.b32.xlu0 %v5728_v33, %s4120_s28  ;;  %2212 = vrot.lane.b32.xlu2 %v5733_v52, %s4120_s28  ;;  %v2902_v52 = vrot.slane %v2900_v32, 4  ;;  %v2571_v33 = vshll.u32 %v5810_v54, 16  ;;  %v2590_v7 = vsel %vm4208_vm2, %v2585_v25, %v2589_v56 }
 0x246   : > { %v2217_v46 = vpop.permute.xlu1 %2216 }
 0x247   : > { %2304 = vst.msk [vmem:[#allocation2 + $0x24] sm:$0xf] %vm2294_vm13, %v2217_v46  ;;  %v2215_v38 = vpop.permute.xlu0 %2214  ;;  %v3916_v44 = vld [vmem:[#allocation2] sm:$0xff]  ;;  %v2985_v58 = vpop.permute.xlu2 %2984  ;;  %v2904_v6 = vsel %vm4526_vm6, %v2902_v52, %v2903_v60  ;;  %v2653_v46 = vshrl.u32 %v5830_v47, 16 }
 0x248   : > { %2303 = vst.msk [vmem:[#allocation2 + $0x20] sm:$0xf] %vm2294_vm13, %v2215_v38  ;;  %3897 = vmatmul.msk.bf16.vlgmr.msra.gmra.mxu0 %vm3233_vm0, %v3916_v44  ;;  %v2651_v38 = vrot.slane %v2649_v35, 5 }
 0x249   : > { %2817 = vst.msk [vmem:[#allocation2 + $0x24] sm:$0xf] %vm2807_vm14, %v2730_v63  ;;  %v2573_v63 = vrot.slane %v2571_v33, 5 }
 0x24a   : > { %v2652_v16 = vsel %vm4208_vm2, %v2647_v45, %v2651_v38 }
 0x24b   : > { %v2574_v53 = vor.u32 %v2573_v63, %v2570_v24 }
 0x24c   : > { %2735 = vrot.lane.b32.xlu1 %v2484_v5, %s4121_s29 }
 0x24d   : > { %2725 = vrot.lane.b32.xlu0 %v2422_v10, %s4121_s29  ;;  %2723 = vrot.lane.b32.xlu2 %v2412_v14, %s4121_s29  ;;  %v2575_v10 = vrot.slane %v2574_v53, 4  ;;  %v2928_v14 = vrot.slane %v5805_v12, 5 }
 0x24e   : > { %v2728_v57 = vpop.permute.xlu1 %2727 }
 0x24f   : > { %2816 = vst.msk [vmem:[#allocation2 + $0x20] sm:$0xf] %vm2807_vm14, %v2728_v57  ;;  %v2718_v42 = vpop.permute.xlu0 %2717  ;;  %v2233_v37 = vpop.permute.xlu2 %2232  ;;  %v2580_v3 = vsel %vm4208_vm2, %v2575_v10, %v2579_v36  ;;  %v2659_v57 = vshll.u32 %v3802_v15, 16 }
 0x250   : > { %2811 = vst.msk [vmem:[#allocation2 + $0xc] sm:$0xf] %vm2807_vm14, %v2718_v42  ;;  %v2930_v42 = vrot.slane %v2928_v14, 4 }
 0x251   : > { %3073 = vst.msk [vmem:[#allocation2 + $0x20] sm:$0xf] %vm3064_vm15, %v2985_v58  ;;  %v2655_v58 = vrot.slane %v2653_v46, 4 }
 0x252   : > { %2312 = vst.msk [vmem:[#allocation2 + $0x44] sm:$0xf] %vm2294_vm13, %v2233_v37  ;;  %v5858_v37 = vld [vmem:[%s4172_s22 + $0x70] sm:$0xf]  ;;  %v2932_v52 = vsel %vm4526_vm6, %v2930_v42, %v2931_v9 }
 0x253   : > { %v2656_v20 = vor.u32 %v2655_v58, %v2651_v38  ;;  %v2907_v45 = vrot.slane %v5858_v37, 5  ;;  %v1975_v38 = vrot.slane %v1973_v40, 4  ;;  %v5910_v58 = vld [vmem:[%s4172_s22 + $0xa0] sm:$0xf] }
 0x254   : > { %2982 = vrot.lane.b32.xlu1 %v2883_v31, %s4122_s30  ;;  %v2601_v40 = vshll.u32 %v5910_v58, 16 }
 0x255   : > { %2980 = vrot.lane.b32.xlu0 %v2880_v21, %s4122_s30  ;;  %2737 = vrot.lane.b32.xlu2 %v2494_v1, %s4121_s29  ;;  %v5862_v21 = vld [vmem:[%s4172_s22 + $0x6c] sm:$0xf]  ;;  %v2657_v1 = vrot.slane %v2656_v20, 4 }
 0x256   : > { %v2975_v17 = vpop.permute.xlu1 %2974  ;;  %v2496_v48 = vshrl.u32 %v5862_v21, 16  ;;  %v2499_v43 = vshll.u32 %v5862_v21, 16  ;;  %v2603_v42 = vrot.slane %v2601_v40, 5 }
 0x257   : > { %3068 = vst.msk [vmem:[#allocation2 + $0xc] sm:$0xf] %vm3064_vm15, %v2975_v17  ;;  %v2973_v34 = vpop.permute.xlu0 %2972  ;;  %v3001_v51 = vpop.permute.xlu2 %3000  ;;  %v2661_v17 = vrot.slane %v2659_v57, 5 }
 0x258   : > { %3067 = vst.msk [vmem:[#allocation2 + $0x8] sm:$0xf] %vm3064_vm15, %v2973_v34  ;;  %v2505_v34 = vshll.u32 %v5858_v37, 16  ;;  %v2498_v26 = vrot.slane %v2496_v48, 4  ;;  %v2501_v33 = vrot.slane %v2499_v43, 5 }
 0x25a   : > { %v2502_v63 = vor.u32 %v2501_v33, %v2498_v26 }
 0x25c   : > { %2238 = vrot.lane.b32.xlu1 %v5810_v54, %s4120_s28  ;;  %v2929_v54 = vsel %vm4526_vm6, %v3819_v50, %v2928_v14  ;;  %v3816_v14 = vrot.slane %v5862_v21, 9 }
 0x25d   : > { %2994 = vrot.lane.b32.xlu0 %v2904_v6, %s4122_s30  ;;  %2992 = vrot.lane.b32.xlu2 %v2901_v2, %s4122_s30  ;;  %v2507_v6 = vrot.slane %v2505_v34, 5  ;;  %v2951_v2 = vrot.slane %v2949_v39, 4 }
 0x25e   : > { %v2231_v0 = vpop.permute.xlu1 %2230  ;;  %v2908_v57 = vsel %vm4526_vm6, %v3816_v14, %v2907_v45  ;;  %v4089_v14 = vld [vmem:[%s4172_s22 + $0xc4] sm:$0xf] }
 0x25f   : > { %2311 = vst.msk [vmem:[#allocation2 + $0x40] sm:$0xf] %vm2294_vm13, %v2231_v0  ;;  %v2987_v59 = vpop.permute.xlu0 %2986  ;;  %v3917_v19 = vld [vmem:[#allocation2 + $0x8] sm:$0xff]  ;;  %v2209_v23 = vpop.permute.xlu2 %2208  ;;  %v2953_v24 = vsel %vm4526_vm6, %v2951_v2, %v2952_v30 }
 0x260   : > { %3074 = vst.msk [vmem:[#allocation2 + $0x24] sm:$0xf] %vm3064_vm15, %v2987_v59  ;;  %3898 = vmatmul.msk.bf16.gmra.mxu0 %vm3233_vm0, %v3917_v19  ;;  %v2515_v19 = vshll.u32 %v3784_v41, 16 }
 0x261   : > { %2300 = vst.msk [vmem:[#allocation2 + $0x14] sm:$0xf] %vm2294_vm13, %v2209_v23  ;;  %v2503_v23 = vrot.slane %v2502_v63, 4 }
 0x262   : > { %v2517_v35 = vrot.slane %v2515_v19, 5 }
 0x263   : > { %v2508_v53 = vsel %vm4208_vm2, %v2503_v23, %v2507_v6 }
 0x264   : > { %2252 = vrot.lane.b32.xlu1 %v5830_v47, %s4120_s28  ;;  %v2950_v47 = vsel %vm4526_vm6, %v3822_v29, %v2949_v39 }
 0x265   : > { %2250 = vrot.lane.b32.xlu0 %v5800_v18, %s4120_s28  ;;  %2240 = vrot.lane.b32.xlu2 %v5805_v12, %s4120_s28  ;;  %v2509_v12 = vshrl.u32 %v5858_v37, 16 }
 0x266   : > { %v2746_v44 = vpop.permute.xlu1 %2745 }
 0x267   : > { %2825 = vst.msk [vmem:[#allocation2 + $0x44] sm:$0xf] %vm2807_vm14, %v2746_v44  ;;  %v2744_v5 = vpop.permute.xlu0 %2743  ;;  %v3920_v61 = vld [vmem:[#allocation2 + $0x20] sm:$0xff]  ;;  %v2720_v55 = vpop.permute.xlu2 %2719  ;;  %v2511_v8 = vrot.slane %v2509_v12, 4  ;;  %v4087_v44 = vld [vmem:[%s4172_s22 + $0xbc] sm:$0x1] }
 0x268   : > { %2824 = vst.msk [vmem:[#allocation2 + $0x40] sm:$0xf] %vm2807_vm14, %v2744_v5  ;;  %3901 = vmatmul.msk.bf16.vlgmr.msra.gmra.mxu1 %vm3233_vm0, %v3920_v61  ;;  %v1976_v25 = vrot.slane %v4087_v44, 5  ;;  %v2909_v5 = vrot.slane %v2907_v45, 4  ;;  %v2910_v61 = vrot.slane %v3784_v41, 5 }
 0x269   : > { %3081 = vst.msk [vmem:[#allocation2 + $0x40] sm:$0xf] %vm3064_vm15, %v3001_v51  ;;  %v2662_v51 = vsel %vm4208_vm2, %v2657_v1, %v2661_v17  ;;  %v2512_v59 = vor.u32 %v2511_v8, %v2507_v6  ;;  %v5938_v17 = vld [vmem:[%s4172_s22 + $0xc4] sm:$0xf] }
 0x26a   : > { %v1977_v13 = vsel %vm4526_vm6, %v1975_v38, %v1976_v25  ;;  %v2911_v15 = vsel %vm4526_vm6, %v2909_v5, %v2910_v61  ;;  %v2677_v48 = vshrl.u32 %v5938_v17, 16  ;;  %v2956_v45 = vrot.slane %v5938_v17, 5 }
 0x26b   : > { %v2513_v18 = vrot.slane %v2512_v59, 4 }
 0x26c   : > { %2763 = vrot.lane.b32.xlu1 %v2652_v16, %s4121_s29  ;;  %v5916_v16 = vld [vmem:[%s4172_s22 + $0x9c] sm:$0xf]  ;;  %v2679_v2 = vrot.slane %v2677_v48, 4  ;;  %v2958_v61 = vrot.slane %v2956_v45, 4 }
 0x26d   : > { %2753 = vrot.lane.b32.xlu0 %v2590_v7, %s4121_s29  ;;  %2751 = vrot.lane.b32.xlu2 %v2580_v3, %s4121_s29  ;;  %v2518_v22 = vsel %vm4208_vm2, %v2513_v18, %v2517_v35  ;;  %v2592_v3 = vshrl.u32 %v5916_v16, 16  ;;  %v2595_v20 = vshll.u32 %v5916_v16, 16  ;;  %v2935_v18 = vrot.slane %v5910_v58, 5 }
 0x26e   : > { %v2207_v31 = vpop.permute.xlu1 %2206  ;;  %v3820_v35 = vrot.slane %v5916_v16, 9 }
 0x26f   : > { %2299 = vst.msk [vmem:[#allocation2 + $0x10] sm:$0xf] %vm2294_vm13, %v2207_v31  ;;  %v3003_v32 = vpop.permute.xlu0 %3002  ;;  %v2734_v60 = vpop.permute.xlu2 %2733  ;;  %v5933_v31 = vld [vmem:[%s4172_s22 + $0xa4] sm:$0x1] }
 0x270   : > { %3082 = vst.msk [vmem:[#allocation2 + $0x44] sm:$0xf] %vm3064_vm15, %v3003_v32  ;;  %v2597_v32 = vrot.slane %v2595_v20, 5  ;;  %v2611_v34 = vshll.u32 %v5933_v31, 16 }
 0x271   : > { %2812 = vst.msk [vmem:[#allocation2 + $0x10] sm:$0xf] %vm2807_vm14, %v2720_v55  ;;  %v2605_v55 = vshrl.u32 %v5910_v58, 16 }
 0x272   : > { %v2613_v8 = vrot.slane %v2611_v34, 5 }
 0x273   : > { %v2607_v9 = vrot.slane %v2605_v55, 4  ;;  %v5991_v55 = vld [vmem:[%s4172_s22 + $0xcc] sm:$0xf] }
 0x274   : > { %3010 = vrot.lane.b32.xlu1 %v2932_v52, %s4122_s30  ;;  %v5943_v52 = vld [vmem:[%s4172_s22 + $0xc0] sm:$0xf] }
 0x275   : > { %3008 = vrot.lane.b32.xlu0 %v2929_v54, %s4122_s30  ;;  %2765 = vrot.lane.b32.xlu2 %v2662_v51, %s4121_s29  ;;  %v2673_v54 = vshll.u32 %v5938_v17, 16  ;;  %v2664_v43 = vshrl.u32 %v5943_v52, 16  ;;  %v2667_v51 = vshll.u32 %v5943_v52, 16 }
 0x276   : > { %v2221_v4 = vpop.permute.xlu1 %2220 }
 0x277   : > { %2306 = vst.msk [vmem:[#allocation2 + $0x2c] sm:$0xf] %vm2294_vm13, %v2221_v4  ;;  %v2219_v0 = vpop.permute.xlu0 %2218  ;;  %v3924_v36 = vld [vmem:[#allocation2 + $0x40] sm:$0xff]  ;;  %v2989_v49 = vpop.permute.xlu2 %2988  ;;  %v2675_v33 = vrot.slane %v2673_v54, 5  ;;  %v2669_v29 = vrot.slane %v2667_v51, 5 }
 0x278   : > { %2305 = vst.msk [vmem:[#allocation2 + $0x28] sm:$0xf] %vm2294_vm13, %v2219_v0  ;;  %3905 = vmatmul.msk.bf16.vlgmr.msra.gmra.mxu2 %vm3233_vm0, %v3924_v36  ;;  %v3805_v0 = vld [vmem:[%s4172_s22 + $0xc8] sm:$0x1]  ;;  %v2666_v36 = vrot.slane %v2664_v43, 4 }
 0x279   : > { %2819 = vst.msk [vmem:[#allocation2 + $0x2c] sm:$0xf] %vm2807_vm14, %v2734_v60  ;;  %v2608_v60 = vor.u32 %v2607_v9, %v2603_v42  ;;  %v2683_v63 = vshll.u32 %v3805_v0, 16  ;;  %v3808_v54 = vld [vmem:[%s4172_s22 + $0xd4] sm:$0x1] }
 0x27b   : > { %v2609_v6 = vrot.slane %v2608_v60, 4  ;;  %v4090_v60 = vld [vmem:[%s4172_s22 + $0xc8] sm:$0x1] }
 0x27c   : > { %2226 = vrot.lane.b32.xlu1 %v5862_v21, %s4120_s28  ;;  %v1983_v34 = vrot.slane %v4090_v60, 5 }
 0x27d   : > { %3022 = vrot.lane.b32.xlu0 %v2953_v24, %s4122_s30  ;;  %3020 = vrot.lane.b32.xlu2 %v2950_v47, %s4122_s30  ;;  %v2614_v59 = vsel %vm4208_vm2, %v2609_v6, %v2613_v8  ;;  %v2680_v24 = vor.u32 %v2679_v2, %v2675_v33  ;;  %v2670_v47 = vor.u32 %v2669_v29, %v2666_v36 }
 0x27e   : > { %v2732_v11 = vpop.permute.xlu1 %2731 }
 0x27f   : > { %2818 = vst.msk [vmem:[#allocation2 + $0x28] sm:$0xf] %vm2807_vm14, %v2732_v11  ;;  %v2722_v28 = vpop.permute.xlu0 %2721  ;;  %v2237_v46 = vpop.permute.xlu2 %2236  ;;  %v2681_v23 = vrot.slane %v2680_v24, 4 }
 0x280   : > { %2813 = vst.msk [vmem:[#allocation2 + $0x14] sm:$0xf] %vm2807_vm14, %v2722_v28  ;;  %v2685_v28 = vrot.slane %v2683_v63, 5 }
 0x281   : > { %3075 = vst.msk [vmem:[#allocation2 + $0x28] sm:$0xf] %vm3064_vm15, %v2989_v49 }
 0x282   : > { %2314 = vst.msk [vmem:[#allocation2 + $0x4c] sm:$0xf] %vm2294_vm13, %v2237_v46  ;;  %v2671_v46 = vrot.slane %v2670_v47, 4  ;;  %v2686_v44 = vsel %vm4208_vm2, %v2681_v23, %v2685_v28 }
 0x284   : > { %2741 = vrot.lane.b32.xlu1 %v2518_v22, %s4121_s29  ;;  %v2676_v25 = vsel %vm4208_vm2, %v2671_v46, %v2675_v33 }
 0x285   : > { %2739 = vrot.lane.b32.xlu0 %v2508_v53, %s4121_s29  ;;  %2228 = vrot.lane.b32.xlu2 %v5858_v37, %s4120_s28  ;;  %v2594_v37 = vrot.slane %v2592_v3, 4  ;;  %v2936_v53 = vsel %vm4526_vm6, %v3820_v35, %v2935_v18  ;;  %v5996_v3 = vld [vmem:[%s4172_s22 + $0xd0] sm:$0xf] }
 0x286   : > { %v2979_v56 = vpop.permute.xlu1 %2978  ;;  %v2963_v24 = vrot.slane %v5996_v3, 5 }
 0x287   : > { %3070 = vst.msk [vmem:[#allocation2 + $0x14] sm:$0xf] %vm3064_vm15, %v2979_v56  ;;  %v2977_v10 = vpop.permute.xlu0 %2976  ;;  %v2748_v7 = vpop.permute.xlu2 %2747  ;;  %v2598_v39 = vor.u32 %v2597_v32, %v2594_v37  ;;  %v4088_v56 = vld [vmem:[%s4172_s22 + $0xc0] sm:$0xf]  ;;  %v2688_v37 = vshrl.u32 %v5991_v55, 16  ;;  %v2697_v32 = vshll.u32 %v5996_v3, 16 }
 0x288   : > { %3069 = vst.msk [vmem:[#allocation2 + $0x10] sm:$0xf] %vm3064_vm15, %v2977_v10  ;;  %v3760_v5 = vrot.slane %v4088_v56, 9  ;;  %v3823_v10 = vrot.slane %v5943_v52, 9  ;;  %v2965_v47 = vrot.slane %v2963_v24, 4 }
 0x289   : > { %v2599_v26 = vrot.slane %v2598_v39, 4  ;;  %v2699_v51 = vrot.slane %v2697_v32, 5 }
 0x28b   : > { %v2604_v49 = vsel %vm4208_vm2, %v2599_v26, %v2603_v42  ;;  %v2701_v42 = vshrl.u32 %v5996_v3, 16 }
 0x28c   : > { %2043 = vrot.lane.b32.xlu1 %v1977_v13, %s4119_s27  ;;  %v1980_v13 = vrot.slane %v4089_v14, 5 }
 0x28d   : > { %2998 = vrot.lane.b32.xlu0 %v2911_v15, %s4122_s30  ;;  %2996 = vrot.lane.b32.xlu2 %v2908_v57, %s4122_s30  ;;  %v2938_v15 = vrot.slane %v5933_v31, 5  ;;  %v2691_v31 = vshll.u32 %v5991_v55, 16 }
 0x28e   : > { %v2235_v50 = vpop.permute.xlu1 %2234  ;;  %v1981_v9 = vsel %vm4526_vm6, %v3760_v5, %v1980_v13 }
 0x28f   : > { %2313 = vst.msk [vmem:[#allocation2 + $0x48] sm:$0xf] %vm2294_vm13, %v2235_v50  ;;  %v2991_v21 = vpop.permute.xlu0 %2990  ;;  %v3918_v1 = vld [vmem:[#allocation2 + $0x10] sm:$0xff]  ;;  %v2762_v12 = vpop.permute.xlu2 %2761  ;;  %v2957_v50 = vsel %vm4526_vm6, %v3823_v10, %v2956_v45  ;;  %v2693_v39 = vrot.slane %v2691_v31, 5  ;;  %v6054_v45 = vld [vmem:[%s6220_s2] ss:$0 sm:$0xff] }
 0x290   : > { %3076 = vst.msk [vmem:[#allocation2 + $0x2c] sm:$0xf] %vm3064_vm15, %v2991_v21  ;;  %3899 = vmatmul.msk.bf16.gmra.mxu0 %vm3233_vm0, %v3918_v1  ;;  %v2703_v1 = vrot.slane %v2701_v42, 4 }
 0x291   : > { %2826 = vst.msk [vmem:[#allocation2 + $0x48] sm:$0xf] %vm2807_vm14, %v2748_v7  ;;  %v2937_v7 = vrot.slane %v2935_v18, 4  ;;  %v2966_v18 = vrot.slane %v3808_v54, 5 }
 0x292   : > { %v2704_v8 = vor.u32 %v2703_v1, %v2699_v51 }
 0x293   : > { %v2939_v21 = vsel %vm4526_vm6, %v2937_v7, %v2938_v15  ;;  %v2967_v23 = vsel %vm4526_vm6, %v2965_v47, %v2966_v18 }
 0x294   : > { %2254 = vrot.lane.b32.xlu1 %v5943_v52, %s4120_s28  ;;  %v1982_v52 = vrot.slane %v1980_v13, 4  ;;  %v2705_v2 = vrot.slane %v2704_v8, 4 }
 0x295   : > { %2244 = vrot.lane.b32.xlu0 %v5910_v58, %s4120_s28  ;;  %2242 = vrot.lane.b32.xlu2 %v5916_v16, %s4120_s28  ;;  %v2959_v58 = vrot.slane %v3805_v0, 5 }
 0x296   : > { %v2249_v4 = vpop.permute.xlu1 %2248  ;;  %v1984_v26 = vsel %vm4526_vm6, %v1982_v52, %v1983_v34 }
 0x297   : > { %2320 = vst.msk [vmem:[#allocation2 + $0x64] sm:$0xf] %vm2294_vm13, %v2249_v4  ;;  %v2247_v30 = vpop.permute.xlu0 %2246  ;;  %v3921_v41 = vld [vmem:[#allocation2 + $0x28] sm:$0xff]  ;;  %v3017_v19 = vpop.permute.xlu2 %3016  ;;  %v2960_v20 = vsel %vm4526_vm6, %v2958_v61, %v2959_v58  ;;  %v2707_v4 = vshll.u32 %v3808_v54, 16 }
 0x298   : > { %2319 = vst.msk [vmem:[#allocation2 + $0x60] sm:$0xf] %vm2294_vm13, %v2247_v30  ;;  %3902 = vmatmul.msk.bf16.gmra.mxu1 %vm3233_vm0, %v3921_v41 }
 0x299   : > { %2833 = vst.msk [vmem:[#allocation2 + $0x64] sm:$0xf] %vm2807_vm14, %v2762_v12  ;;  %v2690_v12 = vrot.slane %v2688_v37, 4  ;;  %v2709_v30 = vrot.slane %v2707_v4, 5 }
 0x29b   : > { %v2694_v33 = vor.u32 %v2693_v39, %v2690_v12 }
 0x29c   : > { %2757 = vrot.lane.b32.xlu1 %v2614_v59, %s4121_s29  ;;  %v2710_v59 = vsel %vm4208_vm2, %v2705_v2, %v2709_v30 }
 0x29d   : > { %2755 = vrot.lane.b32.xlu0 %v2604_v49, %s4121_s29  ;;  %2256 = vrot.lane.b32.xlu2 %v5938_v17, %s4120_s28  ;;  %v2695_v0 = vrot.slane %v2694_v33, 4 }
 0x29e   : > { %v2760_v11 = vpop.permute.xlu1 %2759 }
 0x29f   : > { %2832 = vst.msk [vmem:[#allocation2 + $0x60] sm:$0xf] %vm2807_vm14, %v2760_v11  ;;  %v2750_v22 = vpop.permute.xlu0 %2749  ;;  %v2213_v38 = vpop.permute.xlu2 %2212  ;;  %v2700_v49 = vsel %vm4208_vm2, %v2695_v0, %v2699_v51  ;;  %v3824_v11 = vrot.slane %v5991_v55, 9 }
 0x2a0   : > { %2827 = vst.msk [vmem:[#allocation2 + $0x4c] sm:$0xf] %vm2807_vm14, %v2750_v22 }
 0x2a1   : > { %3089 = vst.msk [vmem:[#allocation2 + $0x60] sm:$0xf] %vm3064_vm15, %v3017_v19  ;;  %v2964_v28 = vsel %vm4526_vm6, %v3824_v11, %v2963_v24 }
 0x2a2   : > { %2302 = vst.msk [vmem:[#allocation2 + $0x1c] sm:$0xf] %vm2294_vm13, %v2213_v38 }
 0x2a4   : > { %3012 = vrot.lane.b32.xlu1 %v2936_v53, %s4122_s30 }
 0x2a5   : > { %2769 = vrot.lane.b32.xlu0 %v2686_v44, %s4121_s29  ;;  %2767 = vrot.lane.b32.xlu2 %v2676_v25, %s4121_s29 }
 0x2a6   : > { %v3007_v16 = vpop.permute.xlu1 %3006 }
 0x2a7   : > { %3084 = vst.msk [vmem:[#allocation2 + $0x4c] sm:$0xf] %vm3064_vm15, %v3007_v16  ;;  %v3005_v40 = vpop.permute.xlu0 %3004  ;;  %v2724_v57 = vpop.permute.xlu2 %2723 }
 0x2a8   : > { %3083 = vst.msk [vmem:[#allocation2 + $0x48] sm:$0xf] %vm3064_vm15, %v3005_v40 }
 0x2ac   : > { %3026 = vrot.lane.b32.xlu1 %v2960_v20, %s4122_s30 }
 0x2ad   : > { %3024 = vrot.lane.b32.xlu0 %v2957_v50, %s4122_s30  ;;  %3014 = vrot.lane.b32.xlu2 %v2939_v21, %s4122_s30 }
 0x2ae   : > { %v2211_v17 = vpop.permute.xlu1 %2210 }
 0x2af   : > { %2301 = vst.msk [vmem:[#allocation2 + $0x18] sm:$0xf] %vm2294_vm13, %v2211_v17  ;;  %v3019_v48 = vpop.permute.xlu0 %3018  ;;  %v3925_v43 = vld [vmem:[#allocation2 + $0x48] sm:$0xff]  ;;  %v2738_v6 = vpop.permute.xlu2 %2737 }
 0x2b0   : > { %3090 = vst.msk [vmem:[#allocation2 + $0x64] sm:$0xf] %vm3064_vm15, %v3019_v48  ;;  %3906 = vmatmul.msk.bf16.gmra.mxu2 %vm3233_vm0, %v3925_v43 }
 0x2b1   : > { %2814 = vst.msk [vmem:[#allocation2 + $0x18] sm:$0xf] %vm2807_vm14, %v2724_v57 }
 0x2b4   : > { %2258 = vrot.lane.b32.xlu1 %v5991_v55, %s4120_s28 }
 0x2b5   : > { %2047 = vrot.lane.b32.xlu0 %v1984_v26, %s4119_s27  ;;  %2045 = vrot.lane.b32.xlu2 %v1981_v9, %s4119_s27 }
 0x2b6   : > { %v2225_v41 = vpop.permute.xlu1 %2224 }
 0x2b7   : > { %2308 = vst.msk [vmem:[#allocation2 + $0x34] sm:$0xf] %vm2294_vm13, %v2225_v41  ;;  %v2223_v36 = vpop.permute.xlu0 %2222  ;;  %v3928_v29 = vld [vmem:[#allocation2 + $0x60] sm:$0xff]  ;;  %v2993_v19 = vpop.permute.xlu2 %2992 }
 0x2b8   : > { %2307 = vst.msk [vmem:[#allocation2 + $0x30] sm:$0xf] %vm2294_vm13, %v2223_v36  ;;  %3909 = vmatmul.msk.bf16.vlgmr.msra.gmra.mxu3 %vm3233_vm0, %v3928_v29 }
 0x2b9   : > { %2821 = vst.msk [vmem:[#allocation2 + $0x34] sm:$0xf] %vm2807_vm14, %v2738_v6 }
 0x2bc   : > { %2773 = vrot.lane.b32.xlu1 %v2710_v59, %s4121_s29 }
 0x2bd   : > { %2771 = vrot.lane.b32.xlu0 %v2700_v49, %s4121_s29  ;;  %2260 = vrot.lane.b32.xlu2 %v5996_v3, %s4120_s28 }
 0x2be   : > { %v2736_v63 = vpop.permute.xlu1 %2735 }
 0x2bf   : > { %2820 = vst.msk [vmem:[#allocation2 + $0x30] sm:$0xf] %vm2807_vm14, %v2736_v63  ;;  %v2726_v35 = vpop.permute.xlu0 %2725  ;;  %v2241_v27 = vpop.permute.xlu2 %2240 }
 0x2c0   : > { %2815 = vst.msk [vmem:[#allocation2 + $0x1c] sm:$0xf] %vm2807_vm14, %v2726_v35 }
 0x2c1   : > { %3077 = vst.msk [vmem:[#allocation2 + $0x30] sm:$0xf] %vm3064_vm15, %v2993_v19 }
 0x2c2   : > { %2316 = vst.msk [vmem:[#allocation2 + $0x54] sm:$0xf] %vm2294_vm13, %v2241_v27 }
 0x2c5   : > { %3030 = vrot.lane.b32.xlu0 %v2967_v23, %s4122_s30  ;;  %v3295_v46 = vpop.f32.mrf.mxu0  ;;  %3028 = vrot.lane.b32.xlu2 %v2964_v28, %s4122_s30 }
 0x2c6   : > { %v2983_v22 = vpop.permute.xlu1 %2982  ;;  %v3296_v62 = vadd.f32 %v6054_v45, %v3295_v46 }
 0x2c7   : > { %3072 = vst.msk [vmem:[#allocation2 + $0x1c] sm:$0xf] %vm3064_vm15, %v2983_v22  ;;  %v2981_v53 = vpop.permute.xlu0 %2980  ;;  %v2752_v38 = vpop.permute.xlu2 %2751 }
 0x2c8   : > { %3071 = vst.msk [vmem:[#allocation2 + $0x18] sm:$0xf] %vm3064_vm15, %v2981_v53  ;;  %v3477_v58 = vmul.f32 %v3296_v62, %v3296_v62 }
 0x2cd   : > { %v3297_v25 = vpop.f32.mrf.mxu0 }
 0x2ce   : > { %v2239_v44 = vpop.permute.xlu1 %2238  ;;  %v3298_v5 = vadd.f32 %v6054_v45, %v3297_v25 }
 0x2cf   : > { %2315 = vst.msk [vmem:[#allocation2 + $0x50] sm:$0xf] %vm2294_vm13, %v2239_v44  ;;  %v2995_v56 = vpop.permute.xlu0 %2994  ;;  %v3919_v61 = vld [vmem:[#allocation2 + $0x18] sm:$0xff]  ;;  %v2766_v13 = vpop.permute.xlu2 %2765 }
 0x2d0   : > { %3078 = vst.msk [vmem:[#allocation2 + $0x34] sm:$0xf] %vm3064_vm15, %v2995_v56  ;;  %v3937_v10 = vpack.c.bf16 %v3298_v5, %v3296_v62  ;;  %v3439_v16 = vadd.f32 %v3298_v5, %v3296_v62  ;;  %v3478_v14 = vmul.f32 %v3298_v5, %v3298_v5  ;;  %3900 = vmatmul.msk.bf16.gmra.mxu0 %vm3233_vm0, %v3919_v61 }
 0x2d1   : > { %2828 = vst.msk [vmem:[#allocation2 + $0x50] sm:$0xf] %vm2807_vm14, %v2752_v38 }
 0x2d2   : > { %3938 = vst [vmem:[%s6064_s20] sm:$0xff] %v3937_v10   ;;  %v3509_v40 = vadd.f32 %v3478_v14, %v3477_v58 }
 0x2d6   : > { %v2253_v55 = vpop.permute.xlu1 %2252 }
 0x2d7   : > { %2322 = vst.msk [vmem:[#allocation2 + $0x6c] sm:$0xf] %vm2294_vm13, %v2253_v55  ;;  %v2251_v7 = vpop.permute.xlu0 %2250  ;;  %v3922_v15 = vld [vmem:[#allocation2 + $0x30] sm:$0xff]  ;;  %v3021_v3 = vpop.permute.xlu2 %3020 }
 0x2d8   : > { %2321 = vst.msk [vmem:[#allocation2 + $0x68] sm:$0xf] %vm2294_vm13, %v2251_v7  ;;  %3903 = vmatmul.msk.bf16.gmra.mxu1 %vm3233_vm0, %v3922_v15 }
 0x2d9   : > { %2835 = vst.msk [vmem:[#allocation2 + $0x6c] sm:$0xf] %vm2807_vm14, %v2766_v13 }
 0x2dd   : > { %v3300_v57 = vpop.f32.mrf.mxu0 }
 0x2de   : > { %v2764_v20 = vpop.permute.xlu1 %2763  ;;  %v3301_v9 = vadd.f32 %v6054_v45, %v3300_v57 }
 0x2df   : > { %2834 = vst.msk [vmem:[#allocation2 + $0x68] sm:$0xf] %vm2807_vm14, %v2764_v20  ;;  %v2754_v42 = vpop.permute.xlu0 %2753  ;;  %v2229_v31 = vpop.permute.xlu2 %2228 }
 0x2e0   : > { %2829 = vst.msk [vmem:[#allocation2 + $0x54] sm:$0xf] %vm2807_vm14, %v2754_v42  ;;  %v3440_v50 = vadd.f32 %v3439_v16, %v3301_v9  ;;  %v3479_v37 = vmul.f32 %v3301_v9, %v3301_v9 }
 0x2e1   : > { %3091 = vst.msk [vmem:[#allocation2 + $0x68] sm:$0xf] %vm3064_vm15, %v3021_v3 }
 0x2e2   : > { %2310 = vst.msk [vmem:[#allocation2 + $0x3c] sm:$0xf] %vm2294_vm13, %v2229_v31  ;;  %v3510_v32 = vadd.f32 %v3509_v40, %v3479_v37 }
 0x2e5   : > { %v3315_v1 = vpop.f32.mrf.mxu1  ;;  %v3302_v52 = vpop.f32.mrf.mxu0 }
 0x2e6   : > { %v3011_v21 = vpop.permute.xlu1 %3010  ;;  %v3303_v60 = vadd.f32 %v6054_v45, %v3302_v52  ;;  %v6083_v6 = vadd.f32 %v6054_v45, %v3315_v1 }
 0x2e7   : > { %3086 = vst.msk [vmem:[#allocation2 + $0x54] sm:$0xf] %vm3064_vm15, %v3011_v21  ;;  %v3009_v17 = vpop.permute.xlu0 %3008  ;;  %v2997_v34 = vpop.permute.xlu2 %2996 }
 0x2e8   : > { %3085 = vst.msk [vmem:[#allocation2 + $0x50] sm:$0xf] %vm3064_vm15, %v3009_v17  ;;  %v3942_v12 = vpack.c.bf16 %v3303_v60, %v3301_v9  ;;  %v3441_v39 = vadd.f32 %v3440_v50, %v3303_v60  ;;  %v3480_v54 = vmul.f32 %v3303_v60, %v3303_v60 }
 0x2ea   : > { %4014 = vst [vmem:[%s6064_s20 + $0x8] sm:$0xff] %v3942_v12   ;;  %v3511_v48 = vadd.f32 %v3510_v32, %v3480_v54 }
 0x2ed   : > { %v3317_v51 = vpop.f32.mrf.mxu1 }
 0x2ee   : > { %v2227_v43 = vpop.permute.xlu1 %2226  ;;  %v6087_v8 = vadd.f32 %v6054_v45, %v3317_v51 }
 0x2ef   : > { %2309 = vst.msk [vmem:[#allocation2 + $0x38] sm:$0xf] %vm2294_vm13, %v2227_v43  ;;  %v3023_v4 = vpop.permute.xlu0 %3022  ;;  %v3926_v26 = vld [vmem:[#allocation2 + $0x50] sm:$0xff]  ;;  %v2243_v2 = vpop.permute.xlu2 %2242 }
 0x2f0   : > { %3092 = vst.msk [vmem:[#allocation2 + $0x6c] sm:$0xf] %vm3064_vm15, %v3023_v4  ;;  %v3957_v33 = vpack.c.bf16 %v6087_v8, %v6083_v6  ;;  %3907 = vmatmul.msk.bf16.gmra.mxu2 %vm3233_vm0, %v3926_v26 }
 0x2f1   : > { %2317 = vst.msk [vmem:[#allocation2 + $0x58] sm:$0xf] %vm2294_vm13, %v2243_v2 }
 0x2f2   : > { %4017 = vst [vmem:[%s6064_s20 + $0x20] sm:$0xff] %v3957_v33  }
 0x2f6   : > { %v2742_v30 = vpop.permute.xlu1 %2741 }
 0x2f7   : > { %2823 = vst.msk [vmem:[#allocation2 + $0x3c] sm:$0xf] %vm2807_vm14, %v2742_v30  ;;  %v2740_v41 = vpop.permute.xlu0 %2739  ;;  %v3929_v0 = vld [vmem:[#allocation2 + $0x68] sm:$0xff]  ;;  %v2257_v36 = vpop.permute.xlu2 %2256 }
 0x2f8   : > { %2822 = vst.msk [vmem:[#allocation2 + $0x38] sm:$0xf] %vm2807_vm14, %v2740_v41  ;;  %3910 = vmatmul.msk.bf16.gmra.mxu3 %vm3233_vm0, %v3929_v0 }
 0x2f9   : > { %3079 = vst.msk [vmem:[#allocation2 + $0x38] sm:$0xf] %vm3064_vm15, %v2997_v34 }
 0x2fb   : > { %v3335_v29 = vpop.f32.mrf.mxu2 }
 0x2fc   : > { %v6103_v63 = vadd.f32 %v6054_v45, %v3335_v29 }
 0x2fe   : > { %v2044_v59 = vpop.permute.xlu1 %2043 }
 0x2ff   : > { %2111 = vst.msk [vmem:[#allocation2 + $0x74] sm:$0xf] %vm2081_vm11, %v2044_v59  ;;  %v2999_v19 = vpop.permute.xlu0 %2998  ;;  %v2768_v49 = vpop.permute.xlu2 %2767 }
 0x300   : > { %3080 = vst.msk [vmem:[#allocation2 + $0x3c] sm:$0xf] %vm3064_vm15, %v2999_v19 }
 0x301   : > { %2324 = vst.msk [vmem:[#allocation2 + $0x74] sm:$0xf] %vm2294_vm13, %v2257_v36 }
 0x303   : > { %v3337_v24 = vpop.f32.mrf.mxu2 }
 0x304   : > { %v6106_v47 = vadd.f32 %v6054_v45, %v3337_v24 }
 0x306   : > { %v2255_v18 = vpop.permute.xlu1 %2254  ;;  %v3977_v35 = vpack.c.bf16 %v6106_v47, %v6103_v63 }
 0x307   : > { %2323 = vst.msk [vmem:[#allocation2 + $0x70] sm:$0xf] %vm2294_vm13, %v2255_v18  ;;  %v2245_v11 = vpop.permute.xlu0 %2244  ;;  %v3923_v27 = vld [vmem:[#allocation2 + $0x38] sm:$0xff]  ;;  %v3015_v23 = vpop.permute.xlu2 %3014  ;;  %v3485_v18 = vmul.f32 %v6083_v6, %v6083_v6 }
 0x308   : > { %2318 = vst.msk [vmem:[#allocation2 + $0x5c] sm:$0xf] %vm2294_vm13, %v2245_v11  ;;  %3904 = vmatmul.msk.bf16.gmra.mxu1 %vm3233_vm0, %v3923_v27  ;;  %v3486_v27 = vmul.f32 %v6087_v8, %v6087_v8 }
 0x309   : > { %4021 = vst [vmem:[%s6064_s20 + $0x40] sm:$0xff] %v3977_v35  }
 0x30a   : > { %2836 = vst.msk [vmem:[#allocation2 + $0x70] sm:$0xf] %vm2807_vm14, %v2768_v49 }
 0x30d   : > { %v3305_v22 = vpop.f32.mrf.mxu0 }
 0x30e   : > { %v2758_v28 = vpop.permute.xlu1 %2757  ;;  %v3306_v53 = vadd.f32 %v6054_v45, %v3305_v22 }
 0x30f   : > { %2831 = vst.msk [vmem:[#allocation2 + $0x5c] sm:$0xf] %vm2807_vm14, %v2758_v28  ;;  %v2756_v46 = vpop.permute.xlu0 %2755  ;;  %v2046_v44 = vpop.permute.xlu2 %2045 }
 0x310   : > { %2830 = vst.msk [vmem:[#allocation2 + $0x58] sm:$0xf] %vm2807_vm14, %v2756_v46  ;;  %v3442_v38 = vadd.f32 %v3441_v39, %v3306_v53  ;;  %v3481_v62 = vmul.f32 %v3306_v53, %v3306_v53 }
 0x311   : > { %3088 = vst.msk [vmem:[#allocation2 + $0x5c] sm:$0xf] %vm3064_vm15, %v3015_v23 }
 0x312   : > { %2112 = vst.msk [vmem:[#allocation2 + $0x78] sm:$0xf] %vm2081_vm11, %v2046_v44  ;;  %v3512_v25 = vadd.f32 %v3511_v48, %v3481_v62 }
 0x315   : > { %v3320_v5 = vpop.f32.mrf.mxu1  ;;  %v3307_v58 = vpop.f32.mrf.mxu0 }
 0x316   : > { %v3013_v56 = vpop.permute.xlu1 %3012  ;;  %v3308_v10 = vadd.f32 %v6054_v45, %v3307_v58  ;;  %v3321_v3 = vadd.f32 %v6054_v45, %v3320_v5 }
 0x317   : > { %3087 = vst.msk [vmem:[#allocation2 + $0x58] sm:$0xf] %vm3064_vm15, %v3013_v56  ;;  %v2770_v61 = vpop.permute.xlu0 %2769  ;;  %v2261_v9 = vpop.permute.xlu2 %2260 }
 0x318   : > { %2837 = vst.msk [vmem:[#allocation2 + $0x74] sm:$0xf] %vm2807_vm14, %v2770_v61  ;;  %v3947_v16 = vpack.c.bf16 %v3308_v10, %v3306_v53  ;;  %v3443_v14 = vadd.f32 %v3442_v38, %v3308_v10  ;;  %v3482_v13 = vmul.f32 %v3308_v10, %v3308_v10  ;;  %v3487_v22 = vmul.f32 %v3321_v3, %v3321_v3 }
 0x31a   : > { %4015 = vst [vmem:[%s6064_s20 + $0x10] sm:$0xff] %v3947_v16   ;;  %v3513_v40 = vadd.f32 %v3512_v25, %v3482_v13 }
 0x31d   : > { %v3322_v7 = vpop.f32.mrf.mxu1 }
 0x31e   : > { %v3027_v55 = vpop.permute.xlu1 %3026  ;;  %v3927_v15 = vld [vmem:[#allocation2 + $0x58] sm:$0xff]  ;;  %v3323_v20 = vadd.f32 %v6054_v45, %v3322_v7 }
 0x31f   : > { %3094 = vst.msk [vmem:[#allocation2 + $0x74] sm:$0xf] %vm3064_vm15, %v3027_v55  ;;  %v3025_v57 = vpop.permute.xlu0 %3024  ;;  %3908 = vmatmul.msk.bf16.gmra.mxu2 %vm3233_vm0, %v3927_v15  ;;  %v3029_v21 = vpop.permute.xlu2 %3028 }
 0x320   : > { %3093 = vst.msk [vmem:[#allocation2 + $0x70] sm:$0xf] %vm3064_vm15, %v3025_v57  ;;  %v3962_v42 = vpack.c.bf16 %v3323_v20, %v3321_v3  ;;  %v3488_v25 = vmul.f32 %v3323_v20, %v3323_v20 }
 0x322   : > { %4018 = vst [vmem:[%s6064_s20 + $0x28] sm:$0xff] %v3962_v42  }
 0x326   : > { %v2259_v50 = vpop.permute.xlu1 %2258 }
 0x327   : > { %v2048_v37 = vpop.permute.xlu0 %2047  ;;  %v3930_v31 = vld [vmem:[#allocation2 + $0x70] sm:$0xff]  ;;  %2325 = vst.msk [vmem:[#allocation2 + $0x78] sm:$0xf] %vm2294_vm13, %v2259_v50 }
 0x328   : > { %2113 = vst.msk [vmem:[#allocation2 + $0x7c] sm:$0xf] %vm2081_vm11, %v2048_v37  ;;  %3911 = vmatmul.msk.bf16.gmra.mxu3 %vm3233_vm0, %v3930_v31 }
 0x329   : > { %2326 = vst.msk [vmem:[#allocation2 + $0x7c] sm:$0xf] %vm2294_vm13, %v2261_v9 }
 0x32e   : > { %v2774_v32 = vpop.permute.xlu1 %2773 }
 0x32f   : > { %v2772_v1 = vpop.permute.xlu0 %2771  ;;  %2839 = vst.msk [vmem:[#allocation2 + $0x7c] sm:$0xf] %vm2807_vm14, %v2774_v32 }
 0x330   : > { %2838 = vst.msk [vmem:[#allocation2 + $0x78] sm:$0xf] %vm2807_vm14, %v2772_v1 }
 0x331   : > { %3095 = vst.msk [vmem:[#allocation2 + $0x78] sm:$0xf] %vm3064_vm15, %v3029_v21 }
 0x333   : > { %v3340_v17 = vpop.f32.mrf.mxu2 }
 0x334   : > { %v6139_v12 = vadd.f32 %v6054_v45, %v3340_v17 }
 0x337   : > { %v3031_v52 = vpop.permute.xlu0 %3030 }
 0x338   : > { %3096 = vst.msk [vmem:[#allocation2 + $0x7c] sm:$0xf] %vm3064_vm15, %v3031_v52 }
 0x33b   : > { %v3342_v60 = vpop.f32.mrf.mxu2  ;;  %v3355_v34 = vpop.f32.mrf.mxu3 }
 0x33c   : > { %v6142_v39 = vadd.f32 %v6054_v45, %v3342_v60  ;;  %v6149_v51 = vadd.f32 %v6054_v45, %v3355_v34 }
 0x33e   : > { %v3982_v54 = vpack.c.bf16 %v6142_v39, %v6139_v12 }
 0x33f   : > { %v3931_v48 = vld [vmem:[#allocation2 + $0x78] sm:$0xff] }
 0x340   : > { %4022 = vst [vmem:[%s6064_s20 + $0x48] sm:$0xff] %v3982_v54   ;;  %3912 = vmatmul.msk.bf16.gmra.mxu3 %vm3233_vm0, %v3931_v48 }
 0x343   : > { %v3357_v43 = vpop.f32.mrf.mxu3 }
 0x344   : > { %v6152_v4 = vadd.f32 %v6054_v45, %v3357_v43  ;;  %v3493_v43 = vmul.f32 %v6103_v63, %v6103_v63 }
 0x346   : > { %v3997_v26 = vpack.c.bf16 %v6152_v4, %v6149_v51 }
 0x348   : > { %4025 = vst [vmem:[%s6064_s20 + $0x60] sm:$0xff] %v3997_v26  }
 0x34d   : > { %v3310_v33 = vpop.f32.mrf.mxu0 }
 0x34e   : > { %v3311_v2 = vadd.f32 %v6054_v45, %v3310_v33 }
 0x350   : > { %v3444_v30 = vadd.f32 %v3443_v14, %v3311_v2  ;;  %v3483_v41 = vmul.f32 %v3311_v2, %v3311_v2 }
 0x352   : > { %v3514_v0 = vadd.f32 %v3513_v40, %v3483_v41 }
 0x355   : > { %v3312_v36 = vpop.f32.mrf.mxu0  ;;  %v3325_v29 = vpop.f32.mrf.mxu1 }
 0x356   : > { %v3313_v59 = vadd.f32 %v6054_v45, %v3312_v36  ;;  %v3326_v38 = vadd.f32 %v6054_v45, %v3325_v29 }
 0x358   : > { %v3952_v19 = vpack.c.bf16 %v3313_v59, %v3311_v2  ;;  %v3445_v49 = vadd.f32 %v3444_v30, %v3313_v59  ;;  %v3484_v24 = vmul.f32 %v3313_v59, %v3313_v59  ;;  %v3489_v58 = vmul.f32 %v3326_v38, %v3326_v38 }
 0x359   : > { %v3494_v2 = vmul.f32 %v6106_v47, %v6106_v47  ;;  %v3496_v59 = vmul.f32 %v6142_v39, %v6142_v39 }
 0x35a   : > { %4016 = vst [vmem:[%s6064_s20 + $0x18] sm:$0xff] %v3952_v19   ;;  %v3446_v35 = vadd.f32 %v3445_v49, %v6083_v6  ;;  %v3515_v11 = vadd.f32 %v3514_v0, %v3484_v24  ;;  %v3495_v0 = vmul.f32 %v6139_v12, %v6139_v12 }
 0x35c   : > { %v3447_v23 = vadd.f32 %v3446_v35, %v6087_v8  ;;  %v3516_v28 = vadd.f32 %v3515_v11, %v3485_v18 }
 0x35d   : > { %v3327_v46 = vpop.f32.mrf.mxu1 }
 0x35e   : > { %v3517_v53 = vadd.f32 %v3516_v28, %v3486_v27  ;;  %v3448_v62 = vadd.f32 %v3447_v23, %v3321_v3  ;;  %v3328_v44 = vadd.f32 %v6054_v45, %v3327_v46 }
 0x360   : > { %v3449_v56 = vadd.f32 %v3448_v62, %v3323_v20  ;;  %v3518_v5 = vadd.f32 %v3517_v53, %v3487_v22  ;;  %v3967_v6 = vpack.c.bf16 %v3328_v44, %v3326_v38  ;;  %v3490_v14 = vmul.f32 %v3328_v44, %v3328_v44 }
 0x362   : > { %v3450_v61 = vadd.f32 %v3449_v56, %v3326_v38  ;;  %v3519_v10 = vadd.f32 %v3518_v5, %v3488_v25  ;;  %4019 = vst [vmem:[%s6064_s20 + $0x30] sm:$0xff] %v3967_v6   ;;  %v3501_v25 = vmul.f32 %v6149_v51, %v6149_v51  ;;  %v3502_v6 = vmul.f32 %v6152_v4, %v6152_v4 }
 0x364   : > { %v3520_v16 = vadd.f32 %v3519_v10, %v3489_v58  ;;  %v3451_v8 = vadd.f32 %v3450_v61, %v3328_v44 }
 0x366   : > { %v3521_v13 = vadd.f32 %v3520_v16, %v3490_v14 }
 0x373   : > { %v3345_v40 = vpop.f32.mrf.mxu2 }
 0x374   : > { %v3346_v15 = vadd.f32 %v6054_v45, %v3345_v40 }
 0x376   : > { %v3497_v24 = vmul.f32 %v3346_v15, %v3346_v15 }
 0x37b   : > { %v3347_v55 = vpop.f32.mrf.mxu2  ;;  %v3360_v7 = vpop.f32.mrf.mxu3 }
 0x37c   : > { %v3348_v3 = vadd.f32 %v6054_v45, %v3347_v55  ;;  %v3361_v42 = vadd.f32 %v6054_v45, %v3360_v7 }
 0x37e   : > { %v3987_v20 = vpack.c.bf16 %v3348_v3, %v3346_v15  ;;  %v3498_v11 = vmul.f32 %v3348_v3, %v3348_v3  ;;  %v3503_v10 = vmul.f32 %v3361_v42, %v3361_v42 }
 0x380   : > { %4023 = vst [vmem:[%s6064_s20 + $0x50] sm:$0xff] %v3987_v20  }
 0x383   : > { %v3362_v57 = vpop.f32.mrf.mxu3 }
 0x384   : > { %v3363_v9 = vadd.f32 %v6054_v45, %v3362_v57 }
 0x385   : > { %v3330_v50 = vpop.f32.mrf.mxu1 }
 0x386   : > { %v4002_v37 = vpack.c.bf16 %v3363_v9, %v3361_v42  ;;  %v3331_v31 = vadd.f32 %v6054_v45, %v3330_v50  ;;  %v3504_v55 = vmul.f32 %v3363_v9, %v3363_v9 }
 0x388   : > { %4026 = vst [vmem:[%s6064_s20 + $0x68] sm:$0xff] %v4002_v37   ;;  %v3491_v32 = vmul.f32 %v3331_v31, %v3331_v31  ;;  %v3452_v17 = vadd.f32 %v3451_v8, %v3331_v31 }
 0x38a   : > { %v3522_v34 = vadd.f32 %v3521_v13, %v3491_v32 }
 0x38d   : > { %v3332_v21 = vpop.f32.mrf.mxu1 }
 0x38e   : > { %v3333_v1 = vadd.f32 %v6054_v45, %v3332_v21 }
 0x390   : > { %v3972_v52 = vpack.c.bf16 %v3333_v1, %v3331_v31  ;;  %v3492_v60 = vmul.f32 %v3333_v1, %v3333_v1  ;;  %v3453_v54 = vadd.f32 %v3452_v17, %v3333_v1 }
 0x392   : > { %4020 = vst [vmem:[%s6064_s20 + $0x38] sm:$0xff] %v3972_v52   ;;  %v3523_v48 = vadd.f32 %v3522_v34, %v3492_v60  ;;  %v3454_v26 = vadd.f32 %v3453_v54, %v6103_v63 }
 0x394   : > { %v3524_v33 = vadd.f32 %v3523_v48, %v3493_v43  ;;  %v3455_v30 = vadd.f32 %v3454_v26, %v6106_v47 }
 0x396   : > { %v3525_v41 = vadd.f32 %v3524_v33, %v3494_v2  ;;  %v3456_v36 = vadd.f32 %v3455_v30, %v6139_v12 }
 0x398   : > { %v3526_v29 = vadd.f32 %v3525_v41, %v3495_v0  ;;  %v3457_v19 = vadd.f32 %v3456_v36, %v6142_v39 }
 0x39a   : > { %v3527_v63 = vadd.f32 %v3526_v29, %v3496_v59  ;;  %v3458_v35 = vadd.f32 %v3457_v19, %v3346_v15 }
 0x39c   : > { %v3528_v47 = vadd.f32 %v3527_v63, %v3497_v24  ;;  %v3459_v27 = vadd.f32 %v3458_v35, %v3348_v3 }
 0x39e   : > { %v3529_v12 = vadd.f32 %v3528_v47, %v3498_v11 }
 0x3a2   : > { %v3350_v49 = vpop.f32.mrf.mxu2 }
 0x3a3   : > { %v3351_v18 = vadd.f32 %v6054_v45, %v3350_v49 }
 0x3a5   : > { %v3499_v23 = vmul.f32 %v3351_v18, %v3351_v18  ;;  %v3460_v22 = vadd.f32 %v3459_v27, %v3351_v18 }
 0x3a7   : > { %v3530_v38 = vadd.f32 %v3529_v12, %v3499_v23 }
 0x3aa   : > { %v3352_v28 = vpop.f32.mrf.mxu2 }
 0x3ab   : > { %v3353_v46 = vadd.f32 %v6054_v45, %v3352_v28  ;;  %v3365_v53 = vpop.f32.mrf.mxu3 }
 0x3ac   : > { %v3366_v13 = vadd.f32 %v6054_v45, %v3365_v53 }
 0x3ad   : > { %v3992_v62 = vpack.c.bf16 %v3353_v46, %v3351_v18  ;;  %v3461_v39 = vadd.f32 %v3460_v22, %v3353_v46  ;;  %v3500_v44 = vmul.f32 %v3353_v46, %v3353_v46 }
 0x3ae   : > { %v3505_v50 = vmul.f32 %v3366_v13, %v3366_v13 }
 0x3af   : > { %4024 = vst [vmem:[%s6064_s20 + $0x58] sm:$0xff] %v3992_v62   ;;  %v3462_v56 = vadd.f32 %v3461_v39, %v6149_v51  ;;  %v3531_v5 = vadd.f32 %v3530_v38, %v3500_v44 }
 0x3b1   : > { %v3463_v61 = vadd.f32 %v3462_v56, %v6152_v4  ;;  %v3532_v58 = vadd.f32 %v3531_v5, %v3501_v25 }
 0x3b3   : > { %v3533_v16 = vadd.f32 %v3532_v58, %v3502_v6  ;;  %v3464_v8 = vadd.f32 %v3463_v61, %v3361_v42  ;;  %v3367_v14 = vpop.f32.mrf.mxu3 }
 0x3b4   : > { %v3368_v40 = vadd.f32 %v6054_v45, %v3367_v14 }
 0x3b5   : > { %v3465_v7 = vadd.f32 %v3464_v8, %v3363_v9  ;;  %v3534_v15 = vadd.f32 %v3533_v16, %v3503_v10 }
 0x3b6   : > { %v4007_v51 = vpack.c.bf16 %v3368_v40, %v3366_v13  ;;  %v3506_v42 = vmul.f32 %v3368_v40, %v3368_v40 }
 0x3b7   : > { %v3535_v3 = vadd.f32 %v3534_v15, %v3504_v55  ;;  %v3466_v57 = vadd.f32 %v3465_v7, %v3366_v13 }
 0x3b8   : > { %4027 = vst [vmem:[%s6064_s20 + $0x70] sm:$0xff] %v4007_v51  }
 0x3b9   : > { %v3536_v37 = vadd.f32 %v3535_v3, %v3505_v50  ;;  %v3467_v31 = vadd.f32 %v3466_v57, %v3368_v40 }
 0x3bb   : > { %v3537_v1 = vadd.f32 %v3536_v37, %v3506_v42 }
 0x3c3   : > { %v3370_v20 = vpop.f32.mrf.mxu3 }
 0x3c4   : > { %v3371_v4 = vadd.f32 %v6054_v45, %v3370_v20 }
 0x3c6   : > { %v3507_v32 = vmul.f32 %v3371_v4, %v3371_v4  ;;  %v3468_v17 = vadd.f32 %v3467_v31, %v3371_v4 }
 0x3c8   : > { %v3538_v52 = vadd.f32 %v3537_v1, %v3507_v32 }
 0x3cb   : > { %v3372_v21 = vpop.f32.mrf.mxu3 }
 0x3cc   : > { %v3373_v9 = vadd.f32 %v6054_v45, %v3372_v21 }
 0x3ce   : > { %v4012_v60 = vpack.c.bf16 %v3373_v9, %v3371_v4  ;;  %v3469_v34 = vadd.f32 %v3468_v17, %v3373_v9  ;;  %v3508_v54 = vmul.f32 %v3373_v9, %v3373_v9 }
 0x3d0   : > { %4028 = vst [vmem:[%s6064_s20 + $0x78] sm:$0xff] %v4012_v60   ;;  %v3470_v48 = vrot.slane %v3469_v34, 4  ;;  %v3539_v43 = vadd.f32 %v3538_v52, %v3508_v54 }
 0x3d2   : > { %v3471_v26 = vadd.f32 %v3470_v48, %v3469_v34  ;;  %v3540_v33 = vrot.slane %v3539_v43, 4 }
 0x3d4   : > { %v3472_v2 = vrot.slane %v3471_v26, 2  ;;  %v3541_v30 = vadd.f32 %v3540_v33, %v3539_v43 }
 0x3d6   : > { %v3473_v41 = vadd.f32 %v3472_v2, %v3471_v26  ;;  %v3542_v0 = vrot.slane %v3541_v30, 2 }
 0x3d8   : > { %v3474_v36 = vrot.slane %v3473_v41, 1  ;;  %v3543_v29 = vadd.f32 %v3542_v0, %v3541_v30 }
 0x3da   : > { %v3475_v45 = vadd.f32 %v3474_v36, %v3473_v41  ;;  %v3544_v59 = vrot.slane %v3543_v29, 1 }
 0x3dc   : > { %3476 = vst [vmem:[%s235_s24] sm:$0x1] %v3475_v45  ;;  %v3545_v19 = vadd.f32 %v3544_v59, %v3543_v29 }
 0x3de   : > { %3546 = vst [vmem:[%s235_s24 + $0x1] sm:$0x1] %v3545_v19 }
 0x3df PF: > { %s15_s17 = sadd.s32 1, %s4113_s17   ;;  %s6265_s15 = smov %s4109_s16 }
 0x3e0   : > { %p12_p5 = scmp.ge.s32.totalorder %s15_s17, 4   ;;  %s6266_s16 = smov %s6268_s18 }
 0x3e2   :  { %14 = sbr.rel (!%p12_p5) target bundleno = 2 (0x2), region = 77 }

</bundles_post_ra>
